<compile_context>
chip_gen: v7x
topology: tpu7x:2x2x1
jax: 0.10.0
libtpu: 0.0.40
codegen_flags: <defaults>
</compile_context>

<pallas_src>
import numpy as np

import jax
import jax.numpy as jnp
from jax.experimental import pallas as pl
from jax.experimental.pallas import tpu as pltpu

KH = KW = 3  # filter_size=3, padding=(1,1)


def _banded_layer_matrices(w4, width):
    """Host-side (numpy): (3,3,Cin,Cout) conv weight -> KH banded matrices.

    B_kh has shape (W*Cin, W*Cout).  For conv output position ow the taps at
    input position iw = ow + kw - 1 are placed only when 0 <= iw < W (i.e. the
    left/right zero padding is folded into the matrix).  Output columns are
    permuted so that even-ow blocks occupy lanes [0, wo*Cout) and odd-ow blocks
    occupy [wo*Cout, 2*wo*Cout); the 2x2 W-pool then becomes a single max of
    the two contiguous lane halves.
    """
    _, _, cin, cout = w4.shape
    wo = width // 2
    mats = []
    for kh in range(KH):
        m = np.zeros((width, cin, width, cout), np.float32)  # [iw, ci, col, co]
        for ow in range(width):
            col = (ow // 2) if (ow % 2 == 0) else (wo + ow // 2)
            for kw in range(KW):
                iw = ow + kw - 1
                if 0 <= iw < width:
                    m[iw, :, col, :] += w4[kh, kw]
        mats.append(m.reshape(width * cin, width * cout))
    return mats


def _pack_weights(weights_np, w0, chans):
    """Pack all KH*num_layers banded matrices into one (rows, max_lanes) buffer."""
    num_layers = len(weights_np)
    per_layer, dims = [], []
    w = w0
    for li in range(num_layers):
        per_layer.append(_banded_layer_matrices(weights_np[li], w))
        dims.append((w * chans[li], w * chans[li + 1]))  # (K, Nc)
        w //= 2
    max_n = max(n for _, n in dims)
    total_rows = sum(KH * k for k, _ in dims)
    packed = np.zeros((total_rows, max_n), np.float32)
    offsets = []
    r = 0
    for li in range(num_layers):
        k, n = dims[li]
        offsets.append(r)
        for kh in range(KH):
            packed[r:r + k, 0:n] = per_layer[li][kh]
            r += k
    return packed, tuple(offsets)


def _make_kernel(num_layers, h0, w0, chans, offsets):
    """Fused per-sample kernel.  chans[i] = Cin of layer i; offsets = packed-row
    offset of each layer's banded matrices (static Python ints)."""

    def kernel(x_ref, w_ref, o_ref, pad_a, pad_b, tmp):
        pads = (pad_a, pad_b)
        h, w = h0, w0
        c0 = chans[0]

        # Stage-0 input: zero only the two H-pad border rows, write the interior.
        zrow0 = jnp.zeros((1, w * c0), jnp.float32)
        pads[0][0:1, 0:w * c0] = zrow0
        pads[0][h + 1:h + 2, 0:w * c0] = zrow0
        pads[0][1:h + 1, 0:w * c0] = x_ref[...].astype(jnp.float32)

        for li in range(num_layers):
            cin, cout = chans[li], chans[li + 1]
            K, Nc = w * cin, w * cout           # matmul K / conv-output lanes
            ho, wo = h // 2, w // 2
            X = wo * cout                        # pooled lanes (= Nc // 2)
            src, dst = pads[li % 2], pads[(li + 1) % 2]
            off = offsets[li]

            # 3x3 conv (pad folded into the banded matrices) on the MXU:
            # one (h, K) @ (K, Nc) dot per kernel row kh, single accumulator.
            acc = jnp.zeros((h, Nc), jnp.float32)
            for kh in range(KH):
                bmat = w_ref[off + kh * K: off + (kh + 1) * K, 0:Nc]
                acc = acc + jnp.dot(
                    src[kh:kh + h, 0:K], bmat,
                    preferred_element_type=jnp.float32,
                    precision=jax.lax.Precision.HIGHEST)

            # ReLU + W-pool: columns were permuted host-side, so the pool is one
            # wide max of the two contiguous lane halves (ReLU after is valid
            # since ReLU is monotone).
            y = jnp.maximum(jnp.maximum(acc[:, 0:X], acc[:, X:2 * X]), 0.0)

            # H-pool: stage y through VMEM, max of even/odd rows (2 stride-2 reads).
            tmp[0:h, 0:X] = y
            yp = jnp.maximum(tmp[pl.ds(0, ho, 2), 0:X],
                             tmp[pl.ds(1, ho, 2), 0:X])

            # Next stage's padded buffer: zero only the 2 border rows, then one
            # contiguous interior store starting at lane 0.
            zr = jnp.zeros((1, X), jnp.float32)
            dst[0:1, 0:X] = zr
            dst[ho + 1:ho + 2, 0:X] = zr
            dst[1:ho + 1, 0:X] = yp

            h, w = ho, wo

        c_last = chans[num_layers]
        o_ref[...] = pads[num_layers % 2][1:h + 1, 0:w * c_last].astype(o_ref.dtype)

    return kernel


def conv_blocks_forward(x_nchw, weights):
    """Forward pass of ConvBlocks (batch_norm=False).  x: (N, C, H, W)."""
    n, c0, h0, w0 = x_nchw.shape
    num_layers = len(weights)
    chans = [c0] + [int(wt.shape[-1]) for wt in weights]
    for i, wt in enumerate(weights):
        assert wt.shape[0] == KH and wt.shape[1] == KW
        assert int(wt.shape[2]) == chans[i]
    assert h0 % (2 ** num_layers) == 0 and w0 % (2 ** num_layers) == 0

    # Host-side weight prep (done once per model in practice): banded matrices
    # with folded W-padding and pool-friendly column permutation, packed into a
    # single contiguous buffer -> one weight DMA.
    weights_np = [np.asarray(jax.device_get(wt), np.float32) for wt in weights]
    packed_np, offsets = _pack_weights(weights_np, w0, chans)
    packed = jnp.asarray(packed_np)

    h_last = h0 >> num_layers
    w_last = w0 >> num_layers
    c_last = chans[-1]

    # Host-side layout: NCHW -> (N, H, W*C) channel-minor lane-dense rows.
    x_rows = jnp.transpose(x_nchw, (0, 2, 3, 1)).reshape(n, h0, w0 * c0)

    # Scratch sizing: ping-pong padded activation buffers + H-pool staging buffer.
    pad_rows = h0 + 2
    pad_lanes = max((w0 >> li) * chans[li] for li in range(num_layers + 1))
    tmp_lanes = max((w0 >> (li + 1)) * chans[li + 1] for li in range(num_layers))

    kernel = _make_kernel(num_layers, h0, w0, tuple(chans), offsets)

    out = pl.pallas_call(
        kernel,
        out_shape=jax.ShapeDtypeStruct((n, h_last, w_last * c_last), x_nchw.dtype),
        grid=(n,),
        in_specs=[
            pl.BlockSpec((None, h0, w0 * c0), lambda i: (i, 0, 0)),
            pl.BlockSpec(packed.shape, lambda i: (0, 0)),   # one resident weight slab
        ],
        out_specs=pl.BlockSpec((None, h_last, w_last * c_last),
                               lambda i: (i, 0, 0)),
        scratch_shapes=[
            pltpu.VMEM((pad_rows, pad_lanes), jnp.float32),
            pltpu.VMEM((pad_rows, pad_lanes), jnp.float32),
            pltpu.VMEM((h0, tmp_lanes), jnp.float32),
        ],
        compiler_params=pltpu.CompilerParams(
            dimension_semantics=("parallel",),   # samples -> v7x's 2 TensorCores
            vmem_limit_bytes=32 * 1024 * 1024,
        ),
    )(x_rows, packed)

    out = out.reshape(n, h_last, w_last, c_last)
    return jnp.transpose(out, (0, 3, 1, 2))          # back to NCHW


def conv_blocks_reference(x_nchw, weights):
    """Pure-JAX reference matching the PyTorch forward (batch_norm=False)."""
    x = x_nchw
    for w in weights:                                 # (KH, KW, Cin, Cout)
        w_oihw = jnp.transpose(w, (3, 2, 0, 1))
        x = jax.lax.conv_general_dilated(
            x, w_oihw, window_strides=(1, 1), padding=((1, 1), (1, 1)),
            dimension_numbers=("NCHW", "OIHW", "NCHW"),
            precision=jax.lax.Precision.HIGHEST)
        x = jnp.maximum(x, 0.0)
        n, c, h, wd = x.shape
        x = x.reshape(n, c, h // 2, 2, wd // 2, 2).max(axis=(3, 5))
    return x


if __name__ == "__main__":
    # Module config: ConvBlocks(in_channels=4, num_filters=8, filter_size=3,
    #                           activation=ReLU, batch_norm=False, filter_org=1)
    # Spatial must be >= 32 so that five 2x2/2 max-pools stay valid.
    in_channels, num_filters, filter_size, filter_org = 4, 8, 3, 1
    N, H, W = 2, 32, 32

    in_ch = [in_channels]
    out_ch = [num_filters]
    for _ in range(4):
        in_ch.append(out_ch[-1])
        out_ch.append(int(filter_org * out_ch[-1]))

    key = jax.random.PRNGKey(0)
    keys = jax.random.split(key, 6)
    weights = tuple(
        jax.random.normal(
            keys[i], (filter_size, filter_size, in_ch[i], out_ch[i]),
            jnp.float32) / jnp.sqrt(float(filter_size * filter_size * in_ch[i]))
        for i in range(5))
    x = jax.random.normal(keys[5], (N, in_channels, H, W), jnp.float32)

    out = conv_blocks_forward(x, weights)
    out = jax.block_until_ready(out)

    ref = conv_blocks_reference(x, weights)
    assert out.shape == (N, out_ch[-1], H // 32, W // 32), out.shape
    assert out.shape == ref.shape
    max_err = float(jnp.max(jnp.abs(out - ref)))
    assert jnp.allclose(out, ref, rtol=2e-3, atol=2e-3), max_err

    print("KERNEL_OK")
</pallas_src>

<mosaic_0001>
module attributes {stable_mosaic.version = 11 : i64} {
  func.func @kernel(%arg0: i32, %arg1: memref<1x32x128xf32, #tpu.memory_space<vmem>>, %arg2: memref<1104x256xf32, #tpu.memory_space<vmem>>, %arg3: memref<1x1x8xf32, #tpu.memory_space<vmem>>, %arg4: memref<34x128xf32, #tpu.memory_space<vmem>>, %arg5: memref<34x128xf32, #tpu.memory_space<vmem>>, %arg6: memref<32x128xf32, #tpu.memory_space<vmem>>) attributes {dimension_semantics = [#tpu.dimension_semantics<parallel>], iteration_bounds = array<i64: 2>, scalar_prefetch = 0 : i64, scratch_operands = 3 : i64, tpu.core_type = #tpu.core_type<tc>, window_params = [{transform_indices = @transform_0, window_bounds = array<i64: 1, 32, 128>}, {pipeline_mode = #tpu.pipeline_mode<synchronous>, transform_indices = @transform_1, window_bounds = array<i64: 1104, 256>}, {transform_indices = @transform_2, window_bounds = array<i64: 1, 1, 8>}]} {
    %cst = arith.constant 0.000000e+00 : f32
    %0 = vector.broadcast %cst : f32 to vector<1x128xf32>
    %c0 = arith.constant 0 : index
    %c0_0 = arith.constant 0 : index
    %1 = vector.load %arg4[%c0, %c0_0] : memref<34x128xf32, #tpu.memory_space<vmem>>, vector<1x128xf32>
    tpu.vector_store %arg4[%c0, %c0_0], %0 {strides = array<i32>} : memref<34x128xf32, #tpu.memory_space<vmem>>, vector<1x128xf32>,
    %c33 = arith.constant 33 : index
    %c0_1 = arith.constant 0 : index
    %2 = vector.load %arg4[%c33, %c0_1] : memref<34x128xf32, #tpu.memory_space<vmem>>, vector<1x128xf32>
    tpu.vector_store %arg4[%c33, %c0_1], %0 {strides = array<i32>} : memref<34x128xf32, #tpu.memory_space<vmem>>, vector<1x128xf32>,
    %c0_2 = arith.constant 0 : index
    %c0_3 = arith.constant 0 : index
    %c0_4 = arith.constant 0 : index
    %3 = vector.load %arg1[%c0_2, %c0_3, %c0_4] : memref<1x32x128xf32, #tpu.memory_space<vmem>>, vector<1x32x128xf32>
    %4 = vector.shape_cast %3 : vector<1x32x128xf32> to vector<32x128xf32>
    %c1 = arith.constant 1 : index
    %c0_5 = arith.constant 0 : index
    %5 = vector.load %arg4[%c1, %c0_5] : memref<34x128xf32, #tpu.memory_space<vmem>>, vector<32x128xf32>
    tpu.vector_store %arg4[%c1, %c0_5], %4 {strides = array<i32>} : memref<34x128xf32, #tpu.memory_space<vmem>>, vector<32x128xf32>,
    %cst_6 = arith.constant 0.000000e+00 : f32
    %6 = vector.broadcast %cst_6 : f32 to vector<32x256xf32>
    %c0_7 = arith.constant 0 : index
    %c0_8 = arith.constant 0 : index
    %7 = vector.load %arg2[%c0_7, %c0_8] : memref<1104x256xf32, #tpu.memory_space<vmem>>, vector<128x256xf32>
    %c0_9 = arith.constant 0 : index
    %c0_10 = arith.constant 0 : index
    %8 = vector.load %arg4[%c0_9, %c0_10] : memref<34x128xf32, #tpu.memory_space<vmem>>, vector<32x128xf32>
    %cst_11 = arith.constant dense<0.000000e+00> : vector<32x256xf32>
    %9 = tpu.matmul %8, %7, %cst_11 {dimension_numbers = #tpu.dot_dimension_numbers<[1], [0], [0], [1], [0, 0, 1, 1], [], []>, precision = #tpu.contract_precision<fp32>} : vector<32x128xf32>, vector<128x256xf32>, vector<32x256xf32> -> vector<32x256xf32>
    %10 = arith.addf %6, %9 : vector<32x256xf32>
    %c128 = arith.constant 128 : index
    %c0_12 = arith.constant 0 : index
    %11 = vector.load %arg2[%c128, %c0_12] : memref<1104x256xf32, #tpu.memory_space<vmem>>, vector<128x256xf32>
    %c1_13 = arith.constant 1 : index
    %c0_14 = arith.constant 0 : index
    %12 = vector.load %arg4[%c1_13, %c0_14] : memref<34x128xf32, #tpu.memory_space<vmem>>, vector<32x128xf32>
    %cst_15 = arith.constant dense<0.000000e+00> : vector<32x256xf32>
    %13 = tpu.matmul %12, %11, %cst_15 {dimension_numbers = #tpu.dot_dimension_numbers<[1], [0], [0], [1], [0, 0, 1, 1], [], []>, precision = #tpu.contract_precision<fp32>} : vector<32x128xf32>, vector<128x256xf32>, vector<32x256xf32> -> vector<32x256xf32>
    %14 = arith.addf %10, %13 : vector<32x256xf32>
    %c256 = arith.constant 256 : index
    %c0_16 = arith.constant 0 : index
    %15 = vector.load %arg2[%c256, %c0_16] : memref<1104x256xf32, #tpu.memory_space<vmem>>, vector<128x256xf32>
    %c2 = arith.constant 2 : index
    %c0_17 = arith.constant 0 : index
    %16 = vector.load %arg4[%c2, %c0_17] : memref<34x128xf32, #tpu.memory_space<vmem>>, vector<32x128xf32>
    %cst_18 = arith.constant dense<0.000000e+00> : vector<32x256xf32>
    %17 = tpu.matmul %16, %15, %cst_18 {dimension_numbers = #tpu.dot_dimension_numbers<[1], [0], [0], [1], [0, 0, 1, 1], [], []>, precision = #tpu.contract_precision<fp32>} : vector<32x128xf32>, vector<128x256xf32>, vector<32x256xf32> -> vector<32x256xf32>
    %18 = arith.addf %14, %17 : vector<32x256xf32>
    %19 = vector.extract_strided_slice %18 {offsets = [0, 0], sizes = [32, 128], strides = [1, 1]} : vector<32x256xf32> to vector<32x128xf32>
    %20 = vector.extract_strided_slice %18 {offsets = [0, 128], sizes = [32, 128], strides = [1, 1]} : vector<32x256xf32> to vector<32x128xf32>
    %21 = arith.maximumf %19, %20 : vector<32x128xf32>
    %cst_19 = arith.constant 0.000000e+00 : f32
    %22 = vector.broadcast %cst_19 : f32 to vector<32x128xf32>
    %23 = arith.maximumf %21, %22 : vector<32x128xf32>
    %c0_20 = arith.constant 0 : index
    %c0_21 = arith.constant 0 : index
    %24 = vector.load %arg6[%c0_20, %c0_21] : memref<32x128xf32, #tpu.memory_space<vmem>>, vector<32x128xf32>
    tpu.vector_store %arg6[%c0_20, %c0_21], %23 {strides = array<i32>} : memref<32x128xf32, #tpu.memory_space<vmem>>, vector<32x128xf32>,
    %c0_22 = arith.constant 0 : index
    %c0_23 = arith.constant 0 : index
    %25 = tpu.strided_load %arg6[%c0_22, %c0_23] {strides = array<i32: 2, 1>} : memref<32x128xf32, #tpu.memory_space<vmem>>, vector<16x128xf32>
    %c1_24 = arith.constant 1 : index
    %c0_25 = arith.constant 0 : index
    %26 = tpu.strided_load %arg6[%c1_24, %c0_25] {strides = array<i32: 2, 1>} : memref<32x128xf32, #tpu.memory_space<vmem>>, vector<16x128xf32>
    %27 = arith.maximumf %25, %26 : vector<16x128xf32>
    %cst_26 = arith.constant 0.000000e+00 : f32
    %28 = vector.broadcast %cst_26 : f32 to vector<1x128xf32>
    %c0_27 = arith.constant 0 : index
    %c0_28 = arith.constant 0 : index
    %29 = vector.load %arg5[%c0_27, %c0_28] : memref<34x128xf32, #tpu.memory_space<vmem>>, vector<1x128xf32>
    tpu.vector_store %arg5[%c0_27, %c0_28], %28 {strides = array<i32>} : memref<34x128xf32, #tpu.memory_space<vmem>>, vector<1x128xf32>,
    %c17 = arith.constant 17 : index
    %c0_29 = arith.constant 0 : index
    %30 = vector.load %arg5[%c17, %c0_29] : memref<34x128xf32, #tpu.memory_space<vmem>>, vector<1x128xf32>
    tpu.vector_store %arg5[%c17, %c0_29], %28 {strides = array<i32>} : memref<34x128xf32, #tpu.memory_space<vmem>>, vector<1x128xf32>,
    %c1_30 = arith.constant 1 : index
    %c0_31 = arith.constant 0 : index
    %31 = vector.load %arg5[%c1_30, %c0_31] : memref<34x128xf32, #tpu.memory_space<vmem>>, vector<16x128xf32>
    tpu.vector_store %arg5[%c1_30, %c0_31], %27 {strides = array<i32>} : memref<34x128xf32, #tpu.memory_space<vmem>>, vector<16x128xf32>,
    %cst_32 = arith.constant 0.000000e+00 : f32
    %32 = vector.broadcast %cst_32 : f32 to vector<16x128xf32>
    %c384 = arith.constant 384 : index
    %c0_33 = arith.constant 0 : index
    %33 = vector.load %arg2[%c384, %c0_33] : memref<1104x256xf32, #tpu.memory_space<vmem>>, vector<128x128xf32>
    %c0_34 = arith.constant 0 : index
    %c0_35 = arith.constant 0 : index
    %34 = vector.load %arg5[%c0_34, %c0_35] : memref<34x128xf32, #tpu.memory_space<vmem>>, vector<16x128xf32>
    %cst_36 = arith.constant dense<0.000000e+00> : vector<16x128xf32>
    %35 = tpu.matmul %34, %33, %cst_36 {dimension_numbers = #tpu.dot_dimension_numbers<[1], [0], [0], [1], [0, 0, 1, 1], [], []>, precision = #tpu.contract_precision<fp32>} : vector<16x128xf32>, vector<128x128xf32>, vector<16x128xf32> -> vector<16x128xf32>
    %36 = arith.addf %32, %35 : vector<16x128xf32>
    %c512 = arith.constant 512 : index
    %c0_37 = arith.constant 0 : index
    %37 = vector.load %arg2[%c512, %c0_37] : memref<1104x256xf32, #tpu.memory_space<vmem>>, vector<128x128xf32>
    %c1_38 = arith.constant 1 : index
    %c0_39 = arith.constant 0 : index
    %38 = vector.load %arg5[%c1_38, %c0_39] : memref<34x128xf32, #tpu.memory_space<vmem>>, vector<16x128xf32>
    %cst_40 = arith.constant dense<0.000000e+00> : vector<16x128xf32>
    %39 = tpu.matmul %38, %37, %cst_40 {dimension_numbers = #tpu.dot_dimension_numbers<[1], [0], [0], [1], [0, 0, 1, 1], [], []>, precision = #tpu.contract_precision<fp32>} : vector<16x128xf32>, vector<128x128xf32>, vector<16x128xf32> -> vector<16x128xf32>
    %40 = arith.addf %36, %39 : vector<16x128xf32>
    %c640 = arith.constant 640 : index
    %c0_41 = arith.constant 0 : index
    %41 = vector.load %arg2[%c640, %c0_41] : memref<1104x256xf32, #tpu.memory_space<vmem>>, vector<128x128xf32>
    %c2_42 = arith.constant 2 : index
    %c0_43 = arith.constant 0 : index
    %42 = vector.load %arg5[%c2_42, %c0_43] : memref<34x128xf32, #tpu.memory_space<vmem>>, vector<16x128xf32>
    %cst_44 = arith.constant dense<0.000000e+00> : vector<16x128xf32>
    %43 = tpu.matmul %42, %41, %cst_44 {dimension_numbers = #tpu.dot_dimension_numbers<[1], [0], [0], [1], [0, 0, 1, 1], [], []>, precision = #tpu.contract_precision<fp32>} : vector<16x128xf32>, vector<128x128xf32>, vector<16x128xf32> -> vector<16x128xf32>
    %44 = arith.addf %40, %43 : vector<16x128xf32>
    %45 = vector.extract_strided_slice %44 {offsets = [0, 0], sizes = [16, 64], strides = [1, 1]} : vector<16x128xf32> to vector<16x64xf32>
    %46 = vector.extract_strided_slice %44 {offsets = [0, 64], sizes = [16, 64], strides = [1, 1]} : vector<16x128xf32> to vector<16x64xf32>
    %47 = arith.maximumf %45, %46 : vector<16x64xf32>
    %cst_45 = arith.constant 0.000000e+00 : f32
    %48 = vector.broadcast %cst_45 : f32 to vector<16x64xf32>
    %49 = arith.maximumf %47, %48 : vector<16x64xf32>
    %c0_46 = arith.constant 0 : index
    %c0_47 = arith.constant 0 : index
    %50 = vector.load %arg6[%c0_46, %c0_47] : memref<32x128xf32, #tpu.memory_space<vmem>>, vector<16x64xf32>
    tpu.vector_store %arg6[%c0_46, %c0_47], %49 {strides = array<i32>} : memref<32x128xf32, #tpu.memory_space<vmem>>, vector<16x64xf32>,
    %c0_48 = arith.constant 0 : index
    %c0_49 = arith.constant 0 : index
    %51 = tpu.strided_load %arg6[%c0_48, %c0_49] {strides = array<i32: 2, 1>} : memref<32x128xf32, #tpu.memory_space<vmem>>, vector<8x64xf32>
    %c1_50 = arith.constant 1 : index
    %c0_51 = arith.constant 0 : index
    %52 = tpu.strided_load %arg6[%c1_50, %c0_51] {strides = array<i32: 2, 1>} : memref<32x128xf32, #tpu.memory_space<vmem>>, vector<8x64xf32>
    %53 = arith.maximumf %51, %52 : vector<8x64xf32>
    %cst_52 = arith.constant 0.000000e+00 : f32
    %54 = vector.broadcast %cst_52 : f32 to vector<1x64xf32>
    %c0_53 = arith.constant 0 : index
    %c0_54 = arith.constant 0 : index
    %55 = vector.load %arg4[%c0_53, %c0_54] : memref<34x128xf32, #tpu.memory_space<vmem>>, vector<1x64xf32>
    tpu.vector_store %arg4[%c0_53, %c0_54], %54 {strides = array<i32>} : memref<34x128xf32, #tpu.memory_space<vmem>>, vector<1x64xf32>,
    %c9 = arith.constant 9 : index
    %c0_55 = arith.constant 0 : index
    %56 = vector.load %arg4[%c9, %c0_55] : memref<34x128xf32, #tpu.memory_space<vmem>>, vector<1x64xf32>
    tpu.vector_store %arg4[%c9, %c0_55], %54 {strides = array<i32>} : memref<34x128xf32, #tpu.memory_space<vmem>>, vector<1x64xf32>,
    %c1_56 = arith.constant 1 : index
    %c0_57 = arith.constant 0 : index
    %57 = vector.load %arg4[%c1_56, %c0_57] : memref<34x128xf32, #tpu.memory_space<vmem>>, vector<8x64xf32>
    tpu.vector_store %arg4[%c1_56, %c0_57], %53 {strides = array<i32>} : memref<34x128xf32, #tpu.memory_space<vmem>>, vector<8x64xf32>,
    %cst_58 = arith.constant 0.000000e+00 : f32
    %58 = vector.broadcast %cst_58 : f32 to vector<8x64xf32>
    %c768 = arith.constant 768 : index
    %c0_59 = arith.constant 0 : index
    %59 = vector.load %arg2[%c768, %c0_59] : memref<1104x256xf32, #tpu.memory_space<vmem>>, vector<64x64xf32>
    %c0_60 = arith.constant 0 : index
    %c0_61 = arith.constant 0 : index
    %60 = vector.load %arg4[%c0_60, %c0_61] : memref<34x128xf32, #tpu.memory_space<vmem>>, vector<8x64xf32>
    %cst_62 = arith.constant dense<0.000000e+00> : vector<8x64xf32>
    %61 = tpu.matmul %60, %59, %cst_62 {dimension_numbers = #tpu.dot_dimension_numbers<[1], [0], [0], [1], [0, 0, 1, 1], [], []>, precision = #tpu.contract_precision<fp32>} : vector<8x64xf32>, vector<64x64xf32>, vector<8x64xf32> -> vector<8x64xf32>
    %62 = arith.addf %58, %61 : vector<8x64xf32>
    %c832 = arith.constant 832 : index
    %c0_63 = arith.constant 0 : index
    %63 = vector.load %arg2[%c832, %c0_63] : memref<1104x256xf32, #tpu.memory_space<vmem>>, vector<64x64xf32>
    %c1_64 = arith.constant 1 : index
    %c0_65 = arith.constant 0 : index
    %64 = vector.load %arg4[%c1_64, %c0_65] : memref<34x128xf32, #tpu.memory_space<vmem>>, vector<8x64xf32>
    %cst_66 = arith.constant dense<0.000000e+00> : vector<8x64xf32>
    %65 = tpu.matmul %64, %63, %cst_66 {dimension_numbers = #tpu.dot_dimension_numbers<[1], [0], [0], [1], [0, 0, 1, 1], [], []>, precision = #tpu.contract_precision<fp32>} : vector<8x64xf32>, vector<64x64xf32>, vector<8x64xf32> -> vector<8x64xf32>
    %66 = arith.addf %62, %65 : vector<8x64xf32>
    %c896 = arith.constant 896 : index
    %c0_67 = arith.constant 0 : index
    %67 = vector.load %arg2[%c896, %c0_67] : memref<1104x256xf32, #tpu.memory_space<vmem>>, vector<64x64xf32>
    %c2_68 = arith.constant 2 : index
    %c0_69 = arith.constant 0 : index
    %68 = vector.load %arg4[%c2_68, %c0_69] : memref<34x128xf32, #tpu.memory_space<vmem>>, vector<8x64xf32>
    %cst_70 = arith.constant dense<0.000000e+00> : vector<8x64xf32>
    %69 = tpu.matmul %68, %67, %cst_70 {dimension_numbers = #tpu.dot_dimension_numbers<[1], [0], [0], [1], [0, 0, 1, 1], [], []>, precision = #tpu.contract_precision<fp32>} : vector<8x64xf32>, vector<64x64xf32>, vector<8x64xf32> -> vector<8x64xf32>
    %70 = arith.addf %66, %69 : vector<8x64xf32>
    %71 = vector.extract_strided_slice %70 {offsets = [0, 0], sizes = [8, 32], strides = [1, 1]} : vector<8x64xf32> to vector<8x32xf32>
    %72 = vector.extract_strided_slice %70 {offsets = [0, 32], sizes = [8, 32], strides = [1, 1]} : vector<8x64xf32> to vector<8x32xf32>
    %73 = arith.maximumf %71, %72 : vector<8x32xf32>
    %cst_71 = arith.constant 0.000000e+00 : f32
    %74 = vector.broadcast %cst_71 : f32 to vector<8x32xf32>
    %75 = arith.maximumf %73, %74 : vector<8x32xf32>
    %c0_72 = arith.constant 0 : index
    %c0_73 = arith.constant 0 : index
    %76 = vector.load %arg6[%c0_72, %c0_73] : memref<32x128xf32, #tpu.memory_space<vmem>>, vector<8x32xf32>
    tpu.vector_store %arg6[%c0_72, %c0_73], %75 {strides = array<i32>} : memref<32x128xf32, #tpu.memory_space<vmem>>, vector<8x32xf32>,
    %c0_74 = arith.constant 0 : index
    %c0_75 = arith.constant 0 : index
    %77 = tpu.strided_load %arg6[%c0_74, %c0_75] {strides = array<i32: 2, 1>} : memref<32x128xf32, #tpu.memory_space<vmem>>, vector<4x32xf32>
    %c1_76 = arith.constant 1 : index
    %c0_77 = arith.constant 0 : index
    %78 = tpu.strided_load %arg6[%c1_76, %c0_77] {strides = array<i32: 2, 1>} : memref<32x128xf32, #tpu.memory_space<vmem>>, vector<4x32xf32>
    %79 = arith.maximumf %77, %78 : vector<4x32xf32>
    %cst_78 = arith.constant 0.000000e+00 : f32
    %80 = vector.broadcast %cst_78 : f32 to vector<1x32xf32>
    %c0_79 = arith.constant 0 : index
    %c0_80 = arith.constant 0 : index
    %81 = vector.load %arg5[%c0_79, %c0_80] : memref<34x128xf32, #tpu.memory_space<vmem>>, vector<1x32xf32>
    tpu.vector_store %arg5[%c0_79, %c0_80], %80 {strides = array<i32>} : memref<34x128xf32, #tpu.memory_space<vmem>>, vector<1x32xf32>,
    %c5 = arith.constant 5 : index
    %c0_81 = arith.constant 0 : index
    %82 = vector.load %arg5[%c5, %c0_81] : memref<34x128xf32, #tpu.memory_space<vmem>>, vector<1x32xf32>
    tpu.vector_store %arg5[%c5, %c0_81], %80 {strides = array<i32>} : memref<34x128xf32, #tpu.memory_space<vmem>>, vector<1x32xf32>,
    %c1_82 = arith.constant 1 : index
    %c0_83 = arith.constant 0 : index
    %83 = vector.load %arg5[%c1_82, %c0_83] : memref<34x128xf32, #tpu.memory_space<vmem>>, vector<4x32xf32>
    tpu.vector_store %arg5[%c1_82, %c0_83], %79 {strides = array<i32>} : memref<34x128xf32, #tpu.memory_space<vmem>>, vector<4x32xf32>,
    %cst_84 = arith.constant 0.000000e+00 : f32
    %84 = vector.broadcast %cst_84 : f32 to vector<4x32xf32>
    %c960 = arith.constant 960 : index
    %c0_85 = arith.constant 0 : index
    %85 = vector.load %arg2[%c960, %c0_85] : memref<1104x256xf32, #tpu.memory_space<vmem>>, vector<32x32xf32>
    %c0_86 = arith.constant 0 : index
    %c0_87 = arith.constant 0 : index
    %86 = vector.load %arg5[%c0_86, %c0_87] : memref<34x128xf32, #tpu.memory_space<vmem>>, vector<4x32xf32>
    %cst_88 = arith.constant dense<0.000000e+00> : vector<4x32xf32>
    %87 = tpu.matmul %86, %85, %cst_88 {dimension_numbers = #tpu.dot_dimension_numbers<[1], [0], [0], [1], [0, 0, 1, 1], [], []>, precision = #tpu.contract_precision<fp32>} : vector<4x32xf32>, vector<32x32xf32>, vector<4x32xf32> -> vector<4x32xf32>
    %88 = arith.addf %84, %87 : vector<4x32xf32>
    %c992 = arith.constant 992 : index
    %c0_89 = arith.constant 0 : index
    %89 = vector.load %arg2[%c992, %c0_89] : memref<1104x256xf32, #tpu.memory_space<vmem>>, vector<32x32xf32>
    %c1_90 = arith.constant 1 : index
    %c0_91 = arith.constant 0 : index
    %90 = vector.load %arg5[%c1_90, %c0_91] : memref<34x128xf32, #tpu.memory_space<vmem>>, vector<4x32xf32>
    %cst_92 = arith.constant dense<0.000000e+00> : vector<4x32xf32>
    %91 = tpu.matmul %90, %89, %cst_92 {dimension_numbers = #tpu.dot_dimension_numbers<[1], [0], [0], [1], [0, 0, 1, 1], [], []>, precision = #tpu.contract_precision<fp32>} : vector<4x32xf32>, vector<32x32xf32>, vector<4x32xf32> -> vector<4x32xf32>
    %92 = arith.addf %88, %91 : vector<4x32xf32>
    %c1024 = arith.constant 1024 : index
    %c0_93 = arith.constant 0 : index
    %93 = vector.load %arg2[%c1024, %c0_93] : memref<1104x256xf32, #tpu.memory_space<vmem>>, vector<32x32xf32>
    %c2_94 = arith.constant 2 : index
    %c0_95 = arith.constant 0 : index
    %94 = vector.load %arg5[%c2_94, %c0_95] : memref<34x128xf32, #tpu.memory_space<vmem>>, vector<4x32xf32>
    %cst_96 = arith.constant dense<0.000000e+00> : vector<4x32xf32>
    %95 = tpu.matmul %94, %93, %cst_96 {dimension_numbers = #tpu.dot_dimension_numbers<[1], [0], [0], [1], [0, 0, 1, 1], [], []>, precision = #tpu.contract_precision<fp32>} : vector<4x32xf32>, vector<32x32xf32>, vector<4x32xf32> -> vector<4x32xf32>
    %96 = arith.addf %92, %95 : vector<4x32xf32>
    %97 = vector.extract_strided_slice %96 {offsets = [0, 0], sizes = [4, 16], strides = [1, 1]} : vector<4x32xf32> to vector<4x16xf32>
    %98 = vector.extract_strided_slice %96 {offsets = [0, 16], sizes = [4, 16], strides = [1, 1]} : vector<4x32xf32> to vector<4x16xf32>
    %99 = arith.maximumf %97, %98 : vector<4x16xf32>
    %cst_97 = arith.constant 0.000000e+00 : f32
    %100 = vector.broadcast %cst_97 : f32 to vector<4x16xf32>
    %101 = arith.maximumf %99, %100 : vector<4x16xf32>
    %c0_98 = arith.constant 0 : index
    %c0_99 = arith.constant 0 : index
    %102 = vector.load %arg6[%c0_98, %c0_99] : memref<32x128xf32, #tpu.memory_space<vmem>>, vector<4x16xf32>
    tpu.vector_store %arg6[%c0_98, %c0_99], %101 {strides = array<i32>} : memref<32x128xf32, #tpu.memory_space<vmem>>, vector<4x16xf32>,
    %c0_100 = arith.constant 0 : index
    %c0_101 = arith.constant 0 : index
    %103 = tpu.strided_load %arg6[%c0_100, %c0_101] {strides = array<i32: 2, 1>} : memref<32x128xf32, #tpu.memory_space<vmem>>, vector<2x16xf32>
    %c1_102 = arith.constant 1 : index
    %c0_103 = arith.constant 0 : index
    %104 = tpu.strided_load %arg6[%c1_102, %c0_103] {strides = array<i32: 2, 1>} : memref<32x128xf32, #tpu.memory_space<vmem>>, vector<2x16xf32>
    %105 = arith.maximumf %103, %104 : vector<2x16xf32>
    %cst_104 = arith.constant 0.000000e+00 : f32
    %106 = vector.broadcast %cst_104 : f32 to vector<1x16xf32>
    %c0_105 = arith.constant 0 : index
    %c0_106 = arith.constant 0 : index
    %107 = vector.load %arg4[%c0_105, %c0_106] : memref<34x128xf32, #tpu.memory_space<vmem>>, vector<1x16xf32>
    tpu.vector_store %arg4[%c0_105, %c0_106], %106 {strides = array<i32>} : memref<34x128xf32, #tpu.memory_space<vmem>>, vector<1x16xf32>,
    %c3 = arith.constant 3 : index
    %c0_107 = arith.constant 0 : index
    %108 = vector.load %arg4[%c3, %c0_107] : memref<34x128xf32, #tpu.memory_space<vmem>>, vector<1x16xf32>
    tpu.vector_store %arg4[%c3, %c0_107], %106 {strides = array<i32>} : memref<34x128xf32, #tpu.memory_space<vmem>>, vector<1x16xf32>,
    %c1_108 = arith.constant 1 : index
    %c0_109 = arith.constant 0 : index
    %109 = vector.load %arg4[%c1_108, %c0_109] : memref<34x128xf32, #tpu.memory_space<vmem>>, vector<2x16xf32>
    tpu.vector_store %arg4[%c1_108, %c0_109], %105 {strides = array<i32>} : memref<34x128xf32, #tpu.memory_space<vmem>>, vector<2x16xf32>,
    %cst_110 = arith.constant 0.000000e+00 : f32
    %110 = vector.broadcast %cst_110 : f32 to vector<2x16xf32>
    %c1056 = arith.constant 1056 : index
    %c0_111 = arith.constant 0 : index
    %111 = vector.load %arg2[%c1056, %c0_111] : memref<1104x256xf32, #tpu.memory_space<vmem>>, vector<16x16xf32>
    %c0_112 = arith.constant 0 : index
    %c0_113 = arith.constant 0 : index
    %112 = vector.load %arg4[%c0_112, %c0_113] : memref<34x128xf32, #tpu.memory_space<vmem>>, vector<2x16xf32>
    %cst_114 = arith.constant dense<0.000000e+00> : vector<2x16xf32>
    %113 = tpu.matmul %112, %111, %cst_114 {dimension_numbers = #tpu.dot_dimension_numbers<[1], [0], [0], [1], [0, 0, 1, 1], [], []>, precision = #tpu.contract_precision<fp32>} : vector<2x16xf32>, vector<16x16xf32>, vector<2x16xf32> -> vector<2x16xf32>
    %114 = arith.addf %110, %113 : vector<2x16xf32>
    %c1072 = arith.constant 1072 : index
    %c0_115 = arith.constant 0 : index
    %115 = vector.load %arg2[%c1072, %c0_115] : memref<1104x256xf32, #tpu.memory_space<vmem>>, vector<16x16xf32>
    %c1_116 = arith.constant 1 : index
    %c0_117 = arith.constant 0 : index
    %116 = vector.load %arg4[%c1_116, %c0_117] : memref<34x128xf32, #tpu.memory_space<vmem>>, vector<2x16xf32>
    %cst_118 = arith.constant dense<0.000000e+00> : vector<2x16xf32>
    %117 = tpu.matmul %116, %115, %cst_118 {dimension_numbers = #tpu.dot_dimension_numbers<[1], [0], [0], [1], [0, 0, 1, 1], [], []>, precision = #tpu.contract_precision<fp32>} : vector<2x16xf32>, vector<16x16xf32>, vector<2x16xf32> -> vector<2x16xf32>
    %118 = arith.addf %114, %117 : vector<2x16xf32>
    %c1088 = arith.constant 1088 : index
    %c0_119 = arith.constant 0 : index
    %119 = vector.load %arg2[%c1088, %c0_119] : memref<1104x256xf32, #tpu.memory_space<vmem>>, vector<16x16xf32>
    %c2_120 = arith.constant 2 : index
    %c0_121 = arith.constant 0 : index
    %120 = vector.load %arg4[%c2_120, %c0_121] : memref<34x128xf32, #tpu.memory_space<vmem>>, vector<2x16xf32>
    %cst_122 = arith.constant dense<0.000000e+00> : vector<2x16xf32>
    %121 = tpu.matmul %120, %119, %cst_122 {dimension_numbers = #tpu.dot_dimension_numbers<[1], [0], [0], [1], [0, 0, 1, 1], [], []>, precision = #tpu.contract_precision<fp32>} : vector<2x16xf32>, vector<16x16xf32>, vector<2x16xf32> -> vector<2x16xf32>
    %122 = arith.addf %118, %121 : vector<2x16xf32>
    %123 = vector.extract_strided_slice %122 {offsets = [0, 0], sizes = [2, 8], strides = [1, 1]} : vector<2x16xf32> to vector<2x8xf32>
    %124 = vector.extract_strided_slice %122 {offsets = [0, 8], sizes = [2, 8], strides = [1, 1]} : vector<2x16xf32> to vector<2x8xf32>
    %125 = arith.maximumf %123, %124 : vector<2x8xf32>
    %cst_123 = arith.constant 0.000000e+00 : f32
    %126 = vector.broadcast %cst_123 : f32 to vector<2x8xf32>
    %127 = arith.maximumf %125, %126 : vector<2x8xf32>
    %c0_124 = arith.constant 0 : index
    %c0_125 = arith.constant 0 : index
    %128 = vector.load %arg6[%c0_124, %c0_125] : memref<32x128xf32, #tpu.memory_space<vmem>>, vector<2x8xf32>
    tpu.vector_store %arg6[%c0_124, %c0_125], %127 {strides = array<i32>} : memref<32x128xf32, #tpu.memory_space<vmem>>, vector<2x8xf32>,
    %c0_126 = arith.constant 0 : index
    %c0_127 = arith.constant 0 : index
    %129 = tpu.strided_load %arg6[%c0_126, %c0_127] {strides = array<i32: 2, 1>} : memref<32x128xf32, #tpu.memory_space<vmem>>, vector<1x8xf32>
    %c1_128 = arith.constant 1 : index
    %c0_129 = arith.constant 0 : index
    %130 = tpu.strided_load %arg6[%c1_128, %c0_129] {strides = array<i32: 2, 1>} : memref<32x128xf32, #tpu.memory_space<vmem>>, vector<1x8xf32>
    %131 = arith.maximumf %129, %130 : vector<1x8xf32>
    %cst_130 = arith.constant 0.000000e+00 : f32
    %132 = vector.broadcast %cst_130 : f32 to vector<1x8xf32>
    %c0_131 = arith.constant 0 : index
    %c0_132 = arith.constant 0 : index
    %133 = vector.load %arg5[%c0_131, %c0_132] : memref<34x128xf32, #tpu.memory_space<vmem>>, vector<1x8xf32>
    tpu.vector_store %arg5[%c0_131, %c0_132], %132 {strides = array<i32>} : memref<34x128xf32, #tpu.memory_space<vmem>>, vector<1x8xf32>,
    %c2_133 = arith.constant 2 : index
    %c0_134 = arith.constant 0 : index
    %134 = vector.load %arg5[%c2_133, %c0_134] : memref<34x128xf32, #tpu.memory_space<vmem>>, vector<1x8xf32>
    tpu.vector_store %arg5[%c2_133, %c0_134], %132 {strides = array<i32>} : memref<34x128xf32, #tpu.memory_space<vmem>>, vector<1x8xf32>,
    %c1_135 = arith.constant 1 : index
    %c0_136 = arith.constant 0 : index
    %135 = vector.load %arg5[%c1_135, %c0_136] : memref<34x128xf32, #tpu.memory_space<vmem>>, vector<1x8xf32>
    tpu.vector_store %arg5[%c1_135, %c0_136], %131 {strides = array<i32>} : memref<34x128xf32, #tpu.memory_space<vmem>>, vector<1x8xf32>,
    %c1_137 = arith.constant 1 : index
    %c0_138 = arith.constant 0 : index
    %136 = vector.load %arg5[%c1_137, %c0_138] : memref<34x128xf32, #tpu.memory_space<vmem>>, vector<1x8xf32>
    %c0_139 = arith.constant 0 : index
    %c0_140 = arith.constant 0 : index
    %c0_141 = arith.constant 0 : index
    %137 = vector.load %arg3[%c0_139, %c0_140, %c0_141] : memref<1x1x8xf32, #tpu.memory_space<vmem>>, vector<1x1x8xf32>
    %138 = vector.shape_cast %137 : vector<1x1x8xf32> to vector<1x8xf32>
    %139 = vector.shape_cast %136 : vector<1x8xf32> to vector<1x1x8xf32>
    tpu.vector_store %arg3[%c0_139, %c0_140, %c0_141], %139 {strides = array<i32>} : memref<1x1x8xf32, #tpu.memory_space<vmem>>, vector<1x1x8xf32>,
    return
  }
  func.func @transform_0(%arg0: i32) -> (i32, i32, i32) {
    %c0_i32 = arith.constant 0 : i32
    %c0_i32_0 = arith.constant 0 : i32
    %c0_i32_1 = arith.constant 0 : i32
    return %arg0, %c0_i32, %c0_i32_0 : i32, i32, i32
  }
  func.func @transform_1(%arg0: i32) -> (i32, i32) {
    %c0_i32 = arith.constant 0 : i32
    %c0_i32_0 = arith.constant 0 : i32
    %c0_i32_1 = arith.constant 0 : i32
    return %c0_i32, %c0_i32_0 : i32, i32
  }
  func.func @transform_2(%arg0: i32) -> (i32, i32, i32) {
    %c0_i32 = arith.constant 0 : i32
    %c0_i32_0 = arith.constant 0 : i32
    %c0_i32_1 = arith.constant 0 : i32
    return %arg0, %c0_i32, %c0_i32_0 : i32, i32, i32
  }
}

</mosaic_0001>

<bundles_post_ra>
// kernel: tpu_custom_call.1
= control target key start
LH: loop header
LB: loop body
LE: loop exit
PB: predicated region body
PF: predicated region fallthrough
CT: control target
= control target key end

     0   :  { %7 = vsyncpa [#allocation6], 0  ;;  %s17505_s0 = inlined_call_operand.hbm [shape: f32[2,32,128], index: 0, kind: input, shape index: {}]   ;;  %s17506_s1 = inlined_call_operand.hbm [shape: f32[1104,256], index: 1, kind: input, shape index: {}]   ;;  %s17507_s2 = inlined_call_operand.hbm [shape: f32[2,1,8], index: 2, kind: output, shape index: {}]  }
   0x1   :  { %9 = vsyncpa [#allocation6 + $0x1], 0 }
   0x2   :  { %10 = vsyncpa [#allocation9], 0 }
   0x3   :  { %11 = vsyncpa [#allocation7], 0 }
   0x4   :  { %13 = vsyncpa [#allocation7 + $0x1], 0  ;;  %s14095_s9 = smov 0   ;;  %s14097_s10 = smov 0  }
   0x5   :  { %s14099_s11 = smov 0   ;;  %s14101_s12 = smov 0  }
   0x6 LB: > { %s14116_s13 = sadd.s32 4294967295, %s14064_s12   ;;  %s10126_s14 = sadd.s32 4294967294, %s14064_s12   ;;  %s14064_s12 = sphi %s14101_s12, %s18094_s12   ;;  %s14060_s11 = sphi %s14099_s11, %s18093_s11   ;;  %s14056_s10 = sphi %s14097_s10, %s18092_s10   ;;  %s14052_s9 = sphi %s14095_s9, %s18091_s9  }
   0x7   : > { %p39_p0 = scmp.ne.s32.totalorder %s14056_s10, %s14052_s9  ;;  %p17508_p1 = scmp.eq.s32.totalorder %s14116_s13, 0 }
   0x8   : > { %p90_p3 = scmp.eq.s32.totalorder %s10126_s14, 1  ;;  %p10127_p5 = scmp.ge.s32.totalorder %s14064_s12, 1 }
   0x9   : > { %p14125_p4 = por %p17508_p1, %p39_p0  ;;  %p97_p7 = scmp.lt.s32.totalorder %s14064_s12, 3 }
   0xa   : > { %p14130_p6 = por %p90_p3, %p39_p0  ;;  %s14066_s18 = smov [#allocation8]  }
   0xb   : > { %s17735_s15 = scalar_select %p14125_p4, 1, 0 }
   0xc   : > { %s17736_s16 = scalar_select %p14130_p6, 1, 0 }
   0xd   : > { %p14135_p8 = pnand %p10127_p5, %p97_p7  ;;  %s109_s19 = sshll.u32 %s14066_s18, 4  ;;  %s14139_s19 = int_to_ptr.vmem [resolvable:$true] %s109_s19 }
   0xe   : > { %s14151_s21 = sadd.s32 1, %s14064_s12   ;;  %s26_s22 = sadd.s32 1, %s14060_s11 }
   0xf   : > { %s17737_s17 = scalar_select %p14135_p8, 1, 0 }
  0x10   : > { %p13876_p9 = pneg %p14135_p8  ;;  %s23_s23 = ssub.s32 %s14064_s12, %s14151_s21 }
  0x11   : > { %s13936_s26 = scalar_lea.hbm %s17506_s1, 35328 }
  0x12   : > { %p14146_p11 = pnand %p13876_p9, %p17508_p1  ;;  %p13937_p12 = scmp.ne.s32.totalorder %s17506_s1, %s13936_s26 }
  0x13   : > { %p13943_p5 = scmp.lt.u32.totalorder %s13936_s26, %s17506_s1 }
  0x14   : > { %p13938_p13 = pneg %p14146_p11 }
  0x16   : > { %p13939_p0 = pnand %p13938_p13, %p13937_p12 }
  0x18   : > { %p13940_p3 = pneg %p13939_p0 }
  0x1a   : > { %p13945_p7 = pnand %p13943_p5, %p13940_p3 }
  0x1c   : > { %13948 = shalt.err (!%p13945_p7)
}
  0x1d   : > { %s13949_s3 = scalar_lea.vmem %s14139_s19, 35328  ;;  %p13957_p2 = scmp.lt.s32.totalorder %s14139_s19, %s14139_s19 }
  0x1e   : > { %p13950_p9 = scmp.ne.s32.totalorder %s14139_s19, %s13949_s3  ;;  %p13958_p6 = scmp.lt.s32.totalorder %s13949_s3, %s13949_s3 }
  0x20   : > { %p13952_p10 = pnand %p13950_p9, %p13938_p13  ;;  %p13959_p4 = por %p13958_p6, %p13957_p2 }
  0x22   : > { %p13953_p1 = pneg %p13952_p10 }
  0x24   : > { %p13960_p8 = pnand %p13959_p4, %p13953_p1 }
  0x26   : > { %13963 = shalt.err (!%p13960_p8)
}
  0x27   : > { %s14067_s4 = smov 256   ;;  %s14068_s5 = smov 16  }
  0x28   : > { %13879 = dma.hbm_to_vmem [thread:$0]  (!%p14146_p11), %s17506_s1, 35328, %s14139_s19, [#allocation9], %s14067_s4, %s14067_s4, %s14068_s5  }
  0x29   : > { %p24_p2 = scmp.eq.s32.totalorder %s23_s23, 0  ;;  %p33_p1 = scmp.ne.s32.totalorder %s14060_s11, %s14056_s10 }
  0x2a   : > { %p34_p4 = scmp.eq.s32.totalorder %s14064_s12, 0  ;;  %p13889_p6 = scmp.lt.s32.totalorder %s14064_s12, 2 }
  0x2b   : > { %s14182_s8 = scalar_select %p24_p2, %s14060_s11, %s26_s22  }
  0x2c   : > { %p35_p8 = por %p34_p4, %p33_p1  ;;  %p17739_p10 = scmp.eq.s32.totalorder %s14116_s13, 1 }
  0x2d   : > { %s123_s18 = sand.u32 1, %s14060_s11   ;;  %s10139_s24 = sshll.u32 %s14064_s12, 9 }
  0x2e   : > { %p14186_p12 = por %p17739_p10, %p33_p1  ;;  %s10130_s25 = sshll.u32 %s123_s18, 5 }
  0x2f   : > { %s14195_s27 = scalar_lea.hbm %s17505_s0, %s10139_s24  ;;  %s127_s19 = scalar_lea.vmem [#allocation5], %s10130_s25 }
  0x30   : > { %s134_s22 = sshll.u32 %s127_s19, 4  ;;  %p14197_p11 = pnand %p13889_p6, %p35_p8  ;;  %s14201_s22 = int_to_ptr.vmem [resolvable:$true] %s134_s22 }
  0x31   : > { %s14203_s28 = scalar_lea.sflag [#allocation6], %s123_s18  ;;  %s13964_s29 = scalar_lea.hbm %s14195_s27, 512 }
  0x32   : > { %p13965_p13 = scmp.ne.s32.totalorder %s14195_s27, %s13964_s29  ;;  %p13966_p0 = pneg %p14197_p11 }
  0x33   : > { %s13969_s4 = scalar_lea.hbm %s17505_s0, 1024  ;;  %p13970_p7 = scmp.lt.u32.totalorder %s14195_s27, %s17505_s0 }
  0x34   : > { %p13967_p3 = pnand %p13966_p0, %p13965_p13  ;;  %p13971_p9 = scmp.lt.u32.totalorder %s13969_s4, %s13964_s29 }
  0x35   : > { %p13973_p1 = scmp.lt.u32.totalorder %s13964_s29, %s14195_s27 }
  0x36   : > { %p13968_p5 = pneg %p13967_p3  ;;  %p13972_p2 = por %p13971_p9, %p13970_p7 }
  0x38   : > { %p13974_p4 = por %p13973_p1, %p13972_p2 }
  0x3a   : > { %p13975_p6 = pnand %p13974_p4, %p13968_p5 }
  0x3c   : > { %13978 = shalt.err (!%p13975_p6)
}
  0x3d   : > { %s13979_s7 = scalar_lea.vmem %s14201_s22, 512  ;;  %s14069_s18 = smov [#allocation5]  }
  0x3e   : > { %p13980_p8 = scmp.ne.s32.totalorder %s14201_s22, %s13979_s7  ;;  %s13984_s24 = sshll.u32 %s14069_s18, 4  ;;  %s13985_s24 = int_to_ptr.vmem [resolvable:$false] %s13984_s24 }
  0x3f   : > { %s13986_s25 = scalar_lea.vmem %s13985_s24, 1024  ;;  %p13987_p3 = scmp.lt.s32.totalorder %s14201_s22, %s13985_s24 }
  0x40   : > { %p13982_p10 = pnand %p13980_p8, %p13966_p0  ;;  %p13988_p7 = scmp.lt.s32.totalorder %s13986_s25, %s13979_s7 }
  0x42   : > { %p13983_p13 = pneg %p13982_p10  ;;  %p13989_p9 = por %p13988_p7, %p13987_p3 }
  0x44   : > { %p13990_p2 = pnand %p13989_p9, %p13983_p13 }
  0x46   : > { %13993 = shalt.err (!%p13990_p2)
}
  0x47   : > { %s14070_s20 = smov 128   ;;  %s14071_s26 = smov 8  }
  0x48   : > { %13883 = dma.hbm_to_vmem [thread:$0]  (!%p14197_p11), %s14195_s27, 512, %s14201_s22, %s14203_s28, %s14070_s20, %s14070_s20, %s14071_s26  }
  0x49   : > { %p17742_p0 = scmp.ne.s32.totalorder %s17737_s17, 0 }
  0x4b   : > { %146 = sbr.rel (%p17742_p0) target bundleno = 3443 (0xd73), region = 28 }
  0x52   : > { %s14234_s19 = sand.u32 1, %s14056_s10   ;;  %p17743_p5 = scmp.ne.s32.totalorder %s17735_s15, 0 }
  0x53   : > { %s10134_s29 = sshll.u32 %s14234_s19, 5  ;;  %s149_s30 = scalar_lea.sflag [#allocation6], %s14234_s19 }
  0x54   : > { %s14238_s3 = scalar_lea.vmem [#allocation5], %s10134_s29 }
  0x55   : > { %14039 = dma.done.wait (%p17743_p5), %s149_s30, 512  }
  0x56   : > { %14041 = vsyncadd (%p17743_p5), %s149_s30, 4294966784  ;;  %p17744_p11 = scmp.eq.s32.totalorder %s14116_s13, 0 }
  0x58   : > { %14043 = dma.done.wait (%p17744_p11), [#allocation9], 35328   ;;  %p17745_p1 = pmov %p17744_p11 }
  0x59   : > { %v17543_v0 = vmov 0.0   ;;  %v14254_v1 = vld [vmem:[#allocation8 + $0x108] sm:$0xff]  ;;  %v14256_v2 = vld [vmem:[#allocation8 + $0x118] sm:$0xff]  ;;  %v14258_v3 = vld [vmem:[#allocation8 + $0x100] sm:$0xff]  ;;  %vm5459_vm0 = vcmask 516096   ;;  %vm7122_vm1 = vcmask 253952  }
  0x5a   : > { %14045 = vsyncadd (%p17745_p1), [#allocation9], 4294931968  ;;  %623 = vmatprep.mubr.f32.mxu0 %v17543_v0  ;;  %176 = vst [vmem:[#allocation2] sm:$0x1] %v17543_v0  ;;  %354 = vmatprep.mubr.f32.mxu1 %v17543_v0  ;;  %v17552_v4 = vand.u32 4294901760, %v14254_v1  ;;  %v17549_v5 = vand.u32 4294901760, %v14256_v2 }
  0x5b   : > { %177 = vst [vmem:[#allocation2 + $0x21] sm:$0x1] %v17543_v0  ;;  %3329 = vst [vmem:[#allocation3] sm:$0x1] %v17543_v0  ;;  %v14262_v6 = vld [vmem:[#allocation8 + $0x110] sm:$0xff]  ;;  %v17548_v7 = vand.u32 4294901760, %v14258_v3 }
  0x5c   : > { %3330 = vst [vmem:[#allocation3 + $0x11] sm:$0x1] %v17543_v0  ;;  %v14265_v8 = vld [vmem:[#allocation8 + $0x128] sm:$0xff]  ;;  %v14267_v9 = vld [vmem:[#allocation8 + $0x138] sm:$0xff]  ;;  %v17545_v10 = vand.u32 4294901760, %v14262_v6  ;;  %v14272_v13 = vld [vmem:[#allocation8 + $0x120] sm:$0xff]  ;;  %v14279_v15 = vsub.f32 %v14254_v1, %v17552_v4  ;;  %v14284_v16 = vsub.f32 %v14256_v2, %v17549_v5 }
  0x5d   : > { %v17537_v11 = vand.u32 4294901760, %v14265_v8  ;;  %v17536_v12 = vand.u32 4294901760, %v14267_v9  ;;  %v14274_v14 = vld [vmem:[#allocation8 + $0x130] sm:$0xff]  ;;  %v14289_v17 = vsub.f32 %v14258_v3, %v17548_v7  ;;  %v17533_v18 = vand.u32 4294901760, %v14272_v13  ;;  %v14344_v39 = vld [vmem:[#allocation8 + $0x148] sm:$0xff]  ;;  %v14346_v40 = vld [vmem:[#allocation8 + $0x158] sm:$0xff] }
  0x5e   : > { %v14295_v19 = vsub.f32 %v14262_v6, %v17545_v10  ;;  %v17532_v22 = vand.u32 4294901760, %v14274_v14  ;;  %v17531_v23 = vand.u32 4294901760, %v14279_v15  ;;  %v17529_v24 = vand.u32 4294901760, %v14284_v16  ;;  %v14351_v45 = vld [vmem:[#allocation8 + $0x140] sm:$0xff]  ;;  %v14353_v46 = vld [vmem:[#allocation8 + $0x150] sm:$0xff]  ;;  %v14355_v47 = vld [vmem:[#allocation8 + $0x168] sm:$0xff] }
  0x5f   : > { %v14300_v20 = vsub.f32 %v14265_v8, %v17537_v11  ;;  %v14305_v21 = vsub.f32 %v14267_v9, %v17536_v12  ;;  %v17528_v25 = vand.u32 4294901760, %v14289_v17  ;;  %v14314_v26 = vsub.f32 %v14272_v13, %v17533_v18  ;;  %17746 = vst [vmem:[#allocation14_spill] sm:$0xff] %v14351_v45  ;;  %17747 = vst [vmem:[#allocation15_spill] sm:$0xff] %v14353_v46  ;;  %v14360_v52 = vld [vmem:[#allocation8 + $0x178] sm:$0xff]  ;;  %v14362_v53 = vld [vmem:[#allocation8 + $0x160] sm:$0xff]  ;;  %s14073_s15 = smov 64  }
  0x60   : > { %v17526_v27 = vand.u32 4294901760, %v14295_v19  ;;  %v14322_v30 = vsub.f32 %v14274_v14, %v17532_v22  ;;  %v402_v31 = vsub.f32 %v14279_v15, %v17531_v23  ;;  %v414_v32 = vsub.f32 %v14284_v16, %v17529_v24  ;;  %17748 = vst [vmem:[#allocation16_spill] sm:$0xff] %v14355_v47  ;;  %17749 = vst [vmem:[#allocation17_spill] sm:$0xff] %v14360_v52  ;;  %v14365_v54 = vld [vmem:[%s14238_s3] sm:$0xff]  ;;  %v14371_v59 = vld [vmem:[%s14238_s3 + $0x8] sm:$0xff]  ;;  %s14076_s17 = smov 96  }
  0x61   : > { %v17524_v28 = vand.u32 4294901760, %v14300_v20  ;;  %v17523_v29 = vand.u32 4294901760, %v14305_v21  ;;  %v408_v33 = vsub.f32 %v14289_v17, %v17528_v25  ;;  %v17521_v34 = vand.u32 4294901760, %v14314_v26  ;;  %17750 = vst [vmem:[#allocation18_spill] sm:$0xff] %v14362_v53  ;;  %182 = vst [vmem:[#allocation2 + $0x1] sm:$0xff] %v14365_v54  ;;  %v14374_v60 = vld [vmem:[%s14238_s3 + $0x10] sm:$0xff] }
  0x62   : > { %v420_v35 = vsub.f32 %v14295_v19, %v17526_v27  ;;  %v17519_v38 = vand.u32 4294901760, %v14322_v30  ;;  %v403_v41 = vand.u32 4294901760, %v402_v31  ;;  %v415_v42 = vand.u32 4294901760, %v414_v32  ;;  %v14377_v61 = vld [vmem:[%s14238_s3 + $0x18] sm:$0xff]  ;;  %183 = vst [vmem:[#allocation2 + $0x9] sm:$0xff] %v14371_v59  ;;  %184 = vst [vmem:[#allocation2 + $0x11] sm:$0xff] %v14374_v60 }
  0x63   : > { %v426_v36 = vsub.f32 %v14300_v20, %v17524_v28  ;;  %v438_v37 = vsub.f32 %v14305_v21, %v17523_v29  ;;  %v409_v43 = vand.u32 4294901760, %v408_v33  ;;  %v432_v44 = vsub.f32 %v14314_v26, %v17521_v34  ;;  %17751 = vst [vmem:[#allocation19_spill] sm:$0xff] %v14377_v61  ;;  %185 = vst [vmem:[#allocation2 + $0x19] sm:$0xff] %v14377_v61  ;;  %v14454_v29 = vld [vmem:[#allocation8 + $0x198] sm:$0xff]  ;;  %v14463_v27 = vld [vmem:[#allocation8 + $0x180] sm:$0xff]  ;;  %s14077_s27 = smov 112  }
  0x64   : > { %v421_v48 = vand.u32 4294901760, %v420_v35  ;;  %v444_v51 = vsub.f32 %v14322_v30, %v17519_v38  ;;  %v12098_v55 = vpack.c.bf16 %v415_v42, %v403_v41  ;;  %v17517_v57 = vand.u32 4294901760, %v14344_v39  ;;  %v14395_v41 = vld [vmem:[#allocation8 + $0x170] sm:$0xff]  ;;  %v14446_v38 = vld [vmem:[#allocation8 + $0x188] sm:$0xff]  ;;  %17754 = vst [vmem:[#allocation22_spill] sm:$0xff] %v14454_v29  ;;  %17755 = vst [vmem:[#allocation23_spill] sm:$0xff] %v14463_v27 }
  0x65   : > { %v427_v49 = vand.u32 4294901760, %v426_v36  ;;  %v439_v50 = vand.u32 4294901760, %v438_v37  ;;  %v433_v56 = vand.u32 4294901760, %v432_v44  ;;  %v17515_v58 = vand.u32 4294901760, %v14346_v40  ;;  %17752 = vst [vmem:[#allocation20_spill] sm:$0xff] %v14395_v41  ;;  %17753 = vst [vmem:[#allocation21_spill] sm:$0xff] %v14446_v38 }
  0x66   : > { %v12100_v62 = vpack.c.bf16 %v421_v48, %v409_v43  ;;  %v445_v31 = vand.u32 4294901760, %v444_v51  ;;  %v17513_v32 = vand.u32 4294901760, %v14351_v45  ;;  %12099 = vmatprep.subr.bf16.mxu0 %v12098_v55  ;;  %v14386_v33 = vsub.f32 %v14344_v39, %v17517_v57  ;;  %v14474_v12 = vld [vmem:[#allocation8 + $0x1b8] sm:$0xff]  ;;  %v14532_v7 = vld [vmem:[#allocation8 + $0x1c8] sm:$0xff]  ;;  %s14078_s22 = smov 120   ;;  %s10136_s23 = sshll.u32 %s14116_s13, 4 }
  0x67   : > { %v12102_v63 = vpack.c.bf16 %v439_v50, %v427_v49  ;;  %v14391_v35 = vsub.f32 %v14346_v40, %v17515_v58  ;;  %v17511_v36 = vand.u32 4294901760, %v14353_v46  ;;  %v17512_v37 = vand.u32 4294901760, %v14355_v47  ;;  %17758 = vst [vmem:[#allocation26_spill] sm:$0xff] %v14474_v12  ;;  %17761 = vst [vmem:[#allocation29_spill] sm:$0xff] %v14532_v7  ;;  %s175_s28 = scalar_lea.vmem [#allocation10], %s14234_s19  ;;  %s17460_s7 = scalar_lea.hbm %s17507_s2, %s10136_s23 }
  0x68   : > { %12101 = vmatpush1.bf16.msra.mxu0 %v12100_v62  ;;  %v12104_v42 = vpack.c.bf16 %v445_v31, %v433_v56  ;;  %v14400_v43 = vsub.f32 %v14351_v45, %v17513_v32  ;;  %v17514_v44 = vand.u32 4294901760, %v14360_v52  ;;  %v17516_v48 = vand.u32 4294901760, %v14362_v53  ;;  %s10050_s4 = sshll.u32 %s175_s28, 4  ;;  %s10038_s18 = scalar_lea.sflag [#allocation7], %s14234_s19  ;;  %s17462_s4 = int_to_ptr.vmem [resolvable:$true] %s10050_s4 }
  0x69   : > { %12103 = vmatprep.subr.bf16.mxu0 %v12102_v63  ;;  %v17518_v49 = vand.u32 4294901760, %v14386_v33  ;;  %v17520_v50 = vand.u32 4294901760, %v14391_v35  ;;  %v14409_v51 = vsub.f32 %v14353_v46, %v17511_v36  ;;  %v14414_v55 = vsub.f32 %v14355_v47, %v17512_v37  ;;  %s13994_s24 = scalar_lea.vmem %s17462_s4, 16  ;;  %s14079_s13 = smov [#allocation10]  }
  0x6a   : > { %v17522_v56 = vand.u32 4294901760, %v14400_v43  ;;  %v14420_v62 = vsub.f32 %v14360_v52, %v17514_v44  ;;  %v17525_v63 = vand.u32 4294901760, %v14395_v41  ;;  %v14426_v31 = vsub.f32 %v14362_v53, %v17516_v48  ;;  %v14572_v53 = vld [vmem:[#allocation8 + $0x1f8] sm:$0xff]  ;;  %p13995_p4 = scmp.ne.s32.totalorder %s17462_s4, %s13994_s24  ;;  %s13998_s25 = sshll.u32 %s14079_s13, 4  ;;  %s13999_s25 = int_to_ptr.vmem [resolvable:$false] %s13998_s25 }
  0x6b   : > { %v450_v36 = vsub.f32 %v14386_v33, %v17518_v49  ;;  %v462_v37 = vsub.f32 %v14391_v35, %v17520_v50  ;;  %v17527_v32 = vand.u32 4294901760, %v14409_v51  ;;  %v17530_v44 = vand.u32 4294901760, %v14414_v55  ;;  %17768 = vst [vmem:[#allocation34_spill] sm:$0xff] %v14572_v53  ;;  %s14000_s20 = scalar_lea.vmem %s13999_s25, 32  ;;  %p14001_p10 = scmp.lt.s32.totalorder %s17462_s4, %s13999_s25 }
  0x6c   : > { %12105 = vmatpush1.bf16.msra.mxu0 %v12104_v42  ;;  %v456_v58 = vsub.f32 %v14400_v43, %v17522_v56  ;;  %v17534_v48 = vand.u32 4294901760, %v14420_v62  ;;  %v17535_v57 = vand.u32 4294901760, %v14426_v31  ;;  %v14444_v49 = vsub.f32 %v14395_v41, %v17525_v63  ;;  %p13996_p6 = pnand %p13995_p4, %p14186_p12  ;;  %p14002_p13 = scmp.lt.s32.totalorder %s14000_s20, %s13994_s24 }
  0x6d   : > { %v451_v50 = vand.u32 4294901760, %v450_v36  ;;  %v463_v34 = vand.u32 4294901760, %v462_v37  ;;  %v468_v42 = vsub.f32 %v14409_v51, %v17527_v32  ;;  %v474_v56 = vsub.f32 %v14414_v55, %v17530_v44  ;;  %v14465_v32 = vld [vmem:[#allocation8 + $0x190] sm:$0xff] }
  0x6e   : > { %v457_v28 = vand.u32 4294901760, %v456_v58  ;;  %v486_v63 = vsub.f32 %v14420_v62, %v17534_v48  ;;  %v480_v36 = vsub.f32 %v14426_v31, %v17535_v57  ;;  %v17538_v37 = vand.u32 4294901760, %v14444_v49  ;;  %17756 = vst [vmem:[#allocation24_spill] sm:$0xff] %v14465_v32  ;;  %v14468_v58 = vld [vmem:[#allocation8 + $0x1a8] sm:$0xff]  ;;  %p13997_p8 = pneg %p13996_p6  ;;  %p14003_p3 = por %p14002_p13, %p14001_p10 }
  0x6f   : > { %v12106_v25 = vpack.c.bf16 %v463_v34, %v451_v50  ;;  %v469_v24 = vand.u32 4294901760, %v468_v42  ;;  %v475_v44 = vand.u32 4294901760, %v474_v56  ;;  %v17540_v23 = vand.u32 4294901760, %v14446_v38  ;;  %17757 = vst [vmem:[#allocation25_spill] sm:$0xff] %v14468_v58 }
  0x70   : > { %v487_v22 = vand.u32 4294901760, %v486_v63  ;;  %v481_v18 = vand.u32 4294901760, %v480_v36  ;;  %v492_v48 = vsub.f32 %v14444_v49, %v17538_v37  ;;  %v17539_v57 = vand.u32 4294901760, %v14454_v29  ;;  %v14483_v63 = vld [vmem:[#allocation8 + $0x1a0] sm:$0xff]  ;;  %p14004_p7 = pnand %p14003_p3, %p13997_p8 }
  0x71   : > { %12107 = vmatprep.subr.bf16.mxu0 %v12106_v25  ;;  %v12108_v11 = vpack.c.bf16 %v469_v24, %v457_v28  ;;  %v14479_v34 = vsub.f32 %v14446_v38, %v17540_v23  ;;  %v17541_v50 = vand.u32 4294901760, %v14463_v27  ;;  %v17542_v56 = vand.u32 4294901760, %v14465_v32  ;;  %17759 = vst [vmem:[#allocation27_spill] sm:$0xff] %v14483_v63 }
  0x72   : > { %v12110_v42 = vpack.c.bf16 %v487_v22, %v475_v44  ;;  %v493_v36 = vand.u32 4294901760, %v492_v48  ;;  %v14488_v37 = vsub.f32 %v14454_v29, %v17539_v57  ;;  %v17546_v24 = vand.u32 4294901760, %v14468_v58  ;;  %v14503_v48 = vld [vmem:[#allocation8 + $0x1b0] sm:$0xff] }
  0x73   : > { %12109 = vmatpush1.bf16.msra.mxu0 %v12108_v11  ;;  %v17547_v25 = vand.u32 4294901760, %v14479_v34  ;;  %v14495_v28 = vsub.f32 %v14463_v27, %v17541_v50  ;;  %v14500_v22 = vsub.f32 %v14465_v32, %v17542_v56  ;;  %v17550_v44 = vand.u32 4294901760, %v14474_v12  ;;  %17760 = vst [vmem:[#allocation28_spill] sm:$0xff] %v14503_v48  ;;  %v14556_v32 = vld [vmem:[#allocation8 + $0x1c0] sm:$0xff] }
  0x74   : > { %12111 = vmatprep.subr.bf16.mxu0 %v12110_v42  ;;  %v12112_v57 = vpack.c.bf16 %v493_v36, %v481_v18  ;;  %v17551_v11 = vand.u32 4294901760, %v14488_v37  ;;  %v14509_v23 = vsub.f32 %v14468_v58, %v17546_v24  ;;  %v17553_v50 = vand.u32 4294901760, %v14483_v63  ;;  %17764 = vst [vmem:[#allocation31_spill] sm:$0xff] %v14556_v32 }
  0x75   : > { %v498_v56 = vsub.f32 %v14479_v34, %v17547_v25  ;;  %v17556_v0 = vand.u32 4294901760, %v14495_v28  ;;  %v17558_v10 = vand.u32 4294901760, %v14500_v22  ;;  %v14520_v18 = vsub.f32 %v14474_v12, %v17550_v44  ;;  %v14550_v12 = vld [vmem:[#allocation8 + $0x1d8] sm:$0xff] }
  0x76   : > { %v510_v42 = vsub.f32 %v14488_v37, %v17551_v11  ;;  %v17560_v36 = vand.u32 4294901760, %v14509_v23  ;;  %v14530_v25 = vsub.f32 %v14483_v63, %v17553_v50  ;;  %17763 = vst [vmem:[#allocation30_spill] sm:$0xff] %v14550_v12  ;;  %vm14075_vm2 = vmmov 0  }
  0x77   : > { %12113 = vmatpush1.bf16.msra.mxu0 %v12112_v57  ;;  %v499_v5 = vand.u32 4294901760, %v498_v56  ;;  %v504_v44 = vsub.f32 %v14495_v28, %v17556_v0  ;;  %v516_v11 = vsub.f32 %v14500_v22, %v17558_v10  ;;  %v17565_v4 = vand.u32 4294901760, %v14520_v18 }
  0x78   : > { %v511_v24 = vand.u32 4294901760, %v510_v42  ;;  %v522_v50 = vsub.f32 %v14509_v23, %v17560_v36  ;;  %v17762_v57 = vand.u32 4294901760, %v14503_v48  ;;  %v17568_v42 = vand.u32 4294901760, %v14532_v7  ;;  %v14558_v36 = vld [vmem:[#allocation8 + $0x1d0] sm:$0xff] }
  0x79   : > { %v505_v0 = vand.u32 4294901760, %v504_v44  ;;  %v517_v58 = vand.u32 4294901760, %v516_v11  ;;  %v534_v10 = vsub.f32 %v14520_v18, %v17565_v4  ;;  %17765 = vst [vmem:[#allocation32_spill] sm:$0xff] %v14558_v36  ;;  %v17766_v29 = vand.u32 4294901760, %v14530_v25  ;;  %v14564_v44 = vld [vmem:[#allocation8 + $0x1e8] sm:$0xff] }
  0x7a   : > { %v14548_v56 = vsub.f32 %v14503_v48, %v17762_v57  ;;  %v12114_v63 = vpack.c.bf16 %v511_v24, %v499_v5  ;;  %v523_v27 = vand.u32 4294901760, %v522_v50  ;;  %17767 = vst [vmem:[#allocation33_spill] sm:$0xff] %v14564_v44  ;;  %v17570_v4 = vand.u32 4294901760, %v14550_v12 }
  0x7b   : > { %v528_v57 = vsub.f32 %v14530_v25, %v17766_v29  ;;  %v12116_v11 = vpack.c.bf16 %v517_v58, %v505_v0  ;;  %v535_v38 = vand.u32 4294901760, %v534_v10  ;;  %v14570_v41 = vsub.f32 %v14532_v7, %v17568_v42  ;;  %v14579_v10 = vld [vmem:[#allocation8 + $0x1e0] sm:$0xff] }
  0x7c   : > { %v17569_v48 = vand.u32 4294901760, %v14548_v56  ;;  %12115 = vmatprep.subr.bf16.mxu0 %v12114_v63  ;;  %v17571_v50 = vand.u32 4294901760, %v14556_v32  ;;  %v17573_v0 = vand.u32 4294901760, %v14558_v36  ;;  %17769 = vst [vmem:[#allocation35_spill] sm:$0xff] %v14579_v10  ;;  %v14585_v42 = vsub.f32 %v14550_v12, %v17570_v4 }
  0x7d   : > { %v529_v5 = vand.u32 4294901760, %v528_v57  ;;  %12117 = vmatpush1.bf16.msra.mxu0 %v12116_v11  ;;  %v12118_v58 = vpack.c.bf16 %v535_v38, %v523_v27  ;;  %v17576_v24 = vand.u32 4294901760, %v14570_v41  ;;  %v17578_v63 = vand.u32 4294901760, %v14564_v44  ;;  %v14599_v38 = vld [vmem:[#allocation8 + $0x1f0] sm:$0xff] }
  0x7e   : > { %v540_v29 = vsub.f32 %v14548_v56, %v17569_v48  ;;  %v14591_v48 = vsub.f32 %v14556_v32, %v17571_v50  ;;  %v14596_v11 = vsub.f32 %v14558_v36, %v17573_v0  ;;  %17770 = vst [vmem:[#allocation36_spill] sm:$0xff] %v14599_v38  ;;  %v17588_v32 = vand.u32 4294901760, %v14579_v10 }
  0x7f   : > { %12119 = vmatprep.subr.bf16.mxu0 %v12118_v58  ;;  %v546_v4 = vsub.f32 %v14570_v41, %v17576_v24  ;;  %v14608_v50 = vsub.f32 %v14564_v44, %v17578_v63  ;;  %v17771_v58 = vand.u32 4294901760, %v14572_v53  ;;  %v17593_v44 = vand.u32 4294901760, %v14599_v38 }
  0x80   : > { %v541_v57 = vand.u32 4294901760, %v540_v29  ;;  %v17580_v29 = vand.u32 4294901760, %v14585_v42  ;;  %v17581_v36 = vand.u32 4294901760, %v14591_v48  ;;  %v17584_v27 = vand.u32 4294901760, %v14596_v11 }
  0x81   : > { %v14616_v12 = vsub.f32 %v14572_v53, %v17771_v58  ;;  %v547_v24 = vand.u32 4294901760, %v546_v4  ;;  %v17592_v63 = vand.u32 4294901760, %v14608_v50  ;;  %v14633_v4 = vsub.f32 %v14579_v10, %v17588_v32 }
  0x82   : > { %v12120_v0 = vpack.c.bf16 %v541_v57, %v529_v5  ;;  %v558_v7 = vsub.f32 %v14585_v42, %v17580_v29  ;;  %v552_v5 = vsub.f32 %v14591_v48, %v17581_v36  ;;  %v564_v57 = vsub.f32 %v14596_v11, %v17584_v27 }
  0x83   : > { %17772 = vst [vmem:[#allocation37_spill] sm:$0xff] %v14616_v12  ;;  %v581_v58 = vand.u32 4294901760, %v14616_v12  ;;  %v14641_v36 = vsub.f32 %v14599_v38, %v17593_v44  ;;  %v575_v47 = vand.u32 4294901760, %v14633_v4  ;;  %vm5453_vm3 = vcmask 523264  }
  0x84   : > { %12121 = vmatpush1.bf16.msra.mxu0 %v12120_v0  ;;  %v559_v29 = vand.u32 4294901760, %v558_v7  ;;  %v570_v0 = vsub.f32 %v14608_v50, %v17592_v63  ;;  %v553_v53 = vand.u32 4294901760, %v552_v5  ;;  %v565_v52 = vand.u32 4294901760, %v564_v57 }
  0x85   : > { %v582_v27 = vsub.f32 %v14616_v12, %v581_v58  ;;  %v587_v32 = vand.u32 4294901760, %v14641_v36  ;;  %v576_v61 = vsub.f32 %v14633_v4, %v575_v47  ;;  %v12130_v57 = vpack.c.bf16 %v14284_v16, %v14279_v15 }
  0x86   : > { %v12122_v46 = vpack.c.bf16 %v559_v29, %v547_v24  ;;  %v571_v45 = vand.u32 4294901760, %v570_v0  ;;  %v12124_v7 = vpack.c.bf16 %v565_v52, %v553_v53  ;;  %v14651_v24 = vand.u32 4294901760, %v14365_v54 }
  0x87   : > { %v583_v10 = vand.u32 4294901760, %v582_v27  ;;  %v588_v63 = vsub.f32 %v14641_v36, %v587_v32  ;;  %v577_v38 = vand.u32 4294901760, %v576_v61  ;;  %v12132_v52 = vpack.c.bf16 %v14295_v19, %v14289_v17 }
  0x88   : > { %12123 = vmatprep.subr.bf16.mxu0 %v12122_v46  ;;  %v17773_v46 = vand.u32 4294901760, %v14254_v1  ;;  %v17774_v53 = vand.u32 4294901760, %v14256_v2  ;;  %v12136_v61 = vpack.c.bf16 %v14322_v30, %v14314_v26  ;;  %v12140_v1 = vpack.c.bf16 %v14409_v51, %v14400_v43 }
  0x89   : > { %12125 = vmatpush1.bf16.msra.mxu0 %v12124_v7  ;;  %v12126_v44 = vpack.c.bf16 %v583_v10, %v571_v45  ;;  %v589_v5 = vand.u32 4294901760, %v588_v63  ;;  %v12134_v45 = vpack.c.bf16 %v14305_v21, %v14300_v20  ;;  %v14672_v2 = vand.u32 4294901760, %v14371_v59 }
  0x8a   : > { %v14659_v27 = vpack.c.bf16 %v17774_v53, %v17773_v46  ;;  %v17776_v10 = vand.u32 4294901760, %v14262_v6  ;;  %v17778_v29 = vand.u32 4294901760, %v14265_v8  ;;  %v17779_v0 = vand.u32 4294901760, %v14267_v9 }
  0x8b   : > { %12127 = vmatprep.subr.bf16.mxu0 %v12126_v44  ;;  %v12128_v12 = vpack.c.bf16 %v589_v5, %v577_v38  ;;  %v17775_v44 = vand.u32 4294901760, %v14258_v3  ;;  %v17777_v38 = vmov 0.0   ;;  %v17780_v5 = vand.u32 4294901760, %v14272_v13 }
  0x8c   : > { %12067 = vmatprep.subr.bf16.mxu1 %v14659_v27  ;;  %v14685_v7 = vpack.c.bf16 %v17779_v0, %v17778_v29  ;;  %v17782_v3 = vand.u32 4294901760, %v14279_v15  ;;  %v17783_v6 = vand.u32 4294901760, %v14284_v16  ;;  %v17785_v8 = vand.u32 4294901760, %v14295_v19 }
  0x8d   : > { %12129 = vmatpush1.bf16.msra.mxu0 %v12128_v12  ;;  %v12138_v12 = vpack.c.bf16 %v14391_v35, %v14386_v33  ;;  %v14678_v63 = vpack.c.bf16 %v17776_v10, %v17775_v44  ;;  %v17786_v44 = vand.u32 4294901760, %v14300_v20  ;;  %v17787_v13 = vand.u32 4294901760, %v14305_v21 }
  0x8e   : > { %12131 = vmatprep.subr.bf16.mxu0 %v12130_v57  ;;  %v17781_v57 = vand.u32 4294901760, %v14274_v14  ;;  %v14697_v53 = vpack.c.bf16 %v17783_v6, %v17782_v3  ;;  %v17788_v10 = vand.u32 4294901760, %v14314_v26  ;;  %v17789_v15 = vand.u32 4294901760, %v14322_v30 }
  0x8f   : > { %v14709_v14 = vpack.c.bf16 %v17787_v13, %v17786_v44  ;;  %v17792_v19 = vand.u32 4294901760, %v14400_v43  ;;  %v17793_v20 = vand.u32 4294901760, %v14409_v51  ;;  %v17794_v21 = vand.u32 4294901760, %v14414_v55  ;;  %12069 = vmatpush1.bf16.msra.mxu1 %v14678_v63 }
  0x90   : > { %625 = vmatmul.mubr.f32.vlgmr.msra.gmra.mrb[0].mxu0 %v14651_v24  ;;  %v14691_v46 = vpack.c.bf16 %v17781_v57, %v17780_v5  ;;  %v14715_v16 = vpack.c.bf16 %v17789_v15, %v17788_v10  ;;  %v17795_v26 = vand.u32 4294901760, %v14420_v62  ;;  %v17796_v30 = vand.u32 4294901760, %v14426_v31  ;;  %12071 = vmatprep.subr.bf16.mxu1 %v14685_v7 }
  0x91   : > { %12133 = vmatpush1.bf16.msra.mxu0 %v12132_v52  ;;  %630 = vmatprep.mubr.f32.mxu0 %v17777_v38  ;;  %v17784_v52 = vand.u32 4294901760, %v14289_v17  ;;  %v17791_v17 = vand.u32 4294901760, %v14391_v35  ;;  %v14727_v0 = vpack.c.bf16 %v17793_v20, %v17792_v19  ;;  %v17798_v35 = vand.u32 4294901760, %v14479_v34 }
  0x92   : > { %12135 = vmatprep.subr.bf16.mxu0 %v12134_v45  ;;  %v17790_v45 = vand.u32 4294901760, %v14386_v33  ;;  %v14733_v5 = vpack.c.bf16 %v17795_v26, %v17794_v21  ;;  %v17797_v33 = vand.u32 4294901760, %v14444_v49  ;;  %v17799_v43 = vand.u32 4294901760, %v14488_v37 }
  0x93   : > { %v14703_v9 = vpack.c.bf16 %v17785_v8, %v17784_v52  ;;  %v14750_v51 = vand.u32 4294901760, %v14374_v60  ;;  %v17800_v6 = vand.u32 4294901760, %v14495_v28  ;;  %v17801_v52 = vand.u32 4294901760, %v14500_v22  ;;  %12073 = vmatpush1.bf16.msra.mxu1 %v14691_v46 }
  0x94   : > { %v14721_v29 = vpack.c.bf16 %v17791_v17, %v17790_v45  ;;  %v14739_v57 = vpack.c.bf16 %v17797_v33, %v17796_v30  ;;  %v14745_v3 = vpack.c.bf16 %v17799_v43, %v17798_v35  ;;  %632 = vmatmul.mubr.f32.gmra.mrb[2].mxu0 %v14672_v2  ;;  %v17802_v44 = vand.u32 4294901760, %v14509_v23 }
  0x95   : > { %v14756_v8 = vpack.c.bf16 %v17801_v52, %v17800_v6  ;;  %v17803_v13 = vand.u32 4294901760, %v14520_v18  ;;  %v17804_v15 = vand.u32 4294901760, %v14530_v25  ;;  %v17805_v45 = vand.u32 4294901760, %v14548_v56  ;;  %12137 = vmatpush1.bf16.msra.mxu0 %v12136_v61  ;;  %637 = vmatprep.mubr.f32.mxu0 %v17777_v38 }
  0x96   : > { %v17806_v19 = vand.u32 4294901760, %v14570_v41  ;;  %v17807_v20 = vand.u32 4294901760, %v14585_v42  ;;  %v17808_v26 = vand.u32 4294901760, %v14591_v48  ;;  %v17809_v30 = vand.u32 4294901760, %v14596_v11  ;;  %12139 = vmatprep.subr.bf16.mxu0 %v12138_v12  ;;  %v17818_v12 = vld [vmem:[#allocation16_spill] sm:$0xff] }
  0x97   : > { %v14762_v10 = vpack.c.bf16 %v17803_v13, %v17802_v44  ;;  %v14768_v17 = vpack.c.bf16 %v17805_v45, %v17804_v15  ;;  %v17810_v35 = vand.u32 4294901760, %v14608_v50  ;;  %v12142_v61 = vpack.c.bf16 %v14420_v62, %v14414_v55  ;;  %v17813_v15 = vld [vmem:[#allocation19_spill] sm:$0xff] }
  0x98   : > { %v14776_v21 = vpack.c.bf16 %v17807_v20, %v17806_v19  ;;  %v14782_v33 = vpack.c.bf16 %v17809_v30, %v17808_v26  ;;  %v17811_v6 = vand.u32 4294901760, %v14344_v39  ;;  %v17812_v52 = vand.u32 4294901760, %v14346_v40  ;;  %639 = vmatmul.mubr.f32.gmra.mrb[4].mxu0 %v14750_v51  ;;  %v17814_v39 = vld [vmem:[#allocation14_spill] sm:$0xff]  ;;  %v17816_v62 = vld [vmem:[#allocation15_spill] sm:$0xff]  ;;  %v17820_v20 = vld [vmem:[#allocation17_spill] sm:$0xff] }
  0x99   : > { %v14786_v43 = vpack.c.bf16 %v581_v58, %v17810_v35  ;;  %v14796_v13 = vpack.c.bf16 %v587_v32, %v575_v47  ;;  %v14801_v45 = vand.u32 4294901760, %v17813_v15  ;;  %12141 = vmatpush1.bf16.msra.mxu0 %v12140_v1  ;;  %v12144_v55 = vpack.c.bf16 %v14444_v49, %v14426_v31  ;;  %644 = vmatprep.mubr.f32.mxu0 %v17777_v38  ;;  %v17822_v31 = vld [vmem:[#allocation18_spill] sm:$0xff] }
  0x9a   : > { %v14794_v44 = vpack.c.bf16 %v17812_v52, %v17811_v6  ;;  %v17815_v40 = vand.u32 4294901760, %v17814_v39  ;;  %v17817_v47 = vand.u32 4294901760, %v17816_v62  ;;  %12143 = vmatprep.subr.bf16.mxu0 %v12142_v61  ;;  %v12146_v58 = vpack.c.bf16 %v14488_v37, %v14479_v34  ;;  %v17824_v34 = vld [vmem:[#allocation20_spill] sm:$0xff]  ;;  %v17826_v6 = vld [vmem:[#allocation21_spill] sm:$0xff]  ;;  %v17828_v39 = vld [vmem:[#allocation22_spill] sm:$0xff] }
  0x9b   : > { %v17819_v19 = vand.u32 4294901760, %v17818_v12  ;;  %v17821_v26 = vand.u32 4294901760, %v17820_v20  ;;  %v12148_v49 = vpack.c.bf16 %v14500_v22, %v14495_v28  ;;  %v17823_v37 = vand.u32 4294901760, %v17822_v31  ;;  %v17830_v22 = vld [vmem:[#allocation23_spill] sm:$0xff]  ;;  %v17836_v20 = vld [vmem:[#allocation26_spill] sm:$0xff] }
  0x9c   : > { %12075 = vmatprep.subr.bf16.mxu1 %v14794_v44  ;;  %v14811_v32 = vpack.c.bf16 %v17817_v47, %v17815_v40  ;;  %646 = vmatmul.mubr.f32.gmra.mrb[6].mxu0 %v14801_v45  ;;  %v17825_v30 = vand.u32 4294901760, %v17824_v34  ;;  %v12150_v61 = vpack.c.bf16 %v14520_v18, %v14509_v23  ;;  %v17827_v52 = vand.u32 4294901760, %v17826_v6  ;;  %v17832_v47 = vld [vmem:[#allocation24_spill] sm:$0xff]  ;;  %v17834_v18 = vld [vmem:[#allocation25_spill] sm:$0xff] }
  0x9d   : > { %v14819_v1 = vpack.c.bf16 %v17821_v26, %v17819_v19  ;;  %12145 = vmatpush1.bf16.msra.mxu0 %v12144_v55  ;;  %780 = vmatprep.mubr.f32.mxu0 %v17777_v38  ;;  %v17829_v40 = vand.u32 4294901760, %v17828_v39  ;;  %v12152_v28 = vpack.c.bf16 %v14548_v56, %v14530_v25  ;;  %v17831_v62 = vand.u32 4294901760, %v17830_v22  ;;  %v17838_v56 = vld [vmem:[#allocation27_spill] sm:$0xff]  ;;  %v17849_v22 = vld [vmem:[#allocation32_spill] sm:$0xff] }
  0x9e   : > { %12077 = vmatpush1.bf16.msra.mxu1 %v14811_v32  ;;  %v14831_v35 = vpack.c.bf16 %v17825_v30, %v17823_v37  ;;  %12147 = vmatprep.subr.bf16.mxu0 %v12146_v58  ;;  %v17833_v58 = vand.u32 4294901760, %v17832_v47  ;;  %v12154_v23 = vpack.c.bf16 %v14585_v42, %v14570_v41  ;;  %v17835_v19 = vand.u32 4294901760, %v17834_v18  ;;  %v17840_v37 = vld [vmem:[#allocation28_spill] sm:$0xff]  ;;  %v17842_v41 = vld [vmem:[#allocation37_spill] sm:$0xff] }
  0x9f   : > { %12079 = vmatprep.subr.bf16.mxu1 %v14819_v1  ;;  %v14839_v55 = vpack.c.bf16 %v17829_v40, %v17827_v52  ;;  %v17837_v26 = vand.u32 4294901760, %v17836_v20  ;;  %v12156_v25 = vpack.c.bf16 %v14596_v11, %v14591_v48  ;;  %v17841_v34 = vand.u32 4294901760, %v17840_v37  ;;  %v17845_v52 = vld [vmem:[#allocation30_spill] sm:$0xff]  ;;  %v17847_v11 = vld [vmem:[#allocation31_spill] sm:$0xff]  ;;  %v14941_v37 = vld [vmem:[#allocation2 + $0x2] sm:$0xff] }
  0xa0   : > { %v14849_v12 = vpack.c.bf16 %v17833_v58, %v17831_v62  ;;  %v12158_v42 = vpack.c.bf16 %v17842_v41, %v14608_v50  ;;  %v17846_v39 = vand.u32 4294901760, %v17845_v52  ;;  %v12160_v48 = vpack.c.bf16 %v14641_v36, %v14633_v4  ;;  %v17851_v50 = vld [vmem:[#allocation33_spill] sm:$0xff]  ;;  %v17856_v36 = vld [vmem:[#allocation35_spill] sm:$0xff]  ;;  %17863 = vst [vmem:[#allocation17_spill] sm:$0xff] %v14941_v37 }
  0xa1   : > { %12149 = vmatpush1.bf16.msra.mxu0 %v12148_v49  ;;  %v14857_v31 = vpack.c.bf16 %v17837_v26, %v17835_v19  ;;  %v17839_v49 = vand.u32 4294901760, %v17838_v56  ;;  %v17850_v62 = vand.u32 4294901760, %v17849_v22  ;;  %v17852_v58 = vand.u32 4294901760, %v17851_v50  ;;  %v17858_v26 = vld [vmem:[#allocation36_spill] sm:$0xff] }
  0xa2   : > { %12081 = vmatpush1.bf16.msra.mxu1 %v14831_v35  ;;  %12151 = vmatprep.subr.bf16.mxu0 %v12150_v61  ;;  %v17843_v61 = vld [vmem:[#allocation29_spill] sm:$0xff]  ;;  %v14896_v20 = vsub.f32 %v14365_v54, %v14651_v24  ;;  %v17857_v4 = vand.u32 4294901760, %v17856_v36  ;;  %v14918_v54 = vsub.f32 %v14374_v60, %v14750_v51  ;;  %v14937_v60 = vld [vmem:[#allocation2] sm:$0xff]  ;;  %vm8618_vm4 = vcmask 122880  }
  0xa3   : > { %12083 = vmatprep.subr.bf16.mxu1 %v14839_v55  ;;  %v14867_v30 = vpack.c.bf16 %v17841_v34, %v17839_v49  ;;  %v17844_v6 = vand.u32 4294901760, %v17843_v61  ;;  %v14910_v49 = vsub.f32 %v14371_v59, %v14672_v2  ;;  %v14926_v59 = vsub.f32 %v17813_v15, %v14801_v45  ;;  %v14939_v15 = vld [vmem:[#allocation2 + $0x8] sm:$0xff]  ;;  %5460 = vst.msk [vmem:[#allocation2] sm:$0x1] %vm5459_vm0, %v17777_v38 }
  0xa4   : > { %17855 = vst [vmem:[#allocation19_spill] sm:$0xff] %v14896_v20  ;;  %17861 = vst [vmem:[#allocation15_spill] sm:$0xff] %v14918_v54  ;;  %v17599_v34 = vand.u32 4294901760, %v14896_v20  ;;  %vm7117_vm5 = vcmask 261120   ;;  %vm7125_vm6 = vcmask 257024   ;;  %vm8613_vm7 = vcmask 125952  }
  0xa5   : > { %12153 = vmatpush1.bf16.msra.mxu0 %v12152_v28  ;;  %v14875_v40 = vpack.c.bf16 %v17846_v39, %v17844_v6  ;;  %v17848_v28 = vand.u32 4294901760, %v17847_v11  ;;  %17860 = vst [vmem:[#allocation14_spill] sm:$0xff] %v14910_v49  ;;  %17862 = vst [vmem:[#allocation16_spill] sm:$0xff] %v14926_v59  ;;  %v17598_v41 = vand.u32 4294901760, %v14910_v49  ;;  %vm8621_vm8 = vcmask 123904  }
  0xa6   : > { %12085 = vmatpush1.bf16.msra.mxu1 %v14849_v12  ;;  %12155 = vmatprep.subr.bf16.mxu0 %v12154_v23  ;;  %v17853_v23 = vld [vmem:[#allocation34_spill] sm:$0xff]  ;;  %5461 = vst.msk [vmem:[#allocation2 + $0x9] sm:$0x1] %vm5459_vm0, %v17777_v38  ;;  %vm8629_vm9 = vcmask 130048   ;;  %vm10031_vm10 = vcmask 57344   ;;  %vm10026_vm11 = vcmask 58368  }
  0xa7   : > { %12087 = vmatprep.subr.bf16.mxu1 %v14857_v31  ;;  %v14885_v47 = vpack.c.bf16 %v17850_v62, %v17848_v28  ;;  %v17854_v18 = vand.u32 4294901760, %v17853_v23  ;;  %v198_v62 = vld [vmem:[#allocation8 + $0x60] sm:$0xff] }
  0xa9   : > { %12157 = vmatpush1.bf16.msra.mxu0 %v12156_v25  ;;  %v14891_v19 = vpack.c.bf16 %v17854_v18, %v17852_v58  ;;  %v17859_v25 = vand.u32 4294901760, %v17858_v26  ;;  %v203_v18 = vld [vmem:[#allocation8 + $0x88] sm:$0xff] }
  0xaa   : > { %12089 = vmatpush1.bf16.msra.mxu1 %v14867_v30  ;;  %12159 = vmatprep.subr.bf16.mxu0 %v12158_v42  ;;  %v17597_v42 = vand.u32 4294901760, %v14918_v54 }
  0xab   : > { %12091 = vmatprep.subr.bf16.mxu1 %v14875_v40  ;;  %v14903_v56 = vpack.c.bf16 %v17859_v25, %v17857_v4  ;;  %v202_v25 = vld [vmem:[#allocation8 + $0x80] sm:$0xff] }
  0xad   : > { %12161 = vmatpush1.bf16.msra.mxu0 %v12160_v48 }
  0xae   : > { %12093 = vmatpush1.bf16.msra.mxu1 %v14885_v47  ;;  %12163 = vmatprep.subr.bf16.mxu0 %v14659_v27 }
  0xaf   : > { %12095 = vmatprep.subr.bf16.mxu1 %v14891_v19 }
  0xb0   : > { %783 = vmatmul.mubr.f32.vlgmr.msra.gmra.mrb[0].mxu0 %v14896_v20 }
  0xb1   : > { %12165 = vmatpush1.bf16.msra.mxu0 %v14678_v63  ;;  %788 = vmatprep.mubr.f32.mxu0 %v17777_v38 }
  0xb2   : > { %12097 = vmatpush1.bf16.msra.mxu1 %v14903_v56  ;;  %12167 = vmatprep.subr.bf16.mxu0 %v14685_v7 }
  0xb4   : > { %791 = vmatmul.mubr.f32.gmra.mrb[2].mxu0 %v14910_v49  ;;  %v217_v49 = vld [vmem:[#allocation8 + $0xf8] sm:$0xff] }
  0xb5   : > { %12169 = vmatpush1.bf16.msra.mxu0 %v14691_v46  ;;  %796 = vmatprep.mubr.f32.mxu0 %v17777_v38 }
  0xb6   : > { %12171 = vmatprep.subr.bf16.mxu0 %v14794_v44 }
  0xb8   : > { %799 = vmatmul.mubr.f32.gmra.mrb[4].mxu0 %v14918_v54  ;;  %v215_v54 = vld [vmem:[#allocation8 + $0xe8] sm:$0xff] }
  0xb9   : > { %12173 = vmatpush1.bf16.msra.mxu0 %v14811_v32  ;;  %804 = vmatprep.mubr.f32.mxu0 %v17777_v38 }
  0xba   : > { %12175 = vmatprep.subr.bf16.mxu0 %v14819_v1 }
  0xbc   : > { %807 = vmatmul.mubr.f32.gmra.mrb[6].mxu0 %v14926_v59 }
  0xbd   : > { %12177 = vmatpush1.bf16.msra.mxu0 %v14831_v35  ;;  %909 = vmatprep.mubr.f32.mxu0 %v17777_v38 }
  0xbe   : > { %12179 = vmatprep.subr.bf16.mxu0 %v14839_v55 }
  0xc1   : > { %12181 = vmatpush1.bf16.msra.mxu0 %v14849_v12 }
  0xc2   : > { %12183 = vmatprep.subr.bf16.mxu0 %v14857_v31 }
  0xc5   : > { %12185 = vmatpush1.bf16.msra.mxu0 %v14867_v30 }
  0xc6   : > { %12187 = vmatprep.subr.bf16.mxu0 %v14875_v40 }
  0xc9   : > { %12189 = vmatpush1.bf16.msra.mxu0 %v14885_v47 }
  0xca   : > { %12191 = vmatprep.subr.bf16.mxu0 %v14891_v19 }
  0xcd   : > { %12193 = vmatpush1.bf16.msra.mxu0 %v14903_v56 }
  0xce   : > { %12195 = vmatprep.subr.bf16.mxu0 %v14697_v53  ;;  %v17596_v53 = vand.u32 4294901760, %v14926_v59 }
  0xd0   : > { %913 = vmatmul.mubr.f32.vlgmr.msra.gmra.mrb[0].mxu0 %v17599_v34 }
  0xd1   : > { %12197 = vmatpush1.bf16.msra.mxu0 %v14703_v9  ;;  %918 = vmatprep.mubr.f32.mxu0 %v17777_v38  ;;  %v186_v9 = vld [vmem:[#allocation8] sm:$0xff] }
  0xd2   : > { %12199 = vmatprep.subr.bf16.mxu0 %v14709_v14  ;;  %v188_v14 = vld [vmem:[#allocation8 + $0x10] sm:$0xff] }
  0xd4   : > { %922 = vmatmul.mubr.f32.gmra.mrb[2].mxu0 %v17598_v41 }
  0xd5   : > { %12201 = vmatpush1.bf16.msra.mxu0 %v14715_v16  ;;  %927 = vmatprep.mubr.f32.mxu0 %v17777_v38  ;;  %v191_v16 = vld [vmem:[#allocation8 + $0x28] sm:$0xff] }
  0xd6   : > { %12203 = vmatprep.subr.bf16.mxu0 %v14721_v29  ;;  %v193_v29 = vld [vmem:[#allocation8 + $0x38] sm:$0xff] }
  0xd8   : > { %931 = vmatmul.mubr.f32.gmra.mrb[4].mxu0 %v17597_v42 }
  0xd9   : > { %12205 = vmatpush1.bf16.msra.mxu0 %v14727_v0  ;;  %936 = vmatprep.mubr.f32.mxu0 %v17777_v38  ;;  %v1262_v0 = vand.u32 4294901760, %v186_v9 }
  0xda   : > { %12207 = vmatprep.subr.bf16.mxu0 %v14733_v5  ;;  %v1266_v5 = vand.u32 4294901760, %v188_v14 }
  0xdb   : > { %v15017_v52 = vsub.f32 %v186_v9, %v1262_v0  ;;  %v207_v9 = vld [vmem:[#allocation8 + $0xa8] sm:$0xff] }
  0xdc   : > { %940 = vmatmul.mubr.f32.gmra.mrb[6].mxu0 %v17596_v53  ;;  %v15020_v48 = vsub.f32 %v188_v14, %v1266_v5  ;;  %v209_v14 = vld [vmem:[#allocation8 + $0xb8] sm:$0xff] }
  0xdd   : > { %12209 = vmatpush1.bf16.msra.mxu0 %v14739_v57  ;;  %1106 = vmatprep.mubr.f32.mxu0 %v17777_v38 }
  0xde   : > { %12211 = vmatprep.subr.bf16.mxu0 %v14745_v3  ;;  %v1268_v3 = vand.u32 4294901760, %v191_v16 }
  0xe0   : > { %v15022_v11 = vsub.f32 %v191_v16, %v1268_v3 }
  0xe1   : > { %12213 = vmatpush1.bf16.msra.mxu0 %v14756_v8  ;;  %v1272_v8 = vand.u32 4294901760, %v193_v29 }
  0xe2   : > { %12215 = vmatprep.subr.bf16.mxu0 %v14762_v10  ;;  %v190_v10 = vld [vmem:[#allocation8 + $0x20] sm:$0xff] }
  0xe3   : > { %v15025_v50 = vsub.f32 %v193_v29, %v1272_v8 }
  0xe5   : > { %12217 = vmatpush1.bf16.msra.mxu0 %v14768_v17  ;;  %v192_v17 = vld [vmem:[#allocation8 + $0x30] sm:$0xff] }
  0xe6   : > { %12219 = vmatprep.subr.bf16.mxu0 %v14776_v21  ;;  %v195_v21 = vld [vmem:[#allocation8 + $0x48] sm:$0xff] }
  0xe9   : > { %12221 = vmatpush1.bf16.msra.mxu0 %v14782_v33  ;;  %v197_v33 = vld [vmem:[#allocation8 + $0x58] sm:$0xff] }
  0xea   : > { %12223 = vmatprep.subr.bf16.mxu0 %v14786_v43  ;;  %v194_v43 = vld [vmem:[#allocation8 + $0x40] sm:$0xff]  ;;  %v1280_v61 = vand.u32 4294901760, %v197_v33 }
  0xeb   : > { %v1278_v39 = vand.u32 4294901760, %v194_v43 }
  0xec   : > { %v15039_v26 = vsub.f32 %v197_v33, %v1280_v61  ;;  %v211_v33 = vld [vmem:[#allocation8 + $0xc8] sm:$0xff] }
  0xed   : > { %12225 = vmatpush1.bf16.msra.mxu0 %v14796_v13  ;;  %v15008_v13 = vpack.c.bf16 %v1266_v5, %v1262_v0  ;;  %v1292_v0 = vand.u32 4294901760, %v203_v18 }
  0xee   : > { %12227 = vmatprep.subr.bf16.mxu0 %v14659_v27  ;;  %v187_v27 = vld [vmem:[#allocation8 + $0x8] sm:$0xff] }
  0xef   : > { %17865 = vst [vmem:[#allocation20_spill] sm:$0xff] %v15008_v13 }
  0xf0   : > { %1108 = vmatmul.mubr.f32.vlgmr.msra.gmra.mrb[0].mxu0 %v14651_v24 }
  0xf1   : > { %12229 = vmatpush1.bf16.msra.mxu0 %v14678_v63  ;;  %1113 = vmatprep.mubr.f32.mxu0 %v17777_v38  ;;  %v189_v63 = vld [vmem:[#allocation8 + $0x18] sm:$0xff] }
  0xf2   : > { %12231 = vmatprep.subr.bf16.mxu0 %v14685_v7  ;;  %v1260_v7 = vand.u32 4294901760, %v187_v27 }
  0xf4   : > { %1115 = vmatmul.mubr.f32.gmra.mrb[2].mxu0 %v14672_v2 }
  0xf5   : > { %12233 = vmatpush1.bf16.msra.mxu0 %v14691_v46  ;;  %1120 = vmatprep.mubr.f32.mxu0 %v17777_v38  ;;  %v1264_v46 = vand.u32 4294901760, %v189_v63 }
  0xf6   : > { %12235 = vmatprep.subr.bf16.mxu0 %v14794_v44  ;;  %v196_v44 = vld [vmem:[#allocation8 + $0x50] sm:$0xff] }
  0xf7   : > { %v15005_v57 = vpack.c.bf16 %v1264_v46, %v1260_v7  ;;  %v15015_v6 = vsub.f32 %v189_v63, %v1264_v46  ;;  %v1286_v63 = vand.u32 4294901760, %v198_v62  ;;  %v204_v46 = vld [vmem:[#allocation8 + $0x90] sm:$0xff] }
  0xf8   : > { %1122 = vmatmul.mubr.f32.gmra.mrb[4].mxu0 %v14750_v51 }
  0xf9   : > { %12237 = vmatpush1.bf16.msra.mxu0 %v14811_v32  ;;  %1127 = vmatprep.mubr.f32.mxu0 %v17777_v38  ;;  %17864 = vst [vmem:[#allocation18_spill] sm:$0xff] %v15005_v57  ;;  %v1270_v32 = vand.u32 4294901760, %v190_v10 }
  0xfa   : > { %12239 = vmatprep.subr.bf16.mxu0 %v14819_v1  ;;  %v1274_v1 = vand.u32 4294901760, %v192_v17 }
  0xfb   : > { %v15029_v23 = vsub.f32 %v190_v10, %v1270_v32 }
  0xfc   : > { %1129 = vmatmul.mubr.f32.gmra.mrb[6].mxu0 %v14801_v45  ;;  %v15027_v58 = vpack.c.bf16 %v1274_v1, %v1270_v32  ;;  %v1298_v32 = vand.u32 4294901760, %v204_v46 }
  0xfd   : > { %12241 = vmatpush1.bf16.msra.mxu0 %v14831_v35  ;;  %1231 = vmatprep.mubr.f32.mxu0 %v17777_v38  ;;  %v199_v35 = vld [vmem:[#allocation8 + $0x68] sm:$0xff] }
  0xfe   : > { %12243 = vmatprep.subr.bf16.mxu0 %v14839_v55  ;;  %v201_v55 = vld [vmem:[#allocation8 + $0x78] sm:$0xff]  ;;  %v1284_v28 = vand.u32 4294901760, %v199_v35  ;;  %17867 = vst [vmem:[#allocation22_spill] sm:$0xff] %v15027_v58 }
  0xff   : > { %v1288_v22 = vand.u32 4294901760, %v201_v55 }
 0x100   : > { %v15051_v10 = vsub.f32 %v199_v35, %v1284_v28 }
 0x101   : > { %12245 = vmatpush1.bf16.msra.mxu0 %v14849_v12  ;;  %v15011_v12 = vsub.f32 %v187_v27, %v1260_v7  ;;  %v15043_v27 = vsub.f32 %v194_v43, %v1278_v39  ;;  %v15047_v29 = vpack.c.bf16 %v1288_v22, %v1284_v28  ;;  %v213_v43 = vld [vmem:[#allocation8 + $0xd8] sm:$0xff] }
 0x102   : > { %12247 = vmatprep.subr.bf16.mxu0 %v14857_v31  ;;  %v15013_v31 = vpack.c.bf16 %v1272_v8, %v1268_v3  ;;  %v206_v3 = vld [vmem:[#allocation8 + $0xa0] sm:$0xff]  ;;  %v208_v8 = vld [vmem:[#allocation8 + $0xb0] sm:$0xff]  ;;  %v1312_v53 = vand.u32 4294901760, %v213_v43 }
 0x103   : > { %17870 = vst [vmem:[#allocation25_spill] sm:$0xff] %v15047_v29 }
 0x104   : > { %17866 = vst [vmem:[#allocation21_spill] sm:$0xff] %v15013_v31 }
 0x105   : > { %12249 = vmatpush1.bf16.msra.mxu0 %v14867_v30  ;;  %v1276_v30 = vand.u32 4294901760, %v195_v21 }
 0x106   : > { %12251 = vmatprep.subr.bf16.mxu0 %v14875_v40  ;;  %v1282_v40 = vand.u32 4294901760, %v196_v44 }
 0x107   : > { %v15035_v36 = vpack.c.bf16 %v1280_v61, %v1276_v30  ;;  %v15037_v4 = vsub.f32 %v195_v21, %v1276_v30  ;;  %v15055_v21 = vsub.f32 %v198_v62, %v1286_v63  ;;  %v210_v30 = vld [vmem:[#allocation8 + $0xc0] sm:$0xff]  ;;  %v212_v61 = vld [vmem:[#allocation8 + $0xd0] sm:$0xff]  ;;  %v1308_v62 = vand.u32 4294901760, %v211_v33 }
 0x108   : > { %v15045_v16 = vsub.f32 %v196_v44, %v1282_v40  ;;  %v1294_v44 = vand.u32 4294901760, %v202_v25  ;;  %v1310_v41 = vand.u32 4294901760, %v210_v30  ;;  %v1314_v34 = vand.u32 4294901760, %v212_v61 }
 0x109   : > { %12253 = vmatpush1.bf16.msra.mxu0 %v14885_v47  ;;  %v200_v47 = vld [vmem:[#allocation8 + $0x70] sm:$0xff]  ;;  %17868 = vst [vmem:[#allocation23_spill] sm:$0xff] %v15035_v36  ;;  %v15094_v37 = vpack.c.bf16 %v1312_v53, %v1308_v62 }
 0x10a   : > { %12255 = vmatprep.subr.bf16.mxu0 %v14891_v19  ;;  %v205_v19 = vld [vmem:[#allocation8 + $0x98] sm:$0xff]  ;;  %v1290_v7 = vand.u32 4294901760, %v200_v47 }
 0x10b   : > { %v1296_v5 = vand.u32 4294901760, %v205_v19  ;;  %17876 = vst [vmem:[#allocation30_spill] sm:$0xff] %v15094_v37 }
 0x10c   : > { %v15061_v35 = vsub.f32 %v200_v47, %v1290_v7  ;;  %v15073_v47 = vand.u32 4294901760, %v14937_v60 }
 0x10d   : > { %12257 = vmatpush1.bf16.msra.mxu0 %v14903_v56  ;;  %v15041_v56 = vpack.c.bf16 %v1282_v40, %v1278_v39  ;;  %v15059_v39 = vpack.c.bf16 %v1290_v7, %v1286_v63  ;;  %v1306_v40 = vand.u32 4294901760, %v208_v8  ;;  %v15063_v28 = vpack.c.bf16 %v1296_v5, %v1292_v0 }
 0x10e   : > { %12259 = vmatprep.subr.bf16.mxu0 %v15005_v57  ;;  %v15069_v42 = vsub.f32 %v205_v19, %v1296_v5  ;;  %v15076_v63 = vpack.c.bf16 %v1298_v32, %v1294_v44  ;;  %v15080_v7 = vsub.f32 %v204_v46, %v1298_v32  ;;  %v15098_v46 = vsub.f32 %v213_v43, %v1312_v53  ;;  %v15114_v43 = vld [vmem:[#allocation8 + $0xf0] sm:$0xff] }
 0x10f   : > { %17869 = vst [vmem:[#allocation24_spill] sm:$0xff] %v15041_v56  ;;  %17871 = vst [vmem:[#allocation26_spill] sm:$0xff] %v15059_v39  ;;  %v15092_v20 = vsub.f32 %v208_v8, %v1306_v40  ;;  %v1316_v53 = vand.u32 4294901760, %v215_v54 }
 0x110   : > { %1233 = vmatmul.mubr.f32.vlgmr.msra.gmra.mrb[0].mxu0 %v14651_v24  ;;  %v15033_v24 = vsub.f32 %v192_v17, %v1274_v1  ;;  %v15053_v17 = vsub.f32 %v201_v55, %v1288_v22  ;;  %v1300_v1 = vand.u32 4294901760, %v207_v9  ;;  %v1302_v55 = vand.u32 4294901760, %v206_v3  ;;  %17872 = vst [vmem:[#allocation27_spill] sm:$0xff] %v15063_v28  ;;  %17873 = vst [vmem:[#allocation28_spill] sm:$0xff] %v15076_v63 }
 0x111   : > { %12261 = vmatpush1.bf16.msra.mxu0 %v15008_v13  ;;  %1238 = vmatprep.mubr.f32.mxu0 %v17777_v38  ;;  %v15065_v22 = vsub.f32 %v203_v18, %v1292_v0  ;;  %v15078_v18 = vsub.f32 %v202_v25, %v1294_v44  ;;  %v15096_v25 = vsub.f32 %v211_v33, %v1308_v62  ;;  %v17615_v44 = vand.u32 4294901760, %v15017_v52 }
 0x112   : > { %12263 = vmatprep.subr.bf16.mxu0 %v15013_v31  ;;  %v15084_v0 = vsub.f32 %v207_v9, %v1300_v1  ;;  %v15088_v5 = vpack.c.bf16 %v1306_v40, %v1302_v55  ;;  %v15090_v59 = vsub.f32 %v206_v3, %v1302_v55  ;;  %v15102_v9 = vpack.c.bf16 %v1314_v34, %v1310_v41 }
 0x113   : > { %v15111_v33 = vsub.f32 %v14937_v60, %v15073_v47  ;;  %v15122_v60 = vsub.f32 %v210_v30, %v1310_v41  ;;  %v15124_v62 = vsub.f32 %v212_v61, %v1314_v34  ;;  %v15128_v3 = vand.u32 4294901760, %v14939_v15  ;;  %v220_v30 = vld [vmem:[#allocation2 + $0x10] sm:$0xff] }
 0x114   : > { %1240 = vmatmul.mubr.f32.gmra.mrb[2].mxu0 %v14672_v2  ;;  %v1304_v2 = vand.u32 4294901760, %v209_v14  ;;  %17875 = vst [vmem:[#allocation29_spill] sm:$0xff] %v15088_v5  ;;  %17877 = vst [vmem:[#allocation31_spill] sm:$0xff] %v15102_v9  ;;  %v17880_v55 = vand.u32 4294901760, %v15015_v6  ;;  %v15142_v8 = vsub.f32 %v215_v54, %v1316_v53  ;;  %v1410_v32 = vsub.f32 %v15017_v52, %v17615_v44 }
 0x115   : > { %12265 = vmatpush1.bf16.msra.mxu0 %v15027_v58  ;;  %1245 = vmatprep.mubr.f32.mxu0 %v17777_v38  ;;  %17878 = vst [vmem:[#allocation32_spill] sm:$0xff] %v15111_v33  ;;  %v17882_v40 = vand.u32 4294901760, %v15020_v48  ;;  %v17884_v34 = vand.u32 4294901760, %v15025_v50  ;;  %v17645_v58 = vand.u32 4294901760, %v15045_v16 }
 0x116   : > { %12267 = vmatprep.subr.bf16.mxu0 %v15035_v36  ;;  %v15086_v19 = vsub.f32 %v209_v14, %v1304_v2  ;;  %v15104_v14 = vld [vmem:[#allocation8 + $0xe0] sm:$0xff]  ;;  %v1416_v41 = vsub.f32 %v15015_v6, %v17880_v55 }
 0x118   : > { %1247 = vmatmul.mubr.f32.gmra.mrb[4].mxu0 %v14750_v51  ;;  %v15082_v51 = vpack.c.bf16 %v1304_v2, %v1300_v1  ;;  %v17879_v1 = vand.u32 4294901760, %v15011_v12 }
 0x119   : > { %12269 = vmatpush1.bf16.msra.mxu0 %v15041_v56  ;;  %1252 = vmatprep.mubr.f32.mxu0 %v17777_v38  ;;  %v1417_v56 = vand.u32 4294901760, %v1416_v41  ;;  %v17889_v41 = vand.u32 4294901760, %v15037_v4 }
 0x11a   : > { %12271 = vmatprep.subr.bf16.mxu0 %v15047_v29  ;;  %17874 = vst [vmem:[#allocation37_spill] sm:$0xff] %v15082_v51  ;;  %v1404_v2 = vsub.f32 %v15011_v12, %v17879_v1  ;;  %v1422_v1 = vsub.f32 %v15020_v48, %v17882_v40  ;;  %v15167_v29 = vsub.f32 %v14939_v15, %v15128_v3  ;;  %v17642_v15 = vand.u32 4294901760, %v15043_v27 }
 0x11b   : > { %v1452_v57 = vsub.f32 %v15037_v4, %v17889_v41 }
 0x11c   : > { %1254 = vmatmul.mubr.f32.gmra.mrb[6].mxu0 %v14801_v45  ;;  %v1320_v45 = vand.u32 4294901760, %v217_v49  ;;  %v1423_v40 = vand.u32 4294901760, %v1422_v1  ;;  %v17892_v1 = vand.u32 4294901760, %v15114_v43 }
 0x11d   : > { %12273 = vmatpush1.bf16.msra.mxu0 %v15059_v39  ;;  %1356 = vmatprep.mubr.f32.mxu0 %v17777_v38 }
 0x11e   : > { %12275 = vmatprep.subr.bf16.mxu0 %v15063_v28  ;;  %v15140_v61 = vpack.c.bf16 %v1320_v45, %v1316_v53  ;;  %v17885_v28 = vand.u32 4294901760, %v15029_v23  ;;  %v17886_v53 = vand.u32 4294901760, %v15033_v24  ;;  %v15162_v39 = vsub.f32 %v217_v49, %v1320_v45  ;;  %v221_v49 = vld [vmem:[#allocation2 + $0x18] sm:$0xff] }
 0x11f   : > { %v1411_v45 = vand.u32 4294901760, %v1410_v32  ;;  %v17891_v32 = vand.u32 4294901760, %v15104_v14 }
 0x120   : > { %17881 = vst [vmem:[#allocation33_spill] sm:$0xff] %v15140_v61  ;;  %v1434_v54 = vsub.f32 %v15029_v23, %v17885_v28  ;;  %v1446_v44 = vsub.f32 %v15033_v24, %v17886_v53  ;;  %v17888_v28 = vand.u32 4294901760, %v15111_v33 }
 0x121   : > { %12277 = vmatpush1.bf16.msra.mxu0 %v15076_v63  ;;  %v17883_v63 = vand.u32 4294901760, %v15022_v11 }
 0x122   : > { %12279 = vmatprep.subr.bf16.mxu0 %v15082_v51  ;;  %v1440_v51 = vsub.f32 %v15025_v50, %v17884_v34  ;;  %v1405_v34 = vand.u32 4294901760, %v1404_v2  ;;  %v1360_v36 = vsub.f32 %v15111_v33, %v17888_v28  ;;  %v1447_v2 = vand.u32 4294901760, %v1446_v44 }
 0x123   : > { %v1428_v55 = vsub.f32 %v15022_v11, %v17883_v63  ;;  %v15169_v63 = vand.u32 4294901760, %v220_v30  ;;  %v1470_v28 = vsub.f32 %v15045_v16, %v17645_v58 }
 0x124   : > { %v1441_v13 = vand.u32 4294901760, %v1440_v51  ;;  %v15193_v51 = vpack.c.bf16 %v17892_v1, %v17891_v32  ;;  %v12290_v44 = vpack.c.bf16 %v1417_v56, %v1405_v34  ;;  %v12292_v56 = vpack.c.bf16 %v1423_v40, %v1411_v45 }
 0x125   : > { %17887 = vst [vmem:[#allocation34_spill] sm:$0xff] %v15169_v63  ;;  %12281 = vmatpush1.bf16.msra.mxu0 %v15088_v5  ;;  %v1429_v31 = vand.u32 4294901760, %v1428_v55  ;;  %v1435_v5 = vand.u32 4294901760, %v1434_v54  ;;  %v15184_v53 = vsub.f32 %v220_v30, %v15169_v63  ;;  %v1361_v55 = vand.u32 4294901760, %v1360_v36 }
 0x126   : > { %12283 = vmatprep.subr.bf16.mxu0 %v15094_v37  ;;  %v15186_v37 = vand.u32 4294901760, %v221_v49  ;;  %17893 = vst [vmem:[#allocation36_spill] sm:$0xff] %v15193_v51  ;;  %v17894_v54 = vand.u32 4294901760, %v15039_v26  ;;  %v1458_v30 = vsub.f32 %v15043_v27, %v17642_v15  ;;  %v17647_v1 = vand.u32 4294901760, %v15055_v21 }
 0x127   : > { %17890 = vst [vmem:[#allocation35_spill] sm:$0xff] %v15184_v53  ;;  %v12294_v36 = vpack.c.bf16 %v1441_v13, %v1429_v31  ;;  %v12296_v34 = vpack.c.bf16 %v1447_v2, %v1435_v5  ;;  %v17648_v15 = vand.u32 4294901760, %v15184_v53  ;;  %v17649_v32 = vand.u32 4294901760, %v15061_v35 }
 0x128   : > { %v1464_v41 = vsub.f32 %v15039_v26, %v17894_v54  ;;  %v1453_v54 = vand.u32 4294901760, %v1452_v57  ;;  %v15213_v63 = vsub.f32 %v221_v49, %v15186_v37  ;;  %v17650_v13 = vand.u32 4294901760, %v15065_v22 }
 0x129   : > { %12285 = vmatpush1.bf16.msra.mxu0 %v15102_v9  ;;  %v17646_v9 = vand.u32 4294901760, %v15051_v10  ;;  %v17653_v31 = vand.u32 4294901760, %v15069_v42  ;;  %v1459_v57 = vand.u32 4294901760, %v1458_v30  ;;  %v1471_v5 = vand.u32 4294901760, %v1470_v28 }
 0x12a   : > { %12287 = vmatprep.subr.bf16.mxu0 %v15140_v61  ;;  %v17895_v61 = vand.u32 4294901760, %v15167_v29  ;;  %v1465_v58 = vand.u32 4294901760, %v1464_v41  ;;  %v17896_v40 = vand.u32 4294901760, %v15053_v17  ;;  %v1482_v45 = vsub.f32 %v15055_v21, %v17647_v1 }
 0x12b   : > { %v17654_v2 = vand.u32 4294901760, %v15078_v18  ;;  %v1494_v1 = vsub.f32 %v15061_v35, %v17649_v32  ;;  %v1500_v41 = vsub.f32 %v15065_v22, %v17650_v13  ;;  %v17897_v32 = vand.u32 4294901760, %v15080_v7 }
 0x12c   : > { %v1371_v33 = vsub.f32 %v15167_v29, %v17895_v61  ;;  %v1476_v61 = vsub.f32 %v15051_v10, %v17646_v9  ;;  %v1488_v49 = vsub.f32 %v15053_v17, %v17896_v40  ;;  %v1382_v9 = vsub.f32 %v15184_v53, %v17648_v15 }
 0x12d   : > { %12289 = vmatpush1.bf16.msra.mxu0 %v15193_v51  ;;  %v12300_v15 = vpack.c.bf16 %v1471_v5, %v1459_v57  ;;  %v17898_v13 = vand.u32 4294901760, %v15084_v0  ;;  %v17900_v5 = vand.u32 4294901760, %v15213_v63 }
 0x12e   : > { %12291 = vmatprep.subr.bf16.mxu0 %v12290_v44  ;;  %v1372_v30 = vand.u32 4294901760, %v1371_v33  ;;  %v12298_v33 = vpack.c.bf16 %v1465_v58, %v1453_v54  ;;  %v1477_v28 = vand.u32 4294901760, %v1476_v61  ;;  %v1489_v40 = vand.u32 4294901760, %v1488_v49 }
 0x12f   : > { %v1518_v44 = vsub.f32 %v15080_v7, %v17897_v32  ;;  %v1524_v51 = vsub.f32 %v15084_v0, %v17898_v13  ;;  %v1383_v57 = vand.u32 4294901760, %v1382_v9  ;;  %v1393_v61 = vsub.f32 %v15213_v63, %v17900_v5 }
 0x130   : > { %1362 = vmatmul.mubr.f32.vlgmr.msra.gmra.mrb[0].mxu0 %v1361_v55  ;;  %v1512_v55 = vsub.f32 %v15069_v42, %v17653_v31  ;;  %v1483_v32 = vand.u32 4294901760, %v1482_v45  ;;  %v1495_v49 = vand.u32 4294901760, %v1494_v1  ;;  %v17901_v13 = vand.u32 4294901760, %v15104_v14 }
 0x131   : > { %12293 = vmatpush1.bf16.msra.mxu0 %v12292_v56  ;;  %1367 = vmatprep.mubr.f32.mxu0 %v17777_v38  ;;  %v1506_v56 = vsub.f32 %v15078_v18, %v17654_v2  ;;  %v1501_v2 = vand.u32 4294901760, %v1500_v41  ;;  %v17663_v9 = vand.u32 4294901760, %v15096_v25  ;;  %v17902_v5 = vand.u32 4294901760, %v15114_v43 }
 0x132   : > { %12295 = vmatprep.subr.bf16.mxu0 %v12294_v36  ;;  %v17899_v36 = vand.u32 4294901760, %v15086_v19  ;;  %v1513_v53 = vand.u32 4294901760, %v1512_v55  ;;  %v15267_v31 = vsub.f32 %v15104_v14, %v17901_v13  ;;  %v1519_v45 = vand.u32 4294901760, %v1518_v44 }
 0x133   : > { %v1507_v1 = vand.u32 4294901760, %v1506_v56  ;;  %v1525_v41 = vand.u32 4294901760, %v1524_v51  ;;  %v17903_v54 = vand.u32 4294901760, %v15090_v59  ;;  %v12304_v13 = vpack.c.bf16 %v1495_v49, %v1483_v32 }
 0x134   : > { %v1536_v58 = vsub.f32 %v15086_v19, %v17899_v36  ;;  %1373 = vmatmul.mubr.f32.gmra.mrb[2].mxu0 %v1372_v30  ;;  %v12302_v30 = vpack.c.bf16 %v1489_v40, %v1477_v28  ;;  %v1394_v40 = vand.u32 4294901760, %v1393_v61  ;;  %v12306_v36 = vpack.c.bf16 %v1513_v53, %v1501_v2 }
 0x135   : > { %12297 = vmatpush1.bf16.msra.mxu0 %v12296_v34  ;;  %1378 = vmatprep.mubr.f32.mxu0 %v17777_v38  ;;  %v15274_v34 = vsub.f32 %v15114_v43, %v17902_v5  ;;  %v1530_v14 = vsub.f32 %v15090_v59, %v17903_v54  ;;  %v17662_v43 = vand.u32 4294901760, %v15122_v60  ;;  %v17661_v56 = vand.u32 4294901760, %v15124_v62 }
 0x136   : > { %12299 = vmatprep.subr.bf16.mxu0 %v12298_v33  ;;  %v1537_v55 = vand.u32 4294901760, %v1536_v58  ;;  %v17904_v33 = vand.u32 4294901760, %v15092_v20  ;;  %v1548_v51 = vsub.f32 %v15096_v25, %v17663_v9  ;;  %v17905_v44 = vand.u32 4294901760, %v15098_v46 }
 0x137   : > { %v17657_v54 = vand.u32 4294901760, %v15142_v8  ;;  %v12308_v53 = vpack.c.bf16 %v1519_v45, %v1507_v1  ;;  %v1554_v32 = vsub.f32 %v15122_v60, %v17662_v43  ;;  %v1566_v49 = vsub.f32 %v15124_v62, %v17661_v56 }
 0x138   : > { %v1542_v28 = vsub.f32 %v15092_v20, %v17904_v33  ;;  %1384 = vmatmul.mubr.f32.gmra.mrb[4].mxu0 %v1383_v57  ;;  %v1560_v58 = vsub.f32 %v15098_v46, %v17905_v44  ;;  %v12310_v2 = vpack.c.bf16 %v1537_v55, %v1525_v41  ;;  %v1531_v57 = vand.u32 4294901760, %v1530_v14 }
 0x139   : > { %12301 = vmatpush1.bf16.msra.mxu0 %v12300_v15  ;;  %1389 = vmatprep.mubr.f32.mxu0 %v17777_v38  ;;  %v17658_v15 = vand.u32 4294901760, %v15162_v39  ;;  %v17659_v5 = vand.u32 4294901760, %v15274_v34  ;;  %v1549_v1 = vand.u32 4294901760, %v1548_v51  ;;  %v1572_v41 = vsub.f32 %v15142_v8, %v17657_v54 }
 0x13a   : > { %12303 = vmatprep.subr.bf16.mxu0 %v12302_v30  ;;  %v1543_v61 = vand.u32 4294901760, %v1542_v28  ;;  %v17660_v30 = vand.u32 4294901760, %v15267_v31  ;;  %v1561_v45 = vand.u32 4294901760, %v1560_v58  ;;  %v1555_v33 = vand.u32 4294901760, %v1554_v32 }
 0x13b   : > { %v1584_v55 = vsub.f32 %v15162_v39, %v17658_v15  ;;  %v1567_v28 = vand.u32 4294901760, %v1566_v49  ;;  %v1573_v51 = vand.u32 4294901760, %v1572_v41  ;;  %v12324_v32 = vpack.c.bf16 %v15020_v48, %v15017_v52 }
 0x13c   : > { %1395 = vmatmul.mubr.f32.gmra.mrb[6].mxu0 %v1394_v40  ;;  %v12312_v14 = vpack.c.bf16 %v1543_v61, %v1531_v57  ;;  %v1578_v40 = vsub.f32 %v15267_v31, %v17660_v30  ;;  %v12322_v61 = vpack.c.bf16 %v15015_v6, %v15011_v12  ;;  %v12328_v49 = vpack.c.bf16 %v15033_v24, %v15029_v23 }
 0x13d   : > { %12305 = vmatpush1.bf16.msra.mxu0 %v12304_v13  ;;  %1625 = vmatprep.mubr.f32.mxu0 %v17777_v38  ;;  %v12314_v13 = vpack.c.bf16 %v1561_v45, %v1549_v1  ;;  %v1585_v44 = vand.u32 4294901760, %v1584_v55  ;;  %v12316_v58 = vpack.c.bf16 %v1567_v28, %v1555_v33  ;;  %v12334_v1 = vpack.c.bf16 %v15053_v17, %v15051_v10  ;;  %v17906_v45 = vld [vmem:[#allocation34_spill] sm:$0xff] }
 0x13e   : > { %12307 = vmatprep.subr.bf16.mxu0 %v12306_v36  ;;  %v1590_v36 = vsub.f32 %v15274_v34, %v17659_v5  ;;  %v1579_v54 = vand.u32 4294901760, %v1578_v40  ;;  %v12336_v41 = vpack.c.bf16 %v15061_v35, %v15055_v21  ;;  %v12338_v55 = vpack.c.bf16 %v15069_v42, %v15065_v22  ;;  %v17926_v5 = vld [vmem:[#allocation36_spill] sm:$0xff] }
 0x13f   : > { %v12342_v33 = vpack.c.bf16 %v15086_v19, %v15084_v0  ;;  %v12344_v28 = vpack.c.bf16 %v15092_v20, %v15090_v59  ;;  %v12346_v40 = vpack.c.bf16 %v15098_v46, %v15096_v25  ;;  %v17927_v30 = vand.u32 4294901760, %v15017_v52 }
 0x140   : > { %v1591_v15 = vand.u32 4294901760, %v1590_v36  ;;  %v12348_v36 = vpack.c.bf16 %v15124_v62, %v15122_v60  ;;  %v17928_v56 = vand.u32 4294901760, %v15020_v48  ;;  %v17929_v9 = vand.u32 4294901760, %v15022_v11 }
 0x141   : > { %12309 = vmatpush1.bf16.msra.mxu0 %v12308_v53  ;;  %v12318_v53 = vpack.c.bf16 %v1585_v44, %v1573_v51  ;;  %v12352_v51 = vpack.c.bf16 %v15274_v34, %v15267_v31  ;;  %v17907_v44 = vld [vmem:[#allocation18_spill] sm:$0xff]  ;;  %v17934_v52 = vand.u32 4294901760, %v15037_v4  ;;  %v17935_v48 = vand.u32 4294901760, %v15039_v26 }
 0x142   : > { %12311 = vmatprep.subr.bf16.mxu0 %v12310_v2  ;;  %v12320_v57 = vpack.c.bf16 %v1591_v15, %v1579_v54  ;;  %v12326_v2 = vpack.c.bf16 %v15025_v50, %v15022_v11  ;;  %v12330_v54 = vpack.c.bf16 %v15039_v26, %v15037_v4  ;;  %v12332_v15 = vpack.c.bf16 %v15045_v16, %v15043_v27 }
 0x143   : > { %v12388_v43 = vpack.c.bf16 %v17928_v56, %v17927_v30  ;;  %v12394_v11 = vpack.c.bf16 %v17935_v48, %v17934_v52  ;;  %v17940_v56 = vand.u32 4294901760, %v15053_v17  ;;  %v17943_v30 = vand.u32 4294901760, %v15061_v35  ;;  %v2273_v52 = vld [vmem:[#allocation8 + $0x258] sm:$0xff]  ;;  %v2270_v48 = vld [vmem:[#allocation8 + $0x240] sm:$0xff] }
 0x144   : > { %v17946_v17 = vand.u32 4294901760, %v15213_v63  ;;  %v17949_v35 = vand.u32 4294901760, %v15084_v0  ;;  %v17956_v0 = vand.u32 4294901760, %v15124_v62 }
 0x145   : > { %12313 = vmatpush1.bf16.msra.mxu0 %v12312_v14  ;;  %v12340_v14 = vpack.c.bf16 %v15080_v7, %v15078_v18 }
 0x146   : > { %12315 = vmatprep.subr.bf16.mxu0 %v12314_v13  ;;  %v12350_v13 = vpack.c.bf16 %v15162_v39, %v15142_v8 }
 0x149   : > { %12317 = vmatpush1.bf16.msra.mxu0 %v12316_v58  ;;  %v17908_v58 = vld [vmem:[#allocation32_spill] sm:$0xff] }
 0x14a   : > { %12319 = vmatprep.subr.bf16.mxu0 %v12318_v53  ;;  %v17909_v53 = vld [vmem:[#allocation20_spill] sm:$0xff] }
 0x14d   : > { %12321 = vmatpush1.bf16.msra.mxu0 %v12320_v57  ;;  %v17910_v57 = vld [vmem:[#allocation21_spill] sm:$0xff] }
 0x14e   : > { %12323 = vmatprep.subr.bf16.mxu0 %v12322_v61  ;;  %v17911_v61 = vld [vmem:[#allocation22_spill] sm:$0xff] }
 0x150   : > { %1627 = vmatmul.mubr.f32.vlgmr.msra.gmra.mrb[0].mxu0 %v15073_v47 }
 0x151   : > { %12325 = vmatpush1.bf16.msra.mxu0 %v12324_v32  ;;  %1632 = vmatprep.mubr.f32.mxu0 %v17777_v38  ;;  %v17912_v32 = vld [vmem:[#allocation23_spill] sm:$0xff] }
 0x152   : > { %12327 = vmatprep.subr.bf16.mxu0 %v12326_v2  ;;  %v17913_v2 = vld [vmem:[#allocation35_spill] sm:$0xff] }
 0x153   : > { %v17941_v26 = vand.u32 4294901760, %v17913_v2 }
 0x154   : > { %1634 = vmatmul.mubr.f32.gmra.mrb[2].mxu0 %v15128_v3 }
 0x155   : > { %12329 = vmatpush1.bf16.msra.mxu0 %v12328_v49  ;;  %1639 = vmatprep.mubr.f32.mxu0 %v17777_v38  ;;  %v17914_v49 = vld [vmem:[#allocation24_spill] sm:$0xff] }
 0x156   : > { %12331 = vmatprep.subr.bf16.mxu0 %v12330_v54  ;;  %v17915_v54 = vld [vmem:[#allocation25_spill] sm:$0xff] }
 0x158   : > { %1641 = vmatmul.mubr.f32.gmra.mrb[4].mxu0 %v17906_v45 }
 0x159   : > { %12333 = vmatpush1.bf16.msra.mxu0 %v12332_v15  ;;  %1646 = vmatprep.mubr.f32.mxu0 %v17777_v38  ;;  %v17916_v15 = vld [vmem:[#allocation26_spill] sm:$0xff] }
 0x15a   : > { %12335 = vmatprep.subr.bf16.mxu0 %v12334_v1  ;;  %v17917_v1 = vld [vmem:[#allocation27_spill] sm:$0xff] }
 0x15c   : > { %1648 = vmatmul.mubr.f32.gmra.mrb[6].mxu0 %v15186_v37 }
 0x15d   : > { %12337 = vmatpush1.bf16.msra.mxu0 %v12336_v41  ;;  %1782 = vmatprep.mubr.f32.mxu0 %v17777_v38  ;;  %v17918_v41 = vld [vmem:[#allocation28_spill] sm:$0xff] }
 0x15e   : > { %12339 = vmatprep.subr.bf16.mxu0 %v12338_v55  ;;  %v17919_v55 = vld [vmem:[#allocation37_spill] sm:$0xff] }
 0x161   : > { %12341 = vmatpush1.bf16.msra.mxu0 %v12340_v14  ;;  %v17920_v14 = vld [vmem:[#allocation29_spill] sm:$0xff] }
 0x162   : > { %12343 = vmatprep.subr.bf16.mxu0 %v12342_v33  ;;  %v17921_v33 = vld [vmem:[#allocation30_spill] sm:$0xff] }
 0x165   : > { %12345 = vmatpush1.bf16.msra.mxu0 %v12344_v28  ;;  %v17922_v28 = vld [vmem:[#allocation31_spill] sm:$0xff] }
 0x166   : > { %12347 = vmatprep.subr.bf16.mxu0 %v12346_v40  ;;  %v17923_v40 = vld [vmem:[#allocation33_spill] sm:$0xff] }
 0x169   : > { %12349 = vmatpush1.bf16.msra.mxu0 %v12348_v36  ;;  %v17924_v36 = vand.u32 4294901760, %v15011_v12  ;;  %v17932_v12 = vand.u32 4294901760, %v15029_v23 }
 0x16a   : > { %12351 = vmatprep.subr.bf16.mxu0 %v12350_v13  ;;  %v17925_v13 = vand.u32 4294901760, %v15015_v6  ;;  %v17933_v6 = vand.u32 4294901760, %v15033_v24  ;;  %v17939_v24 = vand.u32 4294901760, %v15051_v10 }
 0x16c   : > { %v12398_v4 = vpack.c.bf16 %v17940_v56, %v17939_v24  ;;  %v2277_v24 = vld [vmem:[#allocation8 + $0x278] sm:$0xff] }
 0x16d   : > { %12353 = vmatpush1.bf16.msra.mxu0 %v12352_v51  ;;  %v12386_v51 = vpack.c.bf16 %v17925_v13, %v17924_v36  ;;  %v12392_v36 = vpack.c.bf16 %v17933_v6, %v17932_v12 }
 0x16e   : > { %12355 = vmatprep.subr.bf16.mxu0 %v17907_v44 }
 0x170   : > { %1785 = vmatmul.mubr.f32.vlgmr.msra.gmra.mrb[0].mxu0 %v17908_v58 }
 0x171   : > { %12357 = vmatpush1.bf16.msra.mxu0 %v17909_v53  ;;  %1790 = vmatprep.mubr.f32.mxu0 %v17777_v38 }
 0x172   : > { %12359 = vmatprep.subr.bf16.mxu0 %v17910_v57 }
 0x174   : > { %1793 = vmatmul.mubr.f32.gmra.mrb[2].mxu0 %v15167_v29 }
 0x175   : > { %12361 = vmatpush1.bf16.msra.mxu0 %v17911_v61  ;;  %1798 = vmatprep.mubr.f32.mxu0 %v17777_v38 }
 0x176   : > { %12363 = vmatprep.subr.bf16.mxu0 %v17912_v32 }
 0x178   : > { %1801 = vmatmul.mubr.f32.gmra.mrb[4].mxu0 %v17913_v2  ;;  %v17947_v2 = vand.u32 4294901760, %v15078_v18  ;;  %v17953_v18 = vand.u32 4294901760, %v15096_v25  ;;  %v17960_v25 = vand.u32 4294901760, %v15274_v34  ;;  %v2264_v34 = vld [vmem:[#allocation8 + $0x210] sm:$0xff] }
 0x179   : > { %12365 = vmatpush1.bf16.msra.mxu0 %v17914_v49  ;;  %1806 = vmatprep.mubr.f32.mxu0 %v17777_v38 }
 0x17a   : > { %12367 = vmatprep.subr.bf16.mxu0 %v17915_v54 }
 0x17c   : > { %1809 = vmatmul.mubr.f32.gmra.mrb[6].mxu0 %v15213_v63  ;;  %v17952_v63 = vand.u32 4294901760, %v15092_v20  ;;  %v17959_v20 = vand.u32 4294901760, %v15267_v31  ;;  %v2262_v31 = vld [vmem:[#allocation8 + $0x200] sm:$0xff] }
 0x17d   : > { %12369 = vmatpush1.bf16.msra.mxu0 %v17916_v15  ;;  %1911 = vmatprep.mubr.f32.mxu0 %v17777_v38 }
 0x17e   : > { %12371 = vmatprep.subr.bf16.mxu0 %v17917_v1 }
 0x181   : > { %12373 = vmatpush1.bf16.msra.mxu0 %v17918_v41 }
 0x182   : > { %12375 = vmatprep.subr.bf16.mxu0 %v17919_v55 }
 0x185   : > { %12377 = vmatpush1.bf16.msra.mxu0 %v17920_v14 }
 0x186   : > { %12379 = vmatprep.subr.bf16.mxu0 %v17921_v33  ;;  %v17930_v33 = vand.u32 4294901760, %v15025_v50  ;;  %v17936_v50 = vand.u32 4294901760, %v15167_v29  ;;  %v17942_v29 = vand.u32 4294901760, %v15055_v21 }
 0x189   : > { %12381 = vmatpush1.bf16.msra.mxu0 %v17922_v28  ;;  %v12390_v28 = vpack.c.bf16 %v17930_v33, %v17929_v9  ;;  %v17937_v9 = vand.u32 4294901760, %v15043_v27  ;;  %v12400_v27 = vpack.c.bf16 %v17943_v30, %v17942_v29  ;;  %v17948_v33 = vand.u32 4294901760, %v15080_v7  ;;  %v2274_v29 = vld [vmem:[#allocation8 + $0x260] sm:$0xff]  ;;  %v2276_v30 = vld [vmem:[#allocation8 + $0x270] sm:$0xff] }
 0x18a   : > { %12383 = vmatprep.subr.bf16.mxu0 %v17923_v40  ;;  %v17931_v40 = vand.u32 4294901760, %v17908_v58  ;;  %v17945_v58 = vand.u32 4294901760, %v15069_v42  ;;  %v17951_v42 = vand.u32 4294901760, %v15090_v59  ;;  %v17954_v7 = vand.u32 4294901760, %v15098_v46  ;;  %v2265_v46 = vld [vmem:[#allocation8 + $0x218] sm:$0xff] }
 0x18b   : > { %v12404_v21 = vpack.c.bf16 %v17948_v33, %v17947_v2  ;;  %v17958_v59 = vand.u32 4294901760, %v15162_v39  ;;  %v2263_v39 = vld [vmem:[#allocation8 + $0x208] sm:$0xff]  ;;  %v2302_v62 = vand.u32 4294901760, %v2265_v46  ;;  %v2326_v33 = vand.u32 4294901760, %v2277_v24 }
 0x18c   : > { %v12410_v13 = vpack.c.bf16 %v17954_v7, %v17953_v18 }
 0x18d   : > { %12385 = vmatpush1.bf16.msra.mxu0 %v17926_v5 }
 0x18e   : > { %12387 = vmatprep.subr.bf16.mxu0 %v12386_v51  ;;  %v17955_v51 = vand.u32 4294901760, %v15122_v60  ;;  %v2298_v60 = vand.u32 4294901760, %v2263_v39 }
 0x190   : > { %1915 = vmatmul.mubr.f32.vlgmr.msra.gmra.mrb[0].mxu0 %v17931_v40  ;;  %v12408_v40 = vpack.c.bf16 %v17952_v63, %v17951_v42  ;;  %v12412_v12 = vpack.c.bf16 %v17956_v0, %v17955_v51  ;;  %v2279_v42 = vld [vmem:[#allocation8 + $0x288] sm:$0xff]  ;;  %v2281_v63 = vld [vmem:[#allocation8 + $0x298] sm:$0xff] }
 0x191   : > { %12389 = vmatpush1.bf16.msra.mxu0 %v12388_v43  ;;  %1920 = vmatprep.mubr.f32.mxu0 %v17777_v38  ;;  %v17938_v43 = vand.u32 4294901760, %v15045_v16  ;;  %v17944_v16 = vand.u32 4294901760, %v15065_v22 }
 0x192   : > { %12391 = vmatprep.subr.bf16.mxu0 %v12390_v28  ;;  %v17950_v28 = vand.u32 4294901760, %v15086_v19  ;;  %v17957_v19 = vand.u32 4294901760, %v15142_v8  ;;  %v17961_v8 = vld [vmem:[#allocation30_spill] sm:$0xff] }
 0x193   : > { %v12396_v23 = vpack.c.bf16 %v17938_v43, %v17937_v9  ;;  %v12402_v10 = vpack.c.bf16 %v17945_v58, %v17944_v16  ;;  %v15487_v16 = vsub.f32 %v2265_v46, %v2302_v62  ;;  %v2316_v58 = vand.u32 4294901760, %v2270_v48 }
 0x194   : > { %1924 = vmatmul.mubr.f32.gmra.mrb[2].mxu0 %v17936_v50  ;;  %v12406_v22 = vpack.c.bf16 %v17950_v28, %v17949_v35  ;;  %v12414_v6 = vpack.c.bf16 %v17958_v59, %v17957_v19  ;;  %v2324_v28 = vand.u32 4294901760, %v2274_v29  ;;  %v2280_v59 = vld [vmem:[#allocation8 + $0x290] sm:$0xff]  ;;  %v2334_v46 = vand.u32 4294901760, %v2281_v63 }
 0x195   : > { %12393 = vmatpush1.bf16.msra.mxu0 %v12392_v36  ;;  %1929 = vmatprep.mubr.f32.mxu0 %v17777_v38  ;;  %v12416_v36 = vpack.c.bf16 %v17960_v25, %v17959_v20  ;;  %v15515_v19 = vsub.f32 %v2270_v48, %v2316_v58  ;;  %v2285_v20 = vld [vmem:[#allocation8 + $0x2b8] sm:$0xff] }
 0x196   : > { %12395 = vmatprep.subr.bf16.mxu0 %v12394_v11  ;;  %v2272_v11 = vld [vmem:[#allocation8 + $0x250] sm:$0xff] }
 0x198   : > { %1933 = vmatmul.mubr.f32.gmra.mrb[4].mxu0 %v17941_v26  ;;  %v2318_v26 = vand.u32 4294901760, %v2273_v52 }
 0x199   : > { %12397 = vmatpush1.bf16.msra.mxu0 %v12396_v23  ;;  %1938 = vmatprep.mubr.f32.mxu0 %v17777_v38  ;;  %v2275_v23 = vld [vmem:[#allocation8 + $0x268] sm:$0xff] }
 0x19a   : > { %12399 = vmatprep.subr.bf16.mxu0 %v12398_v4  ;;  %v2322_v2 = vand.u32 4294901760, %v2275_v23  ;;  %v15511_v0 = vsub.f32 %v2273_v52, %v2318_v26 }
 0x19c   : > { %1942 = vmatmul.mubr.f32.gmra.mrb[6].mxu0 %v17946_v17 }
 0x19d   : > { %12401 = vmatpush1.bf16.msra.mxu0 %v12400_v27  ;;  %2108 = vmatprep.mubr.f32.mxu0 %v17777_v38  ;;  %v15485_v27 = vsub.f32 %v2263_v39, %v2298_v60  ;;  %v2330_v39 = vand.u32 4294901760, %v2279_v42 }
 0x19e   : > { %12403 = vmatprep.subr.bf16.mxu0 %v12402_v10 }
 0x19f   : > { %v15535_v52 = vpack.c.bf16 %v2334_v46, %v2330_v39  ;;  %v15537_v48 = vsub.f32 %v2279_v42, %v2330_v39  ;;  %v2293_v42 = vld [vmem:[#allocation8 + $0x2f8] sm:$0xff] }
 0x1a1   : > { %12405 = vmatpush1.bf16.msra.mxu0 %v12404_v21  ;;  %17972 = vst [vmem:[#allocation24_spill] sm:$0xff] %v15535_v52 }
 0x1a2   : > { %12407 = vmatprep.subr.bf16.mxu0 %v12406_v22  ;;  %v2328_v22 = vand.u32 4294901760, %v2276_v30 }
 0x1a5   : > { %12409 = vmatpush1.bf16.msra.mxu0 %v12408_v40 }
 0x1a6   : > { %12411 = vmatprep.subr.bf16.mxu0 %v12410_v13  ;;  %v2278_v13 = vld [vmem:[#allocation8 + $0x280] sm:$0xff] }
 0x1a9   : > { %12413 = vmatpush1.bf16.msra.mxu0 %v12412_v12 }
 0x1aa   : > { %12415 = vmatprep.subr.bf16.mxu0 %v12414_v6  ;;  %v2283_v6 = vld [vmem:[#allocation8 + $0x2a8] sm:$0xff] }
 0x1ad   : > { %12417 = vmatpush1.bf16.msra.mxu0 %v12416_v36  ;;  %v15519_v36 = vpack.c.bf16 %v2326_v33, %v2322_v2 }
 0x1ae   : > { %12419 = vmatprep.subr.bf16.mxu0 %v17907_v44  ;;  %v2267_v44 = vld [vmem:[#allocation8 + $0x228] sm:$0xff] }
 0x1af   : > { %17970 = vst [vmem:[#allocation23_spill] sm:$0xff] %v15519_v36 }
 0x1b0   : > { %2110 = vmatmul.mubr.f32.vlgmr.msra.gmra.mrb[0].mxu0 %v15073_v47 }
 0x1b1   : > { %12421 = vmatpush1.bf16.msra.mxu0 %v17909_v53  ;;  %2115 = vmatprep.mubr.f32.mxu0 %v17777_v38  ;;  %v2269_v53 = vld [vmem:[#allocation8 + $0x238] sm:$0xff] }
 0x1b2   : > { %12423 = vmatprep.subr.bf16.mxu0 %v17910_v57  ;;  %v17962_v57 = vld [vmem:[#allocation31_spill] sm:$0xff] }
 0x1b4   : > { %2117 = vmatmul.mubr.f32.gmra.mrb[2].mxu0 %v15128_v3 }
 0x1b5   : > { %12425 = vmatpush1.bf16.msra.mxu0 %v17911_v61  ;;  %2122 = vmatprep.mubr.f32.mxu0 %v17777_v38  ;;  %v2300_v61 = vand.u32 4294901760, %v2262_v31 }
 0x1b6   : > { %12427 = vmatprep.subr.bf16.mxu0 %v17912_v32  ;;  %v2304_v32 = vand.u32 4294901760, %v2264_v34 }
 0x1b7   : > { %v15490_v10 = vsub.f32 %v2262_v31, %v2300_v61  ;;  %v15525_v31 = vsub.f32 %v2277_v24, %v2326_v33 }
 0x1b8   : > { %2124 = vmatmul.mubr.f32.gmra.mrb[4].mxu0 %v17906_v45  ;;  %v15480_v50 = vpack.c.bf16 %v2304_v32, %v2300_v61  ;;  %v15492_v17 = vsub.f32 %v2264_v34, %v2304_v32  ;;  %v15527_v34 = vpack.c.bf16 %v2328_v22, %v2324_v28  ;;  %v2336_v61 = vand.u32 4294901760, %v2280_v59 }
 0x1b9   : > { %12429 = vmatpush1.bf16.msra.mxu0 %v17914_v49  ;;  %2129 = vmatprep.mubr.f32.mxu0 %v17777_v38  ;;  %v17963_v49 = vld [vmem:[#allocation33_spill] sm:$0xff]  ;;  %v2338_v32 = vand.u32 4294901760, %v2283_v6 }
 0x1ba   : > { %12431 = vmatprep.subr.bf16.mxu0 %v17915_v54  ;;  %v15477_v54 = vpack.c.bf16 %v2302_v62, %v2298_v60  ;;  %17965 = vst [vmem:[#allocation18_spill] sm:$0xff] %v15480_v50  ;;  %v2284_v60 = vld [vmem:[#allocation8 + $0x2b0] sm:$0xff]  ;;  %v15523_v62 = vsub.f32 %v2275_v23, %v2322_v2  ;;  %17971 = vst [vmem:[#allocation35_spill] sm:$0xff] %v15527_v34 }
 0x1bc   : > { %2131 = vmatmul.mubr.f32.gmra.mrb[6].mxu0 %v15186_v37  ;;  %17964 = vst [vmem:[#allocation34_spill] sm:$0xff] %v15477_v54 }
 0x1bd   : > { %12433 = vmatpush1.bf16.msra.mxu0 %v17916_v15  ;;  %2233 = vmatprep.mubr.f32.mxu0 %v17777_v38  ;;  %v2306_v15 = vand.u32 4294901760, %v2267_v44 }
 0x1be   : > { %12435 = vmatprep.subr.bf16.mxu0 %v17917_v1  ;;  %v2310_v1 = vand.u32 4294901760, %v2269_v53 }
 0x1bf   : > { %v15495_v21 = vsub.f32 %v2267_v44, %v2306_v15  ;;  %v2287_v44 = vld [vmem:[#allocation8 + $0x2c8] sm:$0xff] }
 0x1c0   : > { %v15483_v56 = vpack.c.bf16 %v2310_v1, %v2306_v15  ;;  %v2288_v15 = vld [vmem:[#allocation8 + $0x2d0] sm:$0xff] }
 0x1c1   : > { %12437 = vmatpush1.bf16.msra.mxu0 %v17918_v41  ;;  %v2266_v41 = vld [vmem:[#allocation8 + $0x220] sm:$0xff]  ;;  %v2352_v24 = vand.u32 4294901760, %v2288_v15 }
 0x1c2   : > { %12439 = vmatprep.subr.bf16.mxu0 %v17919_v55  ;;  %v2268_v55 = vld [vmem:[#allocation8 + $0x230] sm:$0xff]  ;;  %v2308_v9 = vand.u32 4294901760, %v2266_v41  ;;  %17966 = vst [vmem:[#allocation32_spill] sm:$0xff] %v15483_v56 }
 0x1c3   : > { %v2312_v43 = vand.u32 4294901760, %v2268_v55 }
 0x1c4   : > { %v15503_v40 = vsub.f32 %v2266_v41, %v2308_v9  ;;  %v15533_v41 = vsub.f32 %v2276_v30, %v2328_v22  ;;  %v2291_v22 = vld [vmem:[#allocation8 + $0x2e8] sm:$0xff] }
 0x1c5   : > { %12441 = vmatpush1.bf16.msra.mxu0 %v17920_v14  ;;  %v2271_v14 = vld [vmem:[#allocation8 + $0x248] sm:$0xff]  ;;  %v15497_v35 = vpack.c.bf16 %v2312_v43, %v2308_v9  ;;  %v15505_v18 = vsub.f32 %v2268_v55, %v2312_v43  ;;  %v15541_v43 = vsub.f32 %v2281_v63, %v2334_v46 }
 0x1c6   : > { %12443 = vmatprep.subr.bf16.mxu0 %v17961_v8  ;;  %v2314_v4 = vand.u32 4294901760, %v2271_v14  ;;  %v2282_v8 = vld [vmem:[#allocation8 + $0x2a0] sm:$0xff] }
 0x1c7   : > { %17967 = vst [vmem:[#allocation20_spill] sm:$0xff] %v15497_v35  ;;  %v2340_v55 = vand.u32 4294901760, %v2282_v8 }
 0x1c8   : > { %v15507_v7 = vpack.c.bf16 %v2318_v26, %v2314_v4  ;;  %v15509_v51 = vsub.f32 %v2271_v14, %v2314_v4  ;;  %v2344_v14 = vand.u32 4294901760, %v2284_v60  ;;  %v17973_v4 = vld [vmem:[#allocation17_spill] sm:$0xff] }
 0x1c9   : > { %12445 = vmatpush1.bf16.msra.mxu0 %v17962_v57  ;;  %v2332_v57 = vand.u32 4294901760, %v2278_v13  ;;  %v15545_v26 = vand.u32 4294901760, %v17973_v4 }
 0x1ca   : > { %12447 = vmatprep.subr.bf16.mxu0 %v17963_v49  ;;  %17968 = vst [vmem:[#allocation21_spill] sm:$0xff] %v15507_v7  ;;  %v2286_v49 = vld [vmem:[#allocation8 + $0x2c0] sm:$0xff]  ;;  %v15560_v33 = vpack.c.bf16 %v2344_v14, %v2340_v55  ;;  %v15564_v63 = vsub.f32 %v2284_v60, %v2344_v14  ;;  %v17981_v14 = vand.u32 4294901760, %v15487_v16 }
 0x1cb   : > { %v2348_v23 = vand.u32 4294901760, %v2286_v49  ;;  %v15550_v30 = vsub.f32 %v2278_v13, %v2332_v57  ;;  %v15583_v60 = vsub.f32 %v17973_v4, %v15545_v26  ;;  %v15596_v4 = vsub.f32 %v2288_v15, %v2352_v24  ;;  %v2296_v15 = vld [vmem:[#allocation2 + $0x12] sm:$0xff] }
 0x1cc   : > { %17976 = vst [vmem:[#allocation27_spill] sm:$0xff] %v15560_v33 }
 0x1cd   : > { %12449 = vmatpush1.bf16.msra.mxu0 %v17926_v5  ;;  %v2320_v5 = vand.u32 4294901760, %v2272_v11  ;;  %17979 = vst [vmem:[#allocation29_spill] sm:$0xff] %v15583_v60 }
 0x1ce   : > { %12451 = vmatprep.subr.bf16.mxu0 %v15477_v54 }
 0x1cf   : > { %v15513_v12 = vpack.c.bf16 %v2320_v5, %v2316_v58  ;;  %v15517_v25 = vsub.f32 %v2272_v11, %v2320_v5  ;;  %v2346_v11 = vand.u32 4294901760, %v2287_v44  ;;  %v15552_v58 = vsub.f32 %v2280_v59, %v2336_v61 }
 0x1d0   : > { %2235 = vmatmul.mubr.f32.vlgmr.msra.gmra.mrb[0].mxu0 %v15073_v47  ;;  %v15501_v47 = vsub.f32 %v2269_v53, %v2310_v1  ;;  %v2289_v53 = vld [vmem:[#allocation8 + $0x2d8] sm:$0xff]  ;;  %v15531_v1 = vsub.f32 %v2274_v29, %v2324_v28  ;;  %v15548_v29 = vpack.c.bf16 %v2336_v61, %v2332_v57  ;;  %v15556_v5 = vsub.f32 %v2283_v6, %v2338_v32  ;;  %v15586_v57 = vld [vmem:[#allocation8 + $0x2f0] sm:$0xff] }
 0x1d1   : > { %12453 = vmatpush1.bf16.msra.mxu0 %v15480_v50  ;;  %2240 = vmatprep.mubr.f32.mxu0 %v17777_v38  ;;  %17969 = vst [vmem:[#allocation22_spill] sm:$0xff] %v15513_v12  ;;  %v2350_v9 = vand.u32 4294901760, %v2289_v53  ;;  %v15562_v28 = vsub.f32 %v2282_v8, %v2340_v55  ;;  %v15568_v13 = vsub.f32 %v2287_v44, %v2346_v11  ;;  %v2295_v44 = vld [vmem:[#allocation2 + $0xa] sm:$0xff]  ;;  %v17670_v61 = vand.u32 4294901760, %v15490_v10 }
 0x1d2   : > { %12455 = vmatprep.subr.bf16.mxu0 %v15483_v56  ;;  %17974 = vst [vmem:[#allocation25_spill] sm:$0xff] %v15548_v29  ;;  %v15574_v6 = vpack.c.bf16 %v2352_v24, %v2348_v23  ;;  %v15599_v46 = vand.u32 4294901760, %v2295_v44  ;;  %v17983_v8 = vand.u32 4294901760, %v15492_v17 }
 0x1d3   : > { %v15566_v39 = vpack.c.bf16 %v2350_v9, %v2346_v11  ;;  %v15570_v59 = vsub.f32 %v2289_v53, %v2350_v9  ;;  %v2358_v53 = vand.u32 4294901760, %v2293_v42  ;;  %v15594_v9 = vsub.f32 %v2286_v49, %v2348_v23 }
 0x1d4   : > { %2242 = vmatmul.mubr.f32.gmra.mrb[2].mxu0 %v15128_v3  ;;  %v2342_v3 = vand.u32 4294901760, %v2285_v20  ;;  %17978 = vst [vmem:[#allocation37_spill] sm:$0xff] %v15574_v6  ;;  %v2454_v11 = vsub.f32 %v15487_v16, %v17981_v14  ;;  %v17985_v49 = vand.u32 4294901760, %v15501_v47 }
 0x1d5   : > { %12457 = vmatpush1.bf16.msra.mxu0 %v15497_v35  ;;  %2247 = vmatprep.mubr.f32.mxu0 %v17777_v38  ;;  %17977 = vst [vmem:[#allocation28_spill] sm:$0xff] %v15566_v39 }
 0x1d6   : > { %12459 = vmatprep.subr.bf16.mxu0 %v15507_v7  ;;  %v15558_v2 = vsub.f32 %v2285_v20, %v2342_v3  ;;  %v15576_v20 = vld [vmem:[#allocation8 + $0x2e0] sm:$0xff]  ;;  %v17989_v7 = vand.u32 4294901760, %v15583_v60 }
 0x1d8   : > { %2249 = vmatmul.mubr.f32.gmra.mrb[4].mxu0 %v17906_v45  ;;  %v15554_v45 = vpack.c.bf16 %v2342_v3, %v2338_v32  ;;  %v17980_v3 = vand.u32 4294901760, %v15485_v27  ;;  %v2448_v32 = vsub.f32 %v15490_v10, %v17670_v61 }
 0x1d9   : > { %12461 = vmatpush1.bf16.msra.mxu0 %v15513_v12  ;;  %2254 = vmatprep.mubr.f32.mxu0 %v17777_v38  ;;  %v2455_v12 = vand.u32 4294901760, %v2454_v11  ;;  %v17990_v11 = vand.u32 4294901760, %v15509_v51 }
 0x1da   : > { %12463 = vmatprep.subr.bf16.mxu0 %v15519_v36  ;;  %17975 = vst [vmem:[#allocation26_spill] sm:$0xff] %v15554_v45  ;;  %v2442_v55 = vsub.f32 %v15485_v27, %v17980_v3  ;;  %v2460_v3 = vsub.f32 %v15492_v17, %v17983_v8  ;;  %v15637_v36 = vsub.f32 %v2295_v44, %v15599_v46  ;;  %v17697_v44 = vand.u32 4294901760, %v15515_v19 }
 0x1db   : > { %v17700_v8 = vand.u32 4294901760, %v15517_v25  ;;  %v2490_v54 = vsub.f32 %v15509_v51, %v17990_v11 }
 0x1dc   : > { %2256 = vmatmul.mubr.f32.gmra.mrb[6].mxu0 %v15186_v37  ;;  %v2354_v37 = vand.u32 4294901760, %v2291_v22 }
 0x1dd   : > { %12465 = vmatpush1.bf16.msra.mxu0 %v15527_v34  ;;  %2394 = vmatprep.mubr.f32.mxu0 %v17777_v38  ;;  %v15633_v34 = vsub.f32 %v2293_v42, %v2358_v53  ;;  %v2449_v42 = vand.u32 4294901760, %v2448_v32  ;;  %v17992_v32 = vand.u32 4294901760, %v15576_v20 }
 0x1de   : > { %12467 = vmatprep.subr.bf16.mxu0 %v15535_v52  ;;  %v15611_v23 = vpack.c.bf16 %v2358_v53, %v2354_v37  ;;  %v15613_v24 = vsub.f32 %v2291_v22, %v2354_v37  ;;  %v17986_v52 = vand.u32 4294901760, %v15503_v40  ;;  %v17987_v37 = vand.u32 4294901760, %v15505_v18 }
 0x1df   : > { %v2461_v53 = vand.u32 4294901760, %v2460_v3  ;;  %v17993_v3 = vand.u32 4294901760, %v15586_v57 }
 0x1e0   : > { %17982 = vst [vmem:[#allocation36_spill] sm:$0xff] %v15611_v23  ;;  %v2472_v22 = vsub.f32 %v15503_v40, %v17986_v52  ;;  %v2484_v61 = vsub.f32 %v15505_v18, %v17987_v37  ;;  %v2398_v52 = vsub.f32 %v15583_v60, %v17989_v7  ;;  %v2297_v37 = vld [vmem:[#allocation2 + $0x1a] sm:$0xff]  ;;  %v2508_v7 = vsub.f32 %v15517_v25, %v17700_v8 }
 0x1e1   : > { %12469 = vmatpush1.bf16.msra.mxu0 %v15548_v29  ;;  %v17984_v29 = vand.u32 4294901760, %v15495_v21 }
 0x1e2   : > { %12471 = vmatprep.subr.bf16.mxu0 %v15554_v45  ;;  %v2478_v45 = vsub.f32 %v15501_v47, %v17985_v49  ;;  %v2443_v49 = vand.u32 4294901760, %v2442_v55  ;;  %v2485_v55 = vand.u32 4294901760, %v2484_v61 }
 0x1e3   : > { %v2466_v14 = vsub.f32 %v15495_v21, %v17984_v29  ;;  %v15639_v29 = vand.u32 4294901760, %v2296_v15 }
 0x1e4   : > { %v2479_v50 = vand.u32 4294901760, %v2478_v45  ;;  %v15663_v45 = vpack.c.bf16 %v17993_v3, %v17992_v32  ;;  %v12482_v61 = vpack.c.bf16 %v2455_v12, %v2443_v49  ;;  %v12484_v12 = vpack.c.bf16 %v2461_v53, %v2449_v42 }
 0x1e5   : > { %17988 = vst [vmem:[#allocation30_spill] sm:$0xff] %v15639_v29  ;;  %12473 = vmatpush1.bf16.msra.mxu0 %v15560_v33  ;;  %v2467_v56 = vand.u32 4294901760, %v2466_v14  ;;  %v2473_v33 = vand.u32 4294901760, %v2472_v22  ;;  %v15654_v35 = vsub.f32 %v2296_v15, %v15639_v29  ;;  %v2399_v14 = vand.u32 4294901760, %v2398_v52 }
 0x1e6   : > { %12475 = vmatprep.subr.bf16.mxu0 %v15566_v39  ;;  %v15656_v39 = vand.u32 4294901760, %v2297_v37  ;;  %17994 = vst [vmem:[#allocation33_spill] sm:$0xff] %v15663_v45  ;;  %v17995_v22 = vand.u32 4294901760, %v15511_v0  ;;  %v2496_v15 = vsub.f32 %v15515_v19, %v17697_v44  ;;  %v17702_v3 = vand.u32 4294901760, %v15531_v1 }
 0x1e7   : > { %17991 = vst [vmem:[#allocation31_spill] sm:$0xff] %v15654_v35  ;;  %v12486_v49 = vpack.c.bf16 %v2479_v50, %v2467_v56  ;;  %v12488_v52 = vpack.c.bf16 %v2485_v55, %v2473_v33  ;;  %v17703_v44 = vand.u32 4294901760, %v15654_v35  ;;  %v17704_v32 = vand.u32 4294901760, %v15533_v41 }
 0x1e8   : > { %v2502_v11 = vsub.f32 %v15511_v0, %v17995_v22  ;;  %v2491_v22 = vand.u32 4294901760, %v2490_v54  ;;  %v15683_v29 = vsub.f32 %v2297_v37, %v15656_v39  ;;  %v17705_v50 = vand.u32 4294901760, %v15537_v48 }
 0x1e9   : > { %12477 = vmatpush1.bf16.msra.mxu0 %v15574_v6  ;;  %v17701_v6 = vand.u32 4294901760, %v15523_v62  ;;  %v17708_v56 = vand.u32 4294901760, %v15541_v43  ;;  %v2497_v54 = vand.u32 4294901760, %v2496_v15  ;;  %v2509_v33 = vand.u32 4294901760, %v2508_v7 }
 0x1ea   : > { %12479 = vmatprep.subr.bf16.mxu0 %v15611_v23  ;;  %v17996_v23 = vand.u32 4294901760, %v15637_v36  ;;  %v2503_v8 = vand.u32 4294901760, %v2502_v11  ;;  %v17997_v42 = vand.u32 4294901760, %v15525_v31  ;;  %v2520_v53 = vsub.f32 %v15531_v1, %v17702_v3 }
 0x1eb   : > { %v17709_v55 = vand.u32 4294901760, %v15550_v30  ;;  %v2532_v3 = vsub.f32 %v15533_v41, %v17704_v32  ;;  %v2538_v11 = vsub.f32 %v15537_v48, %v17705_v50  ;;  %v17998_v32 = vand.u32 4294901760, %v15552_v58 }
 0x1ec   : > { %v2409_v60 = vsub.f32 %v15637_v36, %v17996_v23  ;;  %v2514_v23 = vsub.f32 %v15523_v62, %v17701_v6  ;;  %v2526_v37 = vsub.f32 %v15525_v31, %v17997_v42  ;;  %v2420_v6 = vsub.f32 %v15654_v35, %v17703_v44 }
 0x1ed   : > { %12481 = vmatpush1.bf16.msra.mxu0 %v15663_v45  ;;  %v12492_v44 = vpack.c.bf16 %v2509_v33, %v2497_v54  ;;  %v17999_v50 = vand.u32 4294901760, %v15556_v5  ;;  %v18001_v33 = vand.u32 4294901760, %v15683_v29 }
 0x1ee   : > { %12483 = vmatprep.subr.bf16.mxu0 %v12482_v61  ;;  %v2410_v15 = vand.u32 4294901760, %v2409_v60  ;;  %v12490_v60 = vpack.c.bf16 %v2503_v8, %v2491_v22  ;;  %v2515_v7 = vand.u32 4294901760, %v2514_v23  ;;  %v2527_v42 = vand.u32 4294901760, %v2526_v37 }
 0x1ef   : > { %v2556_v61 = vsub.f32 %v15552_v58, %v17998_v32  ;;  %v2562_v45 = vsub.f32 %v15556_v5, %v17999_v50  ;;  %v2421_v54 = vand.u32 4294901760, %v2420_v6  ;;  %v2431_v23 = vsub.f32 %v15683_v29, %v18001_v33 }
 0x1f0   : > { %2400 = vmatmul.mubr.f32.vlgmr.msra.gmra.mrb[0].mxu0 %v2399_v14  ;;  %v2550_v14 = vsub.f32 %v15541_v43, %v17708_v56  ;;  %v2521_v32 = vand.u32 4294901760, %v2520_v53  ;;  %v2533_v37 = vand.u32 4294901760, %v2532_v3  ;;  %v18002_v50 = vand.u32 4294901760, %v15576_v20 }
 0x1f1   : > { %12485 = vmatpush1.bf16.msra.mxu0 %v12484_v12  ;;  %2405 = vmatprep.mubr.f32.mxu0 %v17777_v38  ;;  %v2544_v12 = vsub.f32 %v15550_v30, %v17709_v55  ;;  %v2539_v55 = vand.u32 4294901760, %v2538_v11  ;;  %v17718_v6 = vand.u32 4294901760, %v15568_v13  ;;  %v18003_v33 = vand.u32 4294901760, %v15586_v57 }
 0x1f2   : > { %12487 = vmatprep.subr.bf16.mxu0 %v12486_v49  ;;  %v18000_v49 = vand.u32 4294901760, %v15558_v2  ;;  %v2551_v35 = vand.u32 4294901760, %v2550_v14  ;;  %v15737_v56 = vsub.f32 %v15576_v20, %v18002_v50  ;;  %v2557_v53 = vand.u32 4294901760, %v2556_v61 }
 0x1f3   : > { %v2545_v3 = vand.u32 4294901760, %v2544_v12  ;;  %v2563_v11 = vand.u32 4294901760, %v2562_v45  ;;  %v18004_v22 = vand.u32 4294901760, %v15562_v28  ;;  %v12496_v50 = vpack.c.bf16 %v2533_v37, %v2521_v32 }
 0x1f4   : > { %v2574_v8 = vsub.f32 %v15558_v2, %v18000_v49  ;;  %2411 = vmatmul.mubr.f32.gmra.mrb[2].mxu0 %v2410_v15  ;;  %v12494_v15 = vpack.c.bf16 %v2527_v42, %v2515_v7  ;;  %v2432_v42 = vand.u32 4294901760, %v2431_v23  ;;  %v12498_v49 = vpack.c.bf16 %v2551_v35, %v2539_v55 }
 0x1f5   : > { %12489 = vmatpush1.bf16.msra.mxu0 %v12488_v52  ;;  %2416 = vmatprep.mubr.f32.mxu0 %v17777_v38  ;;  %v15744_v52 = vsub.f32 %v15586_v57, %v18003_v33  ;;  %v2568_v20 = vsub.f32 %v15562_v28, %v18004_v22  ;;  %v17717_v57 = vand.u32 4294901760, %v15594_v9  ;;  %v17716_v12 = vand.u32 4294901760, %v15596_v4 }
 0x1f6   : > { %12491 = vmatprep.subr.bf16.mxu0 %v12490_v60  ;;  %v2575_v14 = vand.u32 4294901760, %v2574_v8  ;;  %v18005_v60 = vand.u32 4294901760, %v15564_v63  ;;  %v2586_v45 = vsub.f32 %v15568_v13, %v17718_v6  ;;  %v18006_v61 = vand.u32 4294901760, %v15570_v59 }
 0x1f7   : > { %v17712_v22 = vand.u32 4294901760, %v15613_v24  ;;  %v12500_v35 = vpack.c.bf16 %v2557_v53, %v2545_v3  ;;  %v2592_v32 = vsub.f32 %v15594_v9, %v17717_v57  ;;  %v2604_v37 = vsub.f32 %v15596_v4, %v17716_v12 }
 0x1f8   : > { %v2580_v7 = vsub.f32 %v15564_v63, %v18005_v60  ;;  %2422 = vmatmul.mubr.f32.gmra.mrb[4].mxu0 %v2421_v54  ;;  %v2598_v8 = vsub.f32 %v15570_v59, %v18006_v61  ;;  %v12502_v55 = vpack.c.bf16 %v2575_v14, %v2563_v11  ;;  %v2569_v54 = vand.u32 4294901760, %v2568_v20 }
 0x1f9   : > { %12493 = vmatpush1.bf16.msra.mxu0 %v12492_v44  ;;  %2427 = vmatprep.mubr.f32.mxu0 %v17777_v38  ;;  %v17713_v44 = vand.u32 4294901760, %v15633_v34  ;;  %v17714_v33 = vand.u32 4294901760, %v15744_v52  ;;  %v2587_v3 = vand.u32 4294901760, %v2586_v45  ;;  %v2610_v11 = vsub.f32 %v15613_v24, %v17712_v22 }
 0x1fa   : > { %12495 = vmatprep.subr.bf16.mxu0 %v12494_v15  ;;  %v2581_v23 = vand.u32 4294901760, %v2580_v7  ;;  %v17715_v15 = vand.u32 4294901760, %v15737_v56  ;;  %v2599_v53 = vand.u32 4294901760, %v2598_v8  ;;  %v2593_v60 = vand.u32 4294901760, %v2592_v32  ;;  %v18007_v32 = vld [vmem:[#allocation19_spill] sm:$0xff] }
 0x1fb   : > { %v2622_v14 = vsub.f32 %v15633_v34, %v17713_v44  ;;  %v2605_v7 = vand.u32 4294901760, %v2604_v37  ;;  %v2611_v45 = vand.u32 4294901760, %v2610_v11  ;;  %v18008_v37 = vand.u32 4294901760, %v18007_v32  ;;  %v18009_v11 = vld [vmem:[#allocation14_spill] sm:$0xff] }
 0x1fc   : > { %2433 = vmatmul.mubr.f32.gmra.mrb[6].mxu0 %v2432_v42  ;;  %v12504_v20 = vpack.c.bf16 %v2581_v23, %v2569_v54  ;;  %v2616_v42 = vsub.f32 %v15737_v56, %v17715_v15  ;;  %v12514_v23 = vpack.c.bf16 %v15487_v16, %v15485_v27  ;;  %v18036_v15 = vand.u32 4294901760, %v15490_v10 }
 0x1fd   : > { %12497 = vmatpush1.bf16.msra.mxu0 %v12496_v50  ;;  %2663 = vmatprep.mubr.f32.mxu0 %v17777_v38  ;;  %v12506_v50 = vpack.c.bf16 %v2599_v53, %v2587_v3  ;;  %v2623_v61 = vand.u32 4294901760, %v2622_v14  ;;  %v12508_v8 = vpack.c.bf16 %v2605_v7, %v2593_v60  ;;  %v12518_v53 = vpack.c.bf16 %v15501_v47, %v15495_v21  ;;  %v18011_v60 = vld [vmem:[#allocation15_spill] sm:$0xff] }
 0x1fe   : > { %12499 = vmatprep.subr.bf16.mxu0 %v12498_v49  ;;  %v2628_v49 = vsub.f32 %v15744_v52, %v17714_v33  ;;  %v2617_v22 = vand.u32 4294901760, %v2616_v42  ;;  %v358_v33 = vsub.f32 %v18007_v32, %v18008_v37  ;;  %v12520_v14 = vpack.c.bf16 %v15505_v18, %v15503_v40 }
 0x1ff   : > { %v18012_v7 = vand.u32 4294901760, %v18011_v60  ;;  %v12530_v37 = vpack.c.bf16 %v15541_v43, %v15537_v48  ;;  %v18037_v12 = vand.u32 4294901760, %v15492_v17  ;;  %v18038_v6 = vand.u32 4294901760, %v15495_v21 }
 0x200   : > { %v2629_v44 = vand.u32 4294901760, %v2628_v49  ;;  %v359_v3 = vand.u32 4294901760, %v358_v33  ;;  %v12524_v49 = vpack.c.bf16 %v15517_v25, %v15515_v19 }
 0x201   : > { %12501 = vmatpush1.bf16.msra.mxu0 %v12500_v35  ;;  %v12510_v35 = vpack.c.bf16 %v2623_v61, %v2611_v45  ;;  %v380_v42 = vsub.f32 %v18011_v60, %v18012_v7  ;;  %v12526_v45 = vpack.c.bf16 %v15525_v31, %v15523_v62  ;;  %v18013_v61 = vld [vmem:[#allocation16_spill] sm:$0xff]  ;;  %v18018_v60 = vld [vmem:[#allocation18_spill] sm:$0xff]  ;;  %v12580_v57 = vpack.c.bf16 %v18037_v12, %v18036_v15 }
 0x202   : > { %12503 = vmatprep.subr.bf16.mxu0 %v12502_v55  ;;  %v12512_v54 = vpack.c.bf16 %v2629_v44, %v2617_v22  ;;  %v12516_v55 = vpack.c.bf16 %v15492_v17, %v15490_v10  ;;  %360 = vmatmul.mubr.f32.vlgmr.msra.gmra.mrb[0].mxu1 %v359_v3  ;;  %v18010_v22 = vand.u32 4294901760, %v18009_v11  ;;  %v12534_v3 = vpack.c.bf16 %v15558_v2, %v15556_v5  ;;  %v18019_v7 = vld [vmem:[#allocation32_spill] sm:$0xff] }
 0x203   : > { %365 = vmatprep.mubr.f32.mxu1 %v17777_v38  ;;  %v18043_v10 = vand.u32 4294901760, %v15509_v51  ;;  %v18044_v17 = vand.u32 4294901760, %v15511_v0  ;;  %v18049_v12 = vand.u32 4294901760, %v15525_v31  ;;  %v18052_v15 = vand.u32 4294901760, %v15533_v41 }
 0x204   : > { %v369_v44 = vsub.f32 %v18009_v11, %v18010_v22  ;;  %v12538_v11 = vpack.c.bf16 %v15570_v59, %v15568_v13  ;;  %v12540_v22 = vpack.c.bf16 %v15596_v4, %v15594_v9  ;;  %v18055_v31 = vand.u32 4294901760, %v15683_v29 }
 0x205   : > { %12505 = vmatpush1.bf16.msra.mxu0 %v12504_v20  ;;  %v12522_v20 = vpack.c.bf16 %v15511_v0, %v15509_v51  ;;  %v12586_v21 = vpack.c.bf16 %v18044_v17, %v18043_v10 }
 0x206   : > { %12507 = vmatprep.subr.bf16.mxu0 %v12506_v50  ;;  %v370_v33 = vand.u32 4294901760, %v369_v44  ;;  %v381_v50 = vand.u32 4294901760, %v380_v42  ;;  %v12542_v44 = vpack.c.bf16 %v15633_v34, %v15613_v24  ;;  %v18020_v42 = vld [vmem:[#allocation20_spill] sm:$0xff] }
 0x208   : > { %371 = vmatmul.mubr.f32.gmra.mrb[2].mxu1 %v370_v33  ;;  %v18016_v33 = vld [vmem:[#allocation34_spill] sm:$0xff] }
 0x209   : > { %12509 = vmatpush1.bf16.msra.mxu0 %v12508_v8  ;;  %376 = vmatprep.mubr.f32.mxu1 %v17777_v38  ;;  %v18014_v8 = vand.u32 4294901760, %v18013_v61 }
 0x20a   : > { %12511 = vmatprep.subr.bf16.mxu0 %v12510_v35 }
 0x20b   : > { %v391_v35 = vsub.f32 %v18013_v61, %v18014_v8  ;;  %v18024_v61 = vld [vmem:[#allocation23_spill] sm:$0xff] }
 0x20c   : > { %382 = vmatmul.mubr.f32.gmra.mrb[4].mxu1 %v381_v50  ;;  %v18022_v50 = vld [vmem:[#allocation31_spill] sm:$0xff] }
 0x20d   : > { %12513 = vmatpush1.bf16.msra.mxu0 %v12512_v54  ;;  %v18015_v54 = vld [vmem:[#allocation30_spill] sm:$0xff]  ;;  %387 = vmatprep.mubr.f32.mxu1 %v17777_v38  ;;  %v392_v32 = vand.u32 4294901760, %v391_v35  ;;  %v18025_v8 = vld [vmem:[#allocation35_spill] sm:$0xff]  ;;  %v18026_v35 = vld [vmem:[#allocation24_spill] sm:$0xff]  ;;  %v18050_v0 = vand.u32 4294901760, %v18022_v50 }
 0x20e   : > { %12515 = vmatprep.subr.bf16.mxu0 %v12514_v23  ;;  %v12528_v23 = vpack.c.bf16 %v15533_v41, %v15531_v1  ;;  %v18058_v41 = vand.u32 4294901760, %v15556_v5  ;;  %v18065_v5 = vand.u32 4294901760, %v15596_v4 }
 0x210   : > { %2665 = vmatmul.mubr.f32.vlgmr.msra.gmra.mrb[0].mxu0 %v15545_v26  ;;  %393 = vmatmul.mubr.f32.gmra.mrb[6].mxu1 %v392_v32  ;;  %v18028_v32 = vld [vmem:[#allocation26_spill] sm:$0xff] }
 0x211   : > { %12517 = vmatpush1.bf16.msra.mxu0 %v12516_v55  ;;  %2670 = vmatprep.mubr.f32.mxu0 %v17777_v38  ;;  %v12532_v55 = vpack.c.bf16 %v15552_v58, %v15550_v30 }
 0x212   : > { %12519 = vmatprep.subr.bf16.mxu0 %v12518_v53  ;;  %v12536_v53 = vpack.c.bf16 %v15564_v63, %v15562_v28 }
 0x214   : > { %2672 = vmatmul.mubr.f32.gmra.mrb[2].mxu0 %v15599_v46 }
 0x215   : > { %12521 = vmatpush1.bf16.msra.mxu0 %v12520_v14  ;;  %2677 = vmatprep.mubr.f32.mxu0 %v17777_v38  ;;  %v12544_v14 = vpack.c.bf16 %v15744_v52, %v15737_v56 }
 0x216   : > { %12523 = vmatprep.subr.bf16.mxu0 %v12522_v20  ;;  %v18017_v20 = vld [vmem:[#allocation29_spill] sm:$0xff] }
 0x218   : > { %2679 = vmatmul.mubr.f32.gmra.mrb[4].mxu0 %v18015_v54 }
 0x219   : > { %12525 = vmatpush1.bf16.msra.mxu0 %v12524_v49  ;;  %2684 = vmatprep.mubr.f32.mxu0 %v17777_v38  ;;  %v18021_v49 = vld [vmem:[#allocation21_spill] sm:$0xff] }
 0x21a   : > { %12527 = vmatprep.subr.bf16.mxu0 %v12526_v45  ;;  %v18023_v45 = vld [vmem:[#allocation22_spill] sm:$0xff] }
 0x21c   : > { %2686 = vmatmul.mubr.f32.gmra.mrb[6].mxu0 %v15656_v39 }
 0x21d   : > { %12529 = vmatpush1.bf16.msra.mxu0 %v12528_v23  ;;  %2820 = vmatprep.mubr.f32.mxu0 %v17777_v38  ;;  %v18027_v23 = vld [vmem:[#allocation25_spill] sm:$0xff] }
 0x21e   : > { %12531 = vmatprep.subr.bf16.mxu0 %v12530_v37  ;;  %v18029_v37 = vld [vmem:[#allocation27_spill] sm:$0xff] }
 0x221   : > { %12533 = vmatpush1.bf16.msra.mxu0 %v12532_v55  ;;  %v18030_v55 = vld [vmem:[#allocation28_spill] sm:$0xff] }
 0x222   : > { %12535 = vmatprep.subr.bf16.mxu0 %v12534_v3  ;;  %v18031_v3 = vld [vmem:[#allocation37_spill] sm:$0xff] }
 0x225   : > { %12537 = vmatpush1.bf16.msra.mxu0 %v12536_v53  ;;  %v18032_v53 = vld [vmem:[#allocation36_spill] sm:$0xff] }
 0x226   : > { %12539 = vmatprep.subr.bf16.mxu0 %v12538_v11  ;;  %v18033_v11 = vand.u32 4294901760, %v15485_v27  ;;  %v18041_v27 = vand.u32 4294901760, %v15503_v40 }
 0x229   : > { %12541 = vmatpush1.bf16.msra.mxu0 %v12540_v22  ;;  %v18034_v22 = vand.u32 4294901760, %v15487_v16  ;;  %v18042_v16 = vand.u32 4294901760, %v15505_v18  ;;  %v18048_v18 = vand.u32 4294901760, %v15523_v62 }
 0x22a   : > { %12543 = vmatprep.subr.bf16.mxu0 %v12542_v44 }
 0x22b   : > { %v12578_v44 = vpack.c.bf16 %v18034_v22, %v18033_v11  ;;  %v12584_v11 = vpack.c.bf16 %v18042_v16, %v18041_v27  ;;  %v12590_v51 = vpack.c.bf16 %v18049_v12, %v18048_v18  ;;  %v16000_v18 = vld [vmem:[#allocation8 + $0x480] sm:$0xff]  ;;  %v16002_v12 = vld [vmem:[#allocation8 + $0x490] sm:$0xff] }
 0x22d   : > { %12545 = vmatpush1.bf16.msra.mxu0 %v12544_v14  ;;  %v18035_v14 = vld [vmem:[#allocation33_spill] sm:$0xff] }
 0x22e   : > { %12547 = vmatprep.subr.bf16.mxu0 %v18016_v33 }
 0x230   : > { %2823 = vmatmul.mubr.f32.vlgmr.msra.gmra.mrb[0].mxu0 %v18017_v20 }
 0x231   : > { %12549 = vmatpush1.bf16.msra.mxu0 %v18018_v60  ;;  %2828 = vmatprep.mubr.f32.mxu0 %v17777_v38 }
 0x232   : > { %12551 = vmatprep.subr.bf16.mxu0 %v18019_v7 }
 0x234   : > { %2831 = vmatmul.mubr.f32.gmra.mrb[2].mxu0 %v15637_v36 }
 0x235   : > { %12553 = vmatpush1.bf16.msra.mxu0 %v18020_v42  ;;  %2836 = vmatprep.mubr.f32.mxu0 %v17777_v38 }
 0x236   : > { %12555 = vmatprep.subr.bf16.mxu0 %v18021_v49 }
 0x238   : > { %2839 = vmatmul.mubr.f32.gmra.mrb[4].mxu0 %v18022_v50  ;;  %v18056_v50 = vand.u32 4294901760, %v15550_v30  ;;  %v18062_v30 = vand.u32 4294901760, %v15568_v13  ;;  %v18069_v13 = vand.u32 4294901760, %v15744_v52  ;;  %v3352_v52 = vld [vmem:[#allocation8 + $0x410] sm:$0xff] }
 0x239   : > { %12557 = vmatpush1.bf16.msra.mxu0 %v18023_v45  ;;  %2844 = vmatprep.mubr.f32.mxu0 %v17777_v38 }
 0x23a   : > { %12559 = vmatprep.subr.bf16.mxu0 %v18024_v61 }
 0x23c   : > { %2847 = vmatmul.mubr.f32.gmra.mrb[6].mxu0 %v15683_v29  ;;  %v18061_v29 = vand.u32 4294901760, %v15564_v63  ;;  %v18068_v63 = vand.u32 4294901760, %v15737_v56  ;;  %v3351_v56 = vld [vmem:[#allocation8 + $0x400] sm:$0xff] }
 0x23d   : > { %12561 = vmatpush1.bf16.msra.mxu0 %v18025_v8  ;;  %2949 = vmatprep.mubr.f32.mxu0 %v17777_v38 }
 0x23e   : > { %12563 = vmatprep.subr.bf16.mxu0 %v18026_v35 }
 0x241   : > { %12565 = vmatpush1.bf16.msra.mxu0 %v18027_v23 }
 0x242   : > { %12567 = vmatprep.subr.bf16.mxu0 %v18028_v32 }
 0x245   : > { %12569 = vmatpush1.bf16.msra.mxu0 %v18029_v37 }
 0x246   : > { %12571 = vmatprep.subr.bf16.mxu0 %v18030_v55  ;;  %v18039_v55 = vand.u32 4294901760, %v15501_v47  ;;  %v18045_v47 = vand.u32 4294901760, %v15637_v36  ;;  %v18051_v36 = vand.u32 4294901760, %v15531_v1 }
 0x249   : > { %12573 = vmatpush1.bf16.msra.mxu0 %v18031_v3  ;;  %v12582_v3 = vpack.c.bf16 %v18039_v55, %v18038_v6  ;;  %v18046_v6 = vand.u32 4294901760, %v15515_v19  ;;  %v12592_v19 = vpack.c.bf16 %v18052_v15, %v18051_v36  ;;  %v18057_v55 = vand.u32 4294901760, %v15552_v58  ;;  %v16010_v15 = vld [vmem:[#allocation8 + $0x4a0] sm:$0xff] }
 0x24a   : > { %12575 = vmatprep.subr.bf16.mxu0 %v18032_v53  ;;  %v18040_v53 = vand.u32 4294901760, %v18017_v20  ;;  %v18054_v20 = vand.u32 4294901760, %v15541_v43  ;;  %v18060_v43 = vand.u32 4294901760, %v15562_v28  ;;  %v18063_v58 = vand.u32 4294901760, %v15570_v59  ;;  %v18071_v59 = vld [vmem:[#allocation37_spill] sm:$0xff] }
 0x24b   : > { %v12596_v1 = vpack.c.bf16 %v18057_v55, %v18056_v50  ;;  %v18067_v28 = vand.u32 4294901760, %v15633_v34  ;;  %v18070_v34 = vld [vmem:[#allocation28_spill] sm:$0xff] }
 0x24c   : > { %v12602_v22 = vpack.c.bf16 %v18063_v58, %v18062_v30  ;;  %v16022_v50 = vld [vmem:[#allocation8 + $0x4d0] sm:$0xff] }
 0x24d   : > { %12577 = vmatpush1.bf16.msra.mxu0 %v18035_v14 }
 0x24e   : > { %12579 = vmatprep.subr.bf16.mxu0 %v12578_v44  ;;  %v18064_v44 = vand.u32 4294901760, %v15594_v9  ;;  %v18072_v9 = vld [vmem:[#allocation36_spill] sm:$0xff] }
 0x250   : > { %2953 = vmatmul.mubr.f32.vlgmr.msra.gmra.mrb[0].mxu0 %v18040_v53  ;;  %v12600_v53 = vpack.c.bf16 %v18061_v29, %v18060_v43  ;;  %v12604_v27 = vpack.c.bf16 %v18065_v5, %v18064_v44  ;;  %v16038_v43 = vld [vmem:[#allocation8 + $0x4e0] sm:$0xff]  ;;  %v16040_v29 = vld [vmem:[#allocation8 + $0x4f0] sm:$0xff] }
 0x251   : > { %12581 = vmatpush1.bf16.msra.mxu0 %v12580_v57  ;;  %2958 = vmatprep.mubr.f32.mxu0 %v17777_v38  ;;  %v18047_v57 = vand.u32 4294901760, %v15517_v25  ;;  %v18053_v25 = vand.u32 4294901760, %v15537_v48  ;;  %v3415_v30 = vand.u32 4294901760, %v16040_v29 }
 0x252   : > { %12583 = vmatprep.subr.bf16.mxu0 %v12582_v3  ;;  %v18059_v3 = vand.u32 4294901760, %v15558_v2  ;;  %v18066_v2 = vand.u32 4294901760, %v15613_v24 }
 0x253   : > { %v12588_v40 = vpack.c.bf16 %v18047_v57, %v18046_v6  ;;  %v12594_v62 = vpack.c.bf16 %v18054_v20, %v18053_v25  ;;  %v3400_v25 = vand.u32 4294901760, %v16010_v15 }
 0x254   : > { %2962 = vmatmul.mubr.f32.gmra.mrb[2].mxu0 %v18045_v47  ;;  %v12598_v48 = vpack.c.bf16 %v18059_v3, %v18058_v41  ;;  %v12606_v16 = vpack.c.bf16 %v18067_v28, %v18066_v2  ;;  %v3358_v47 = vld [vmem:[#allocation8 + $0x470] sm:$0xff] }
 0x255   : > { %12585 = vmatpush1.bf16.msra.mxu0 %v12584_v11  ;;  %2967 = vmatprep.mubr.f32.mxu0 %v17777_v38  ;;  %v12608_v11 = vpack.c.bf16 %v18069_v13, %v18068_v63  ;;  %v3391_v57 = vand.u32 4294901760, %v3358_v47 }
 0x256   : > { %12587 = vmatprep.subr.bf16.mxu0 %v12586_v21  ;;  %v3357_v21 = vld [vmem:[#allocation8 + $0x460] sm:$0xff] }
 0x257   : > { %v3388_v6 = vand.u32 4294901760, %v3357_v21 }
 0x258   : > { %2971 = vmatmul.mubr.f32.gmra.mrb[4].mxu0 %v18050_v0  ;;  %v3397_v0 = vand.u32 4294901760, %v16002_v12 }
 0x259   : > { %12589 = vmatpush1.bf16.msra.mxu0 %v12588_v40  ;;  %2976 = vmatprep.mubr.f32.mxu0 %v17777_v38  ;;  %v15998_v40 = vpack.c.bf16 %v3391_v57, %v3388_v6 }
 0x25a   : > { %12591 = vmatprep.subr.bf16.mxu0 %v12590_v51  ;;  %v3394_v51 = vand.u32 4294901760, %v16000_v18 }
 0x25c   : > { %2980 = vmatmul.mubr.f32.gmra.mrb[6].mxu0 %v18055_v31  ;;  %v16008_v36 = vpack.c.bf16 %v3397_v0, %v3394_v51  ;;  %v16020_v31 = vld [vmem:[#allocation8 + $0x4c0] sm:$0xff] }
 0x25d   : > { %12593 = vmatpush1.bf16.msra.mxu0 %v12592_v19  ;;  %3146 = vmatprep.mubr.f32.mxu0 %v17777_v38  ;;  %v16012_v19 = vld [vmem:[#allocation8 + $0x4b0] sm:$0xff]  ;;  %v3406_v55 = vand.u32 4294901760, %v16020_v31 }
 0x25e   : > { %12595 = vmatprep.subr.bf16.mxu0 %v12594_v62  ;;  %v3403_v20 = vand.u32 4294901760, %v16012_v19 }
 0x260   : > { %v16018_v62 = vpack.c.bf16 %v3403_v20, %v3400_v25 }
 0x261   : > { %12597 = vmatpush1.bf16.msra.mxu0 %v12596_v1  ;;  %v3409_v1 = vand.u32 4294901760, %v16022_v50 }
 0x262   : > { %12599 = vmatprep.subr.bf16.mxu0 %v12598_v48 }
 0x263   : > { %v16032_v41 = vpack.c.bf16 %v3409_v1, %v3406_v55 }
 0x265   : > { %12601 = vmatpush1.bf16.msra.mxu0 %v12600_v53  ;;  %v3412_v53 = vand.u32 4294901760, %v16038_v43 }
 0x266   : > { %12603 = vmatprep.subr.bf16.mxu0 %v12602_v22 }
 0x267   : > { %v16052_v44 = vpack.c.bf16 %v3415_v30, %v3412_v53 }
 0x269   : > { %12605 = vmatpush1.bf16.msra.mxu0 %v12604_v27 }
 0x26a   : > { %12607 = vmatprep.subr.bf16.mxu0 %v12606_v16 }
 0x26d   : > { %12609 = vmatpush1.bf16.msra.mxu0 %v12608_v11 }
 0x26e   : > { %12611 = vmatprep.subr.bf16.mxu0 %v18016_v33 }
 0x270   : > { %3148 = vmatmul.mubr.f32.vlgmr.msra.gmra.mrb[0].mxu0 %v15545_v26 }
 0x271   : > { %12613 = vmatpush1.bf16.msra.mxu0 %v18018_v60  ;;  %3153 = vmatprep.mubr.f32.mxu0 %v17777_v38  ;;  %v3373_v60 = vand.u32 4294901760, %v3352_v52 }
 0x272   : > { %12615 = vmatprep.subr.bf16.mxu0 %v18019_v7 }
 0x273   : > { %v16036_v48 = vsub.f32 %v3352_v52, %v3373_v60 }
 0x274   : > { %3155 = vmatmul.mubr.f32.gmra.mrb[2].mxu0 %v15599_v46 }
 0x275   : > { %12617 = vmatpush1.bf16.msra.mxu0 %v18020_v42  ;;  %3160 = vmatprep.mubr.f32.mxu0 %v17777_v38  ;;  %v3353_v42 = vld [vmem:[#allocation8 + $0x420] sm:$0xff]  ;;  %v17733_v22 = vand.u32 4294901760, %v16036_v48 }
 0x276   : > { %12619 = vmatprep.subr.bf16.mxu0 %v18021_v49 }
 0x277   : > { %v3481_v27 = vsub.f32 %v16036_v48, %v17733_v22 }
 0x278   : > { %3162 = vmatmul.mubr.f32.gmra.mrb[4].mxu0 %v18015_v54 }
 0x279   : > { %12621 = vmatpush1.bf16.msra.mxu0 %v18023_v45  ;;  %3167 = vmatprep.mubr.f32.mxu0 %v17777_v38  ;;  %v3482_v63 = vand.u32 4294901760, %v3481_v27 }
 0x27a   : > { %12623 = vmatprep.subr.bf16.mxu0 %v18024_v61 }
 0x27c   : > { %3169 = vmatmul.mubr.f32.gmra.mrb[6].mxu0 %v15656_v39 }
 0x27d   : > { %12625 = vmatpush1.bf16.msra.mxu0 %v18025_v8  ;;  %3271 = vmatprep.mubr.f32.mxu0 %v17777_v38 }
 0x27e   : > { %12627 = vmatprep.subr.bf16.mxu0 %v18026_v35  ;;  %v3355_v35 = vld [vmem:[#allocation8 + $0x440] sm:$0xff] }
 0x281   : > { %12629 = vmatpush1.bf16.msra.mxu0 %v18027_v23  ;;  %v3356_v23 = vld [vmem:[#allocation8 + $0x450] sm:$0xff] }
 0x282   : > { %12631 = vmatprep.subr.bf16.mxu0 %v18028_v32 }
 0x285   : > { %12633 = vmatpush1.bf16.msra.mxu0 %v18029_v37  ;;  %v3382_v37 = vand.u32 4294901760, %v3355_v35 }
 0x286   : > { %12635 = vmatprep.subr.bf16.mxu0 %v18070_v34 }
 0x289   : > { %12637 = vmatpush1.bf16.msra.mxu0 %v18071_v59 }
 0x28a   : > { %12639 = vmatprep.subr.bf16.mxu0 %v18072_v9 }
 0x28d   : > { %12641 = vmatpush1.bf16.msra.mxu0 %v18035_v14  ;;  %v3385_v14 = vand.u32 4294901760, %v3356_v23 }
 0x28f   : > { %v15994_v17 = vpack.c.bf16 %v3385_v14, %v3382_v37  ;;  %v16078_v52 = vsub.f32 %v3356_v23, %v3385_v14  ;;  %v16091_v23 = vsub.f32 %v3357_v21, %v3388_v6  ;;  %v16106_v21 = vsub.f32 %v16002_v12, %v3397_v0 }
 0x290   : > { %3273 = vmatmul.mubr.f32.vlgmr.msra.gmra.mrb[0].mxu0 %v15545_v26  ;;  %v3370_v26 = vand.u32 4294901760, %v3351_v56  ;;  %v16120_v12 = vsub.f32 %v16010_v15, %v3400_v25  ;;  %v16145_v25 = vsub.f32 %v16022_v50, %v3409_v1  ;;  %v16162_v50 = vsub.f32 %v16040_v29, %v3415_v30 }
 0x291   : > { %3278 = vmatprep.mubr.f32.mxu0 %v17777_v38  ;;  %v17728_v27 = vand.u32 4294901760, %v16091_v23 }
 0x292   : > { %v16034_v3 = vsub.f32 %v3351_v56, %v3370_v26  ;;  %v16076_v56 = vsub.f32 %v3355_v35, %v3382_v37  ;;  %v16093_v37 = vsub.f32 %v3358_v47, %v3391_v57 }
 0x294   : > { %3280 = vmatmul.mubr.f32.gmra.mrb[2].mxu0 %v15599_v46  ;;  %v15978_v46 = vpack.c.bf16 %v3373_v60, %v3370_v26  ;;  %v17734_v58 = vand.u32 4294901760, %v16034_v3 }
 0x295   : > { %3285 = vmatprep.mubr.f32.mxu0 %v17777_v38 }
 0x296   : > { %12643 = vmatprep.subr.bf16.mxu1 %v15978_v46  ;;  %v3474_v5 = vsub.f32 %v16034_v3, %v17734_v58 }
 0x297   : > { %12645 = vmatpush3.bf16.msra.mxu1 %v15978_v46 }
 0x298   : > { %3287 = vmatmul.mubr.f32.gmra.mrb[4].mxu0 %v18015_v54  ;;  %v3354_v54 = vld [vmem:[#allocation8 + $0x430] sm:$0xff]  ;;  %v3475_v16 = vand.u32 4294901760, %v3474_v5 }
 0x299   : > { %3292 = vmatprep.mubr.f32.mxu0 %v17777_v38  ;;  %v3379_v45 = vand.u32 4294901760, %v3354_v54 }
 0x29a   : > { %v16068_v34 = vpack.c.bf16 %v3482_v63, %v3475_v16  ;;  %v17727_v16 = vand.u32 4294901760, %v16093_v37 }
 0x29b   : > { %v16062_v28 = vsub.f32 %v3354_v54, %v3379_v45  ;;  %v17729_v54 = vand.u32 4294901760, %v16078_v52 }
 0x29c   : > { %3294 = vmatmul.mubr.f32.gmra.mrb[6].mxu0 %v15656_v39  ;;  %v3376_v39 = vand.u32 4294901760, %v3353_v42  ;;  %v3523_v47 = vsub.f32 %v16093_v37, %v17727_v16 }
 0x29d   : > { %v17731_v11 = vand.u32 4294901760, %v16062_v28  ;;  %v3509_v35 = vsub.f32 %v16078_v52, %v17729_v54  ;;  %11416 = vmatprep.mubr.msk.f32.mxu0 %vm14075_vm2, %v17777_v38 }
 0x29e   : > { %v15986_v8 = vpack.c.bf16 %v3379_v45, %v3376_v39  ;;  %v16060_v2 = vsub.f32 %v3353_v42, %v3376_v39  ;;  %v17730_v42 = vand.u32 4294901760, %v16076_v56 }
 0x29f   : > { %v3495_v9 = vsub.f32 %v16062_v28, %v17731_v11  ;;  %v3510_v5 = vand.u32 4294901760, %v3509_v35 }
 0x2a0   : > { %12647 = vmatprep.subr.bf16.mxu1 %v15986_v8  ;;  %v17732_v13 = vand.u32 4294901760, %v16060_v2  ;;  %v3502_v45 = vsub.f32 %v16076_v56, %v17730_v42 }
 0x2a1   : > { %12649 = vmatpush3.bf16.msra.mxu1 %v15986_v8  ;;  %v3496_v60 = vand.u32 4294901760, %v3495_v9  ;;  %v16103_v9 = vsub.f32 %v16000_v18, %v3394_v51  ;;  %v16123_v51 = vsub.f32 %v16012_v19, %v3403_v20  ;;  %v16140_v19 = vsub.f32 %v16020_v31, %v3406_v55 }
 0x2a2   : > { %12651 = vmatprep.subr.bf16.mxu1 %v15994_v17  ;;  %v3488_v59 = vsub.f32 %v16060_v2, %v17732_v13  ;;  %v3503_v14 = vand.u32 4294901760, %v3502_v45  ;;  %v16157_v31 = vsub.f32 %v16038_v43, %v3412_v53 }
 0x2a3   : > { %v17726_v57 = vand.u32 4294901760, %v16103_v9 }
 0x2a4   : > { %v3489_v26 = vand.u32 4294901760, %v3488_v59  ;;  %v16097_v63 = vpack.c.bf16 %v3510_v5, %v3503_v14  ;;  %v3516_v59 = vsub.f32 %v16091_v23, %v17728_v27  ;;  %v17725_v5 = vand.u32 4294901760, %v16120_v12 }
 0x2a5   : > { %12653 = vmatpush3.bf16.msra.mxu1 %v15994_v17  ;;  %v3530_v45 = vsub.f32 %v16103_v9, %v17726_v57 }
 0x2a6   : > { %12655 = vmatprep.subr.bf16.mxu1 %v15998_v40  ;;  %v16083_v39 = vpack.c.bf16 %v3496_v60, %v3489_v26  ;;  %v3517_v6 = vand.u32 4294901760, %v3516_v59  ;;  %v17719_v26 = vand.u32 4294901760, %v16106_v21  ;;  %v3524_v60 = vand.u32 4294901760, %v3523_v47 }
 0x2a7   : > { %v3531_v35 = vand.u32 4294901760, %v3530_v45  ;;  %v17724_v59 = vand.u32 4294901760, %v16123_v51  ;;  %v17722_v45 = vand.u32 4294901760, %v16145_v25 }
 0x2a8   : > { %v3537_v18 = vsub.f32 %v16106_v21, %v17719_v26  ;;  %v16125_v0 = vpack.c.bf16 %v3524_v60, %v3517_v6  ;;  %v3544_v26 = vsub.f32 %v16120_v12, %v17725_v5  ;;  %v17723_v60 = vand.u32 4294901760, %v16140_v19 }
 0x2a9   : > { %12657 = vmatpush3.bf16.msra.mxu1 %v15998_v40  ;;  %v3551_v15 = vsub.f32 %v16123_v51, %v17724_v59  ;;  %v3565_v55 = vsub.f32 %v16145_v25, %v17722_v45 }
 0x2aa   : > { %12659 = vmatprep.subr.bf16.mxu1 %v16008_v36  ;;  %v3538_v14 = vand.u32 4294901760, %v3537_v18  ;;  %v3545_v20 = vand.u32 4294901760, %v3544_v26  ;;  %v17720_v26 = vand.u32 4294901760, %v16157_v31 }
 0x2ab   : > { %v3552_v6 = vand.u32 4294901760, %v3551_v15  ;;  %v3566_v15 = vand.u32 4294901760, %v3565_v55  ;;  %v16185_v55 = vpack.c.bf16 %v16062_v28, %v16060_v2 }
 0x2ac   : > { %v16129_v47 = vpack.c.bf16 %v3538_v14, %v3531_v35  ;;  %v3558_v35 = vsub.f32 %v16140_v19, %v17723_v60  ;;  %v17721_v14 = vand.u32 4294901760, %v16162_v50  ;;  %v3572_v43 = vsub.f32 %v16157_v31, %v17720_v26 }
 0x2ad   : > { %12661 = vmatpush3.bf16.msra.mxu1 %v16008_v36  ;;  %v16149_v18 = vpack.c.bf16 %v3552_v6, %v3545_v20  ;;  %v16189_v26 = vpack.c.bf16 %v16078_v52, %v16076_v56 }
 0x2ae   : > { %12663 = vmatprep.subr.bf16.mxu1 %v16018_v62  ;;  %v3559_v1 = vand.u32 4294901760, %v3558_v35  ;;  %v3579_v53 = vsub.f32 %v16162_v50, %v17721_v14  ;;  %v3573_v30 = vand.u32 4294901760, %v3572_v43  ;;  %v16181_v35 = vpack.c.bf16 %v16036_v48, %v16034_v3 }
 0x2af   : > { %v16201_v43 = vpack.c.bf16 %v16123_v51, %v16120_v12 }
 0x2b0   : > { %v16175_v29 = vpack.c.bf16 %v3566_v15, %v3559_v1  ;;  %v3580_v20 = vand.u32 4294901760, %v3579_v53  ;;  %v16193_v1 = vpack.c.bf16 %v16093_v37, %v16091_v23  ;;  %v16197_v15 = vpack.c.bf16 %v16106_v21, %v16103_v9 }
 0x2b1   : > { %12665 = vmatpush3.bf16.msra.mxu1 %v16018_v62  ;;  %v16205_v53 = vpack.c.bf16 %v16145_v25, %v16140_v19 }
 0x2b2   : > { %12667 = vmatprep.subr.bf16.mxu1 %v16032_v41  ;;  %v16177_v6 = vpack.c.bf16 %v3580_v20, %v3573_v30  ;;  %v16209_v30 = vpack.c.bf16 %v16162_v50, %v16157_v31 }
 0x2b5   : > { %12669 = vmatpush3.bf16.msra.mxu1 %v16032_v41 }
 0x2b6   : > { %12671 = vmatprep.subr.bf16.mxu1 %v16052_v44 }
 0x2b9   : > { %12673 = vmatpush3.bf16.msra.mxu1 %v16052_v44 }
 0x2ba   : > { %12675 = vmatprep.subr.bf16.mxu1 %v16068_v34 }
 0x2d5   : > { %v15970_v4 = vpop.f32.mrb[0].mxu1 }
 0x2d6   : > { %v15972_v24 = vpop.f32.mrb[1].mxu1 }
 0x2db   : > { %v15974_v33 = vpop.f32.mrb[2].mxu1 }
 0x2dc   : > { %v15976_v7 = vpop.f32.mrb[3].mxu1 }
 0x2df   : > { %v15980_v49 = vpop.f32.mrb[4].mxu1 }
 0x2e0   : > { %v15983_v61 = vpop.f32.mrb[5].mxu1 }
 0x2e3   : > { %v15988_v32 = vpop.f32.mrb[6].mxu1 }
 0x2e4   : > { %v15991_v10 = vpop.f32.mrb[7].mxu1 }
 0x363   : > { %v3274_v20 = vpop.f32.mrb[0].mxu0 }
 0x364   : > { %v13596_v14 = vadd.f32 %v3274_v20, %v15970_v4  ;;  %v3276_v45 = vpop.f32.mrb[1].mxu0 }
 0x365   : > { %v13597_v60 = vadd.f32 %v3276_v45, %v15972_v24 }
 0x367   : > { %v3308_v59 = vmax.f32 %v13596_v14, %v13597_v60  ;;  %v3281_v5 = vpop.f32.mrb[2].mxu0 }
 0x368   : > { %v13598_v57 = vadd.f32 %v3281_v5, %v15974_v33  ;;  %v3283_v16 = vpop.f32.mrb[3].mxu0 }
 0x369   : > { %v3312_v27 = vmax.f32 %v3308_v59, 0.0  ;;  %v13599_v54 = vadd.f32 %v3283_v16, %v15976_v7 }
 0x36b   : > { %3316 = vst [vmem:[#allocation4] sm:$0xff] %v3312_v27  ;;  %v3309_v42 = vmax.f32 %v13598_v57, %v13599_v54  ;;  %v3288_v11 = vpop.f32.mrb[4].mxu0 }
 0x36c   : > { %v13600_v13 = vadd.f32 %v3288_v11, %v15980_v49  ;;  %v3290_v22 = vpop.f32.mrb[5].mxu0 }
 0x36d   : > { %v3313_v58 = vmax.f32 %v3309_v42, 0.0  ;;  %v13601_v4 = vadd.f32 %v3290_v22, %v15983_v61 }
 0x36f   : > { %3317 = vst [vmem:[#allocation4 + $0x8] sm:$0xff] %v3313_v58  ;;  %v3310_v20 = vmax.f32 %v13600_v13, %v13601_v4  ;;  %v3295_v24 = vpop.f32.mrb[6].mxu0 }
 0x370   : > { %v13602_v60 = vadd.f32 %v3295_v24, %v15988_v32  ;;  %v3297_v45 = vpop.f32.mrb[7].mxu0  ;;  %v3337_v24 = vld [vmem:[#allocation8 + $0x340] sm:$0xff] }
 0x371   : > { %v3314_v33 = vmax.f32 %v3310_v20, 0.0  ;;  %v13603_v5 = vadd.f32 %v3297_v45, %v15991_v10 }
 0x373   : > { %3318 = vst [vmem:[#allocation4 + $0x10] sm:$0xff] %v3314_v33  ;;  %v3311_v7 = vmax.f32 %v13602_v60, %v13603_v5  ;;  %v3338_v60 = vld [vmem:[#allocation8 + $0x350] sm:$0xff]  ;;  %v4066_v33 = vand.u32 4294901760, %v3337_v24 }
 0x375   : > { %v3315_v27 = vmax.f32 %v3311_v7, 0.0  ;;  %v3339_v7 = vld [vmem:[#allocation8 + $0x360] sm:$0xff] }
 0x376   : > { %v3320_v54 = vld [vmem:[#allocation4] ss:$2 sm:$0xff]  ;;  %v3324_v16 = vld [vmem:[#allocation4 + $0x1] ss:$2 sm:$0xff] }
 0x377   : > { %v3327_v57 = vmax.f32 %v3320_v54, %v3324_v16  ;;  %3319 = vst [vmem:[#allocation4 + $0x18] sm:$0xff] %v3315_v27  ;;  %v3340_v27 = vld [vmem:[#allocation8 + $0x370] sm:$0xff]  ;;  %v4072_v16 = vand.u32 4294901760, %v3339_v7 }
 0x379   : > { %3331 = vst [vmem:[#allocation3 + $0x1] sm:$0xff] %v3327_v57  ;;  %v16219_v49 = vand.u32 4294901760, %v3327_v57 }
 0x37b   : > { %v3451_v61 = vsub.f32 %v3327_v57, %v16219_v49  ;;  %v3341_v57 = vld [vmem:[#allocation8 + $0x380] sm:$0xff] }
 0x37d   : > { %v3452_v58 = vand.u32 4294901760, %v3451_v61 }
 0x37e   : > { %v3322_v22 = vld [vmem:[#allocation4 + $0x10] ss:$2 sm:$0xff]  ;;  %v3326_v13 = vld [vmem:[#allocation4 + $0x11] ss:$2 sm:$0xff] }
 0x37f   : > { %v3328_v32 = vmax.f32 %v3322_v22, %v3326_v13  ;;  %v3453_v11 = vsub.f32 %v3451_v61, %v3452_v58  ;;  %v16348_v13 = vld [vmem:[#allocation8 + $0x3a0] sm:$0xff] }
 0x381   : > { %3332 = vst [vmem:[#allocation3 + $0x9] sm:$0xff] %v3328_v32  ;;  %v3454_v42 = vand.u32 4294901760, %v3453_v11  ;;  %v16222_v10 = vand.u32 4294901760, %v3328_v32  ;;  %v16353_v11 = vld [vmem:[#allocation8 + $0x3c0] sm:$0xff] }
 0x383   : > { %10802 = vmatprep.mubr.f32.mxu1 %v3454_v42  ;;  %v3461_v59 = vsub.f32 %v3328_v32, %v16222_v10  ;;  %v16350_v32 = vld [vmem:[#allocation8 + $0x3b0] sm:$0xff] }
 0x384   : > { %v16355_v42 = vld [vmem:[#allocation8 + $0x3d0] sm:$0xff] }
 0x385   : > { %v3462_v14 = vand.u32 4294901760, %v3461_v59 }
 0x387   : > { %v3463_v4 = vsub.f32 %v3461_v59, %v3462_v14 }
 0x389   : > { %v3464_v20 = vand.u32 4294901760, %v3463_v4 }
 0x38b   : > { %10803 = vmatmul.mubr.f32.vlgmr.msra.gmra.mrb[8].mxu1 %v3464_v20  ;;  %v4084_v20 = vand.u32 4294901760, %v16348_v13 }
 0x38c   : > { %12677 = vmatpush3.bf16.msra.mxu1 %v16068_v34  ;;  %10837 = vmatprep.mubr.f32.mxu1 %v16219_v49  ;;  %v18073_v34 = vand.u32 4294901760, %v16034_v3  ;;  %v18078_v3 = vand.u32 4294901760, %v16078_v52  ;;  %v18084_v52 = vand.u32 4294901760, %v16123_v51 }
 0x38d   : > { %12679 = vmatprep.subr.bf16.mxu1 %v16083_v39 }
 0x390   : > { %12681 = vmatpush3.bf16.msra.mxu1 %v16083_v39  ;;  %v18074_v39 = vand.u32 4294901760, %v16036_v48  ;;  %v18079_v48 = vand.u32 4294901760, %v16091_v23  ;;  %v18085_v23 = vand.u32 4294901760, %v16140_v19  ;;  %v3334_v19 = vld [vmem:[#allocation8 + $0x310] sm:$0xff] }
 0x391   : > { %12683 = vmatprep.subr.bf16.mxu1 %v16097_v63 }
 0x394   : > { %12685 = vmatpush3.bf16.msra.mxu1 %v16097_v63  ;;  %v12770_v63 = vpack.c.bf16 %v18074_v39, %v18073_v34  ;;  %v4087_v34 = vand.u32 4294901760, %v16350_v32  ;;  %v4090_v39 = vand.u32 4294901760, %v16353_v11 }
 0x395   : > { %12687 = vmatprep.subr.bf16.mxu1 %v16125_v0 }
 0x398   : > { %12689 = vmatpush3.bf16.msra.mxu1 %v16125_v0  ;;  %v18075_v0 = vand.u32 4294901760, %v16060_v2 }
 0x399   : > { %12691 = vmatprep.subr.bf16.mxu1 %v16129_v47 }
 0x39c   : > { %12693 = vmatpush3.bf16.msra.mxu1 %v16129_v47  ;;  %v18076_v47 = vand.u32 4294901760, %v16062_v28  ;;  %v18081_v28 = vand.u32 4294901760, %v16103_v9  ;;  %v18087_v9 = vand.u32 4294901760, %v16157_v31  ;;  %v3335_v31 = vld [vmem:[#allocation8 + $0x320] sm:$0xff] }
 0x39d   : > { %12695 = vmatprep.subr.bf16.mxu1 %v16149_v18 }
 0x3a0   : > { %12697 = vmatpush3.bf16.msra.mxu1 %v16149_v18  ;;  %v12774_v18 = vpack.c.bf16 %v18076_v47, %v18075_v0 }
 0x3a1   : > { %12699 = vmatprep.subr.bf16.mxu1 %v16175_v29 }
 0x3a4   : > { %12701 = vmatpush3.bf16.msra.mxu1 %v16175_v29 }
 0x3a5   : > { %12703 = vmatprep.subr.bf16.mxu1 %v16177_v6 }
 0x3a8   : > { %12705 = vmatpush3.bf16.msra.mxu1 %v16177_v6  ;;  %v18080_v6 = vand.u32 4294901760, %v16093_v37  ;;  %v18086_v37 = vand.u32 4294901760, %v16145_v25  ;;  %v4057_v25 = vand.u32 4294901760, %v3334_v19 }
 0x3a9   : > { %12707 = vmatprep.subr.bf16.mxu1 %v16181_v35 }
 0x3aa   : > { %v12782_v2 = vpack.c.bf16 %v18080_v6, %v18079_v48 }
 0x3ab   : > { %10838 = vmatmul.mubr.f32.vlgmr.msra.gmra.mrb[8].mxu1 %v16222_v10 }
 0x3ac   : > { %12709 = vmatpush3.bf16.msra.mxu1 %v16181_v35  ;;  %10872 = vmatprep.mubr.f32.mxu1 %v3451_v61  ;;  %v18082_v35 = vand.u32 4294901760, %v16106_v21  ;;  %v18088_v21 = vand.u32 4294901760, %v16162_v50  ;;  %v3336_v50 = vld [vmem:[#allocation8 + $0x330] sm:$0xff] }
 0x3ad   : > { %12711 = vmatprep.subr.bf16.mxu1 %v16185_v55 }
 0x3b0   : > { %12713 = vmatpush3.bf16.msra.mxu1 %v16185_v55  ;;  %v12786_v55 = vpack.c.bf16 %v18082_v35, %v18081_v28 }
 0x3b1   : > { %12715 = vmatprep.subr.bf16.mxu1 %v16189_v26 }
 0x3b4   : > { %12717 = vmatpush3.bf16.msra.mxu1 %v16189_v26  ;;  %v18077_v26 = vand.u32 4294901760, %v16076_v56  ;;  %v18083_v56 = vand.u32 4294901760, %v16120_v12  ;;  %v3349_v12 = vld [vmem:[#allocation3] sm:$0xff] }
 0x3b5   : > { %12719 = vmatprep.subr.bf16.mxu1 %v16193_v1  ;;  %v16318_v51 = vand.u32 4294901760, %v3349_v12  ;;  %7123 = vst.msk [vmem:[#allocation3] sm:$0x1] %vm7122_vm1, %v17777_v38 }
 0x3b6   : > { %v12778_v29 = vpack.c.bf16 %v18078_v3, %v18077_v26  ;;  %v16374_v26 = vpack.c.bf16 %v4087_v34, %v4084_v20  ;;  %v16376_v3 = vld [vmem:[#allocation8 + $0x3e0] sm:$0xff] }
 0x3b7   : > { %v4096_v35 = vand.u32 4294901760, %v16376_v3 }
 0x3b8   : > { %12721 = vmatpush3.bf16.msra.mxu1 %v16193_v1  ;;  %v12790_v1 = vpack.c.bf16 %v18084_v52, %v18083_v56 }
 0x3b9   : > { %12723 = vmatprep.subr.bf16.mxu1 %v16197_v15 }
 0x3bc   : > { %12725 = vmatpush3.bf16.msra.mxu1 %v16197_v15  ;;  %v12794_v15 = vpack.c.bf16 %v18086_v37, %v18085_v23  ;;  %v16405_v37 = vsub.f32 %v3337_v24, %v4066_v33 }
 0x3bd   : > { %12727 = vmatprep.subr.bf16.mxu1 %v16201_v43 }
 0x3c0   : > { %12729 = vmatpush3.bf16.msra.mxu1 %v16201_v43  ;;  %v12798_v43 = vpack.c.bf16 %v18088_v21, %v18087_v9  ;;  %v16409_v9 = vsub.f32 %v3339_v7, %v4072_v16 }
 0x3c1   : > { %12731 = vmatprep.subr.bf16.mxu1 %v16205_v53 }
 0x3c4   : > { %12733 = vmatpush3.bf16.msra.mxu1 %v16205_v53  ;;  %v4060_v53 = vand.u32 4294901760, %v3335_v31 }
 0x3c5   : > { %12735 = vmatprep.subr.bf16.mxu1 %v16209_v30 }
 0x3c6   : > { %v16380_v48 = vsub.f32 %v3335_v31, %v4060_v53  ;;  %v4185_v31 = vand.u32 4294901760, %v16405_v37 }
 0x3c8   : > { %12737 = vmatpush3.bf16.msra.mxu1 %v16209_v30  ;;  %v4063_v30 = vand.u32 4294901760, %v3336_v50  ;;  %v4186_v7 = vsub.f32 %v16405_v37, %v4185_v31 }
 0x3c9   : > { %12739 = vmatprep.subr.bf16.mxu1 %v15978_v46 }
 0x3ca   : > { %v16337_v45 = vpack.c.bf16 %v4063_v30, %v4060_v53  ;;  %v16382_v6 = vsub.f32 %v3336_v50, %v4063_v30  ;;  %v4199_v53 = vand.u32 4294901760, %v16409_v9 }
 0x3cb   : > { %10873 = vmatmul.mubr.f32.vlgmr.msra.gmra.mrb[8].mxu1 %v3461_v59 }
 0x3cc   : > { %12741 = vmatpush3.bf16.msra.mxu1 %v15978_v46  ;;  %10907 = vmatprep.mubr.f32.mxu1 %v3452_v58  ;;  %v4078_v58 = vand.u32 4294901760, %v3341_v57  ;;  %v4178_v23 = vand.u32 4294901760, %v16382_v6 }
 0x3cd   : > { %12743 = vmatprep.subr.bf16.mxu1 %v15986_v8 }
 0x3d0   : > { %12745 = vmatpush3.bf16.msra.mxu1 %v15986_v8 }
 0x3d1   : > { %12747 = vmatprep.subr.bf16.mxu1 %v15994_v17 }
 0x3d4   : > { %12749 = vmatpush3.bf16.msra.mxu1 %v15994_v17 }
 0x3d5   : > { %12751 = vmatprep.subr.bf16.mxu1 %v15998_v40 }
 0x3d8   : > { %12753 = vmatpush3.bf16.msra.mxu1 %v15998_v40 }
 0x3d9   : > { %12755 = vmatprep.subr.bf16.mxu1 %v16008_v36 }
 0x3dc   : > { %12757 = vmatpush3.bf16.msra.mxu1 %v16008_v36 }
 0x3dd   : > { %12759 = vmatprep.subr.bf16.mxu1 %v16018_v62 }
 0x3e0   : > { %12761 = vmatpush3.bf16.msra.mxu1 %v16018_v62 }
 0x3e1   : > { %12763 = vmatprep.subr.bf16.mxu1 %v16032_v41 }
 0x3e4   : > { %12765 = vmatpush3.bf16.msra.mxu1 %v16032_v41 }
 0x3e5   : > { %12767 = vmatprep.subr.bf16.mxu1 %v16052_v44 }
 0x3e8   : > { %12769 = vmatpush3.bf16.msra.mxu1 %v16052_v44 }
 0x3e9   : > { %12771 = vmatprep.subr.bf16.mxu1 %v12770_v63 }
 0x3eb   : > { %10908 = vmatmul.mubr.f32.vlgmr.msra.gmra.mrb[8].mxu1 %v3462_v14  ;;  %v16359_v14 = vsub.f32 %v3334_v19, %v4057_v25 }
 0x3ec   : > { %12773 = vmatpush3.bf16.msra.mxu1 %v12770_v63  ;;  %10942 = vmatprep.mubr.f32.mxu1 %v16219_v49  ;;  %v4093_v63 = vand.u32 4294901760, %v16355_v42 }
 0x3ed   : > { %12775 = vmatprep.subr.bf16.mxu1 %v12774_v18 }
 0x3f0   : > { %12777 = vmatpush3.bf16.msra.mxu1 %v12774_v18  ;;  %v4164_v18 = vand.u32 4294901760, %v16359_v14 }
 0x3f1   : > { %12779 = vmatprep.subr.bf16.mxu1 %v12778_v29 }
 0x3f2   : > { %v4165_v52 = vsub.f32 %v16359_v14, %v4164_v18 }
 0x3f4   : > { %12781 = vmatpush3.bf16.msra.mxu1 %v12778_v29  ;;  %v16378_v29 = vld [vmem:[#allocation8 + $0x3f0] sm:$0xff]  ;;  %v4166_v19 = vand.u32 4294901760, %v4165_v52  ;;  %v4187_v52 = vand.u32 4294901760, %v4186_v7 }
 0x3f5   : > { %12783 = vmatprep.subr.bf16.mxu1 %v12782_v2 }
 0x3f8   : > { %12785 = vmatpush3.bf16.msra.mxu1 %v12782_v2  ;;  %v16388_v2 = vpack.c.bf16 %v4093_v63, %v4090_v39 }
 0x3f9   : > { %12787 = vmatprep.subr.bf16.mxu1 %v12786_v55 }
 0x3fc   : > { %12789 = vmatpush3.bf16.msra.mxu1 %v12786_v55  ;;  %v4099_v55 = vand.u32 4294901760, %v16378_v29 }
 0x3fd   : > { %12791 = vmatprep.subr.bf16.mxu1 %v12790_v1 }
 0x400   : > { %12793 = vmatpush3.bf16.msra.mxu1 %v12790_v1  ;;  %v4171_v1 = vand.u32 4294901760, %v16380_v48 }
 0x401   : > { %12795 = vmatprep.subr.bf16.mxu1 %v12794_v15 }
 0x404   : > { %12797 = vmatpush3.bf16.msra.mxu1 %v12794_v15 }
 0x405   : > { %12799 = vmatprep.subr.bf16.mxu1 %v12798_v43 }
 0x408   : > { %12801 = vmatpush3.bf16.msra.mxu1 %v12798_v43  ;;  %v16418_v43 = vpack.c.bf16 %v4099_v55, %v4096_v35 }
 0x409   : > { %12803 = vmatprep.subr.bf16.mxu1 %v15978_v46 }
 0x40b   : > { %10943 = vmatmul.mubr.f32.vlgmr.msra.gmra.mrb[8].mxu1 %v16222_v10 }
 0x40c   : > { %12805 = vmatpush3.bf16.msra.mxu1 %v15978_v46  ;;  %10977 = vmatprep.mubr.f32.mxu1 %v16219_v49  ;;  %v3333_v46 = vld [vmem:[#allocation8 + $0x300] sm:$0xff]  ;;  %v3342_v49 = vld [vmem:[#allocation8 + $0x390] sm:$0xff] }
 0x40d   : > { %12807 = vmatprep.subr.bf16.mxu1 %v15986_v8  ;;  %v4081_v22 = vand.u32 4294901760, %v3342_v49 }
 0x40f   : > { %v16362_v4 = vpack.c.bf16 %v4081_v22, %v4078_v58 }
 0x410   : > { %12809 = vmatpush3.bf16.msra.mxu1 %v15986_v8  ;;  %v16323_v8 = vsub.f32 %v3349_v12, %v16318_v51 }
 0x411   : > { %12811 = vmatprep.subr.bf16.mxu1 %v15994_v17 }
 0x414   : > { %12813 = vmatpush3.bf16.msra.mxu1 %v15994_v17  ;;  %v4054_v17 = vand.u32 4294901760, %v3333_v46 }
 0x415   : > { %12815 = vmatprep.subr.bf16.mxu1 %v15998_v40 }
 0x416   : > { %v16357_v59 = vsub.f32 %v3333_v46, %v4054_v17 }
 0x418   : > { %12817 = vmatpush3.bf16.msra.mxu1 %v15998_v40  ;;  %v4136_v40 = vand.u32 4294901760, %v16323_v8  ;;  %v4157_v47 = vand.u32 4294901760, %v16357_v59 }
 0x419   : > { %12819 = vmatprep.subr.bf16.mxu1 %v16008_v36 }
 0x41a   : > { %v4158_v56 = vsub.f32 %v16357_v59, %v4157_v47 }
 0x41c   : > { %12821 = vmatpush3.bf16.msra.mxu1 %v16008_v36  ;;  %v16330_v36 = vpack.c.bf16 %v4057_v25, %v4054_v17  ;;  %v4159_v46 = vand.u32 4294901760, %v4158_v56  ;;  %v4172_v17 = vsub.f32 %v16380_v48, %v4171_v1  ;;  %v4179_v25 = vsub.f32 %v16382_v6, %v4178_v23 }
 0x41d   : > { %12823 = vmatprep.subr.bf16.mxu1 %v16018_v62 }
 0x41e   : > { %v12866_v24 = vpack.c.bf16 %v4166_v19, %v4159_v46 }
 0x420   : > { %12825 = vmatpush3.bf16.msra.mxu1 %v16018_v62  ;;  %v4137_v62 = vsub.f32 %v16323_v8, %v4136_v40 }
 0x421   : > { %12827 = vmatprep.subr.bf16.mxu1 %v16032_v41 }
 0x422   : > { %v4138_v5 = vand.u32 4294901760, %v4137_v62 }
 0x424   : > { %12829 = vmatpush3.bf16.msra.mxu1 %v16032_v41  ;;  %v4069_v41 = vand.u32 4294901760, %v3338_v60 }
 0x425   : > { %12831 = vmatprep.subr.bf16.mxu1 %v16052_v44 }
 0x426   : > { %v16342_v54 = vpack.c.bf16 %v4069_v41, %v4066_v33  ;;  %v16407_v15 = vsub.f32 %v3338_v60, %v4069_v41  ;;  %v16436_v60 = vsub.f32 %v3341_v57, %v4078_v58  ;;  %v16438_v33 = vsub.f32 %v3342_v49, %v4081_v22 }
 0x427   : > { %v4173_v41 = vand.u32 4294901760, %v4172_v17  ;;  %v16457_v58 = vsub.f32 %v16348_v13, %v4084_v20  ;;  %v16460_v22 = vsub.f32 %v16350_v32, %v4087_v34 }
 0x428   : > { %12833 = vmatpush3.bf16.msra.mxu1 %v16052_v44  ;;  %v4075_v44 = vand.u32 4294901760, %v3340_v27  ;;  %v4192_v50 = vand.u32 4294901760, %v16407_v15  ;;  %v4213_v57 = vand.u32 4294901760, %v16436_v60  ;;  %v4220_v49 = vand.u32 4294901760, %v16438_v33 }
 0x429   : > { %12835 = vmatprep.subr.bf16.mxu1 %v16330_v36  ;;  %v4227_v32 = vand.u32 4294901760, %v16457_v58  ;;  %v4234_v20 = vand.u32 4294901760, %v16460_v22 }
 0x42a   : > { %v16346_v61 = vpack.c.bf16 %v4075_v44, %v4072_v16  ;;  %v16411_v21 = vsub.f32 %v3340_v27, %v4075_v44  ;;  %v4193_v27 = vsub.f32 %v16407_v15, %v4192_v50  ;;  %v4200_v16 = vsub.f32 %v16409_v9, %v4199_v53 }
 0x42b   : > { %10978 = vmatmul.mubr.f32.vlgmr.msra.gmra.mrb[8].mxu1 %v16222_v10  ;;  %v3350_v10 = vld [vmem:[#allocation3 + $0x8] sm:$0xff]  ;;  %v4221_v13 = vsub.f32 %v16438_v33, %v4220_v49 }
 0x42c   : > { %12837 = vmatpush3.bf16.msra.mxu1 %v16330_v36  ;;  %11012 = vmatprep.mubr.f32.mxu1 %v4138_v5  ;;  %v16368_v0 = vand.u32 4294901760, %v3350_v10  ;;  %v4206_v30 = vand.u32 4294901760, %v16411_v21  ;;  %v4180_v5 = vand.u32 4294901760, %v4179_v25  ;;  %v4194_v46 = vand.u32 4294901760, %v4193_v27 }
 0x42d   : > { %12839 = vmatprep.subr.bf16.mxu1 %v16337_v45  ;;  %v4201_v19 = vand.u32 4294901760, %v4200_v16  ;;  %v4214_v25 = vsub.f32 %v16436_v60, %v4213_v57  ;;  %v4222_v7 = vand.u32 4294901760, %v4221_v13  ;;  %v4228_v27 = vsub.f32 %v16457_v58, %v4227_v32 }
 0x42e   : > { %v16391_v28 = vsub.f32 %v3350_v10, %v16368_v0  ;;  %v4207_v44 = vsub.f32 %v16411_v21, %v4206_v30  ;;  %v12870_v56 = vpack.c.bf16 %v4180_v5, %v4173_v41  ;;  %v12874_v34 = vpack.c.bf16 %v4194_v46, %v4187_v52 }
 0x42f   : > { %v4215_v5 = vand.u32 4294901760, %v4214_v25  ;;  %v4235_v16 = vsub.f32 %v16460_v22, %v4234_v20 }
 0x430   : > { %12841 = vmatpush3.bf16.msra.mxu1 %v16337_v45  ;;  %v4146_v12 = vand.u32 4294901760, %v16391_v28  ;;  %v4208_v17 = vand.u32 4294901760, %v4207_v44 }
 0x431   : > { %12843 = vmatprep.subr.bf16.mxu1 %v16342_v54  ;;  %v12882_v44 = vpack.c.bf16 %v4222_v7, %v4215_v5  ;;  %v12898_v7 = vpack.c.bf16 %v16359_v14, %v16357_v59  ;;  %v12970_v59 = vpack.c.bf16 %v4192_v50, %v4185_v31  ;;  %v12974_v14 = vpack.c.bf16 %v4206_v30, %v4199_v53  ;;  %v4743_v30 = vld [vmem:[#allocation8 + $0x560] sm:$0xff] }
 0x432   : > { %v4147_v62 = vsub.f32 %v16391_v28, %v4146_v12  ;;  %v12878_v41 = vpack.c.bf16 %v4208_v17, %v4201_v19 }
 0x434   : > { %12845 = vmatpush3.bf16.msra.mxu1 %v16342_v54  ;;  %v4148_v10 = vand.u32 4294901760, %v4147_v62  ;;  %v16474_v62 = vsub.f32 %v16353_v11, %v4090_v39 }
 0x435   : > { %12847 = vmatprep.subr.bf16.mxu1 %v16346_v61 }
 0x436   : > { %v4241_v11 = vand.u32 4294901760, %v16474_v62 }
 0x438   : > { %12849 = vmatpush3.bf16.msra.mxu1 %v16346_v61  ;;  %v4242_v52 = vsub.f32 %v16474_v62, %v4241_v11 }
 0x439   : > { %12851 = vmatprep.subr.bf16.mxu1 %v16362_v4 }
 0x43c   : > { %12853 = vmatpush3.bf16.msra.mxu1 %v16362_v4 }
 0x43d   : > { %12855 = vmatprep.subr.bf16.mxu1 %v16374_v26 }
 0x440   : > { %12857 = vmatpush3.bf16.msra.mxu1 %v16374_v26 }
 0x441   : > { %12859 = vmatprep.subr.bf16.mxu1 %v16388_v2 }
 0x444   : > { %12861 = vmatpush3.bf16.msra.mxu1 %v16388_v2 }
 0x445   : > { %12863 = vmatprep.subr.bf16.mxu1 %v16418_v43 }
 0x448   : > { %12865 = vmatpush3.bf16.msra.mxu1 %v16418_v43 }
 0x449   : > { %12867 = vmatprep.subr.bf16.mxu1 %v12866_v24 }
 0x44b   : > { %11013 = vmatmul.mubr.f32.vlgmr.msra.gmra.mrb[8].mxu1 %v4148_v10  ;;  %v4229_v10 = vand.u32 4294901760, %v4228_v27  ;;  %v12902_v27 = vpack.c.bf16 %v16382_v6, %v16380_v48 }
 0x44c   : > { %12869 = vmatpush3.bf16.msra.mxu1 %v12866_v24  ;;  %11047 = vmatprep.mubr.f32.mxu1 %v16318_v51  ;;  %v16479_v24 = vsub.f32 %v16355_v42, %v4093_v63  ;;  %v16492_v42 = vsub.f32 %v16376_v3, %v4096_v35  ;;  %v16497_v63 = vsub.f32 %v16378_v29, %v4099_v55  ;;  %v4243_v55 = vand.u32 4294901760, %v4242_v52 }
 0x44d   : > { %12871 = vmatprep.subr.bf16.mxu1 %v12870_v56  ;;  %v12918_v52 = vpack.c.bf16 %v16460_v22, %v16457_v58  ;;  %v4746_v58 = vld [vmem:[#allocation8 + $0x590] sm:$0xff] }
 0x44e   : > { %v4248_v39 = vand.u32 4294901760, %v16479_v24  ;;  %v4255_v3 = vand.u32 4294901760, %v16492_v42  ;;  %v4262_v35 = vand.u32 4294901760, %v16497_v63 }
 0x450   : > { %12873 = vmatpush3.bf16.msra.mxu1 %v12870_v56  ;;  %v4236_v56 = vand.u32 4294901760, %v4235_v16  ;;  %v4249_v46 = vsub.f32 %v16479_v24, %v4248_v39  ;;  %v4256_v17 = vsub.f32 %v16492_v42, %v4255_v3  ;;  %v4263_v25 = vsub.f32 %v16497_v63, %v4262_v35  ;;  %v16519_v16 = vld [vmem:[#allocation3 + $0x2] sm:$0xff] }
 0x451   : > { %12875 = vmatprep.subr.bf16.mxu1 %v12874_v34  ;;  %7124 = vst.msk [vmem:[#allocation3 + $0x5] sm:$0x1] %vm7122_vm1, %v17777_v38  ;;  %v12986_v48 = vpack.c.bf16 %v4248_v39, %v4241_v11  ;;  %v12990_v6 = vpack.c.bf16 %v4262_v35, %v4255_v3  ;;  %v16639_v11 = vld [vmem:[#allocation8 + $0x5d0] sm:$0xff]  ;;  %v4754_v39 = vld [vmem:[#allocation3 + $0xa] sm:$0xff] }
 0x452   : > { %v12886_v29 = vpack.c.bf16 %v4236_v56, %v4229_v10  ;;  %v4250_v19 = vand.u32 4294901760, %v4249_v46  ;;  %v4264_v5 = vand.u32 4294901760, %v4263_v25  ;;  %v12910_v10 = vpack.c.bf16 %v16411_v21, %v16409_v9  ;;  %v4741_v21 = vld [vmem:[#allocation8 + $0x540] sm:$0xff] }
 0x453   : > { %v12914_v56 = vpack.c.bf16 %v16438_v33, %v16436_v60  ;;  %v12922_v46 = vpack.c.bf16 %v16479_v24, %v16474_v62  ;;  %v4768_v50 = vand.u32 4294901760, %v4741_v21  ;;  %v4744_v60 = vld [vmem:[#allocation8 + $0x570] sm:$0xff]  ;;  %v16637_v24 = vld [vmem:[#allocation8 + $0x5c0] sm:$0xff]  ;;  %v16652_v25 = vand.u32 4294901760, %v4754_v39 }
 0x454   : > { %12877 = vmatpush3.bf16.msra.mxu1 %v12874_v34  ;;  %v12890_v13 = vpack.c.bf16 %v4250_v19, %v4243_v55  ;;  %v4257_v34 = vand.u32 4294901760, %v4256_v17  ;;  %v16634_v62 = vld [vmem:[#allocation8 + $0x5b0] sm:$0xff]  ;;  %v4792_v19 = vand.u32 4294901760, %v16637_v24  ;;  %v4795_v17 = vand.u32 4294901760, %v16639_v11 }
 0x455   : > { %12879 = vmatprep.subr.bf16.mxu1 %v12878_v41  ;;  %v4789_v55 = vand.u32 4294901760, %v16634_v62 }
 0x458   : > { %12881 = vmatpush3.bf16.msra.mxu1 %v12878_v41  ;;  %v12894_v41 = vpack.c.bf16 %v4264_v5, %v4257_v34 }
 0x459   : > { %12883 = vmatprep.subr.bf16.mxu1 %v12882_v44 }
 0x45c   : > { %12885 = vmatpush3.bf16.msra.mxu1 %v12882_v44  ;;  %v12906_v44 = vpack.c.bf16 %v16407_v15, %v16405_v37  ;;  %v4740_v37 = vld [vmem:[#allocation8 + $0x530] sm:$0xff] }
 0x45d   : > { %12887 = vmatprep.subr.bf16.mxu1 %v12886_v29  ;;  %v4765_v9 = vand.u32 4294901760, %v4740_v37 }
 0x460   : > { %12889 = vmatpush3.bf16.msra.mxu1 %v12886_v29  ;;  %v12926_v29 = vpack.c.bf16 %v16497_v63, %v16492_v42 }
 0x461   : > { %12891 = vmatprep.subr.bf16.mxu1 %v12890_v13 }
 0x464   : > { %12893 = vmatpush3.bf16.msra.mxu1 %v12890_v13 }
 0x465   : > { %12895 = vmatprep.subr.bf16.mxu1 %v12894_v41 }
 0x468   : > { %12897 = vmatpush3.bf16.msra.mxu1 %v12894_v41  ;;  %v16660_v41 = vld [vmem:[#allocation8 + $0x5e0] sm:$0xff] }
 0x469   : > { %12899 = vmatprep.subr.bf16.mxu1 %v12898_v7 }
 0x46b   : > { %11048 = vmatmul.mubr.f32.vlgmr.msra.gmra.mrb[8].mxu1 %v16368_v0 }
 0x46c   : > { %12901 = vmatpush3.bf16.msra.mxu1 %v12898_v7  ;;  %11082 = vmatprep.mubr.f32.mxu1 %v16323_v8  ;;  %v12962_v8 = vpack.c.bf16 %v4164_v18, %v4157_v47  ;;  %v12978_v47 = vpack.c.bf16 %v4220_v49, %v4213_v57  ;;  %v12982_v18 = vpack.c.bf16 %v4234_v20, %v4227_v32  ;;  %v4774_v57 = vand.u32 4294901760, %v4743_v30  ;;  %v4745_v49 = vld [vmem:[#allocation8 + $0x580] sm:$0xff]  ;;  %v16662_v7 = vld [vmem:[#allocation8 + $0x5f0] sm:$0xff] }
 0x46d   : > { %12903 = vmatprep.subr.bf16.mxu1 %v12902_v27  ;;  %v4780_v32 = vand.u32 4294901760, %v4745_v49  ;;  %v4783_v20 = vand.u32 4294901760, %v4746_v58 }
 0x46f   : > { %v16646_v3 = vpack.c.bf16 %v4783_v20, %v4780_v32 }
 0x470   : > { %12905 = vmatpush3.bf16.msra.mxu1 %v12902_v27 }
 0x471   : > { %12907 = vmatprep.subr.bf16.mxu1 %v12906_v44 }
 0x474   : > { %12909 = vmatpush3.bf16.msra.mxu1 %v12906_v44  ;;  %v16672_v44 = vpack.c.bf16 %v4795_v17, %v4792_v19 }
 0x475   : > { %12911 = vmatprep.subr.bf16.mxu1 %v12910_v10 }
 0x478   : > { %12913 = vmatpush3.bf16.msra.mxu1 %v12910_v10  ;;  %v16675_v10 = vsub.f32 %v4754_v39, %v16652_v25 }
 0x479   : > { %12915 = vmatprep.subr.bf16.mxu1 %v12914_v56 }
 0x47c   : > { %12917 = vmatpush3.bf16.msra.mxu1 %v12914_v56  ;;  %v4798_v56 = vand.u32 4294901760, %v16660_v41 }
 0x47d   : > { %12919 = vmatprep.subr.bf16.mxu1 %v12918_v52 }
 0x480   : > { %12921 = vmatpush3.bf16.msra.mxu1 %v12918_v52  ;;  %v4801_v52 = vand.u32 4294901760, %v16662_v7 }
 0x481   : > { %12923 = vmatprep.subr.bf16.mxu1 %v12922_v46 }
 0x484   : > { %12925 = vmatpush3.bf16.msra.mxu1 %v12922_v46 }
 0x485   : > { %12927 = vmatprep.subr.bf16.mxu1 %v12926_v29 }
 0x488   : > { %12929 = vmatpush3.bf16.msra.mxu1 %v12926_v29 }
 0x489   : > { %12931 = vmatprep.subr.bf16.mxu1 %v16330_v36 }
 0x48b   : > { %11083 = vmatmul.mubr.f32.vlgmr.msra.gmra.mrb[8].mxu1 %v16391_v28  ;;  %v16601_v28 = vand.u32 4294901760, %v16519_v16 }
 0x48c   : > { %12933 = vmatpush3.bf16.msra.mxu1 %v16330_v36  ;;  %11117 = vmatprep.mubr.f32.mxu1 %v4136_v40  ;;  %v12966_v40 = vpack.c.bf16 %v4178_v23, %v4171_v1  ;;  %v4739_v23 = vld [vmem:[#allocation8 + $0x520] sm:$0xff] }
 0x48d   : > { %12935 = vmatprep.subr.bf16.mxu1 %v16337_v45  ;;  %v4762_v15 = vand.u32 4294901760, %v4739_v23 }
 0x48f   : > { %v16621_v31 = vpack.c.bf16 %v4765_v9, %v4762_v15  ;;  %v16664_v27 = vsub.f32 %v4739_v23, %v4762_v15 }
 0x490   : > { %12937 = vmatpush3.bf16.msra.mxu1 %v16337_v45 }
 0x491   : > { %12939 = vmatprep.subr.bf16.mxu1 %v16342_v54 }
 0x494   : > { %12941 = vmatpush3.bf16.msra.mxu1 %v16342_v54 }
 0x495   : > { %12943 = vmatprep.subr.bf16.mxu1 %v16346_v61 }
 0x498   : > { %12945 = vmatpush3.bf16.msra.mxu1 %v16346_v61 }
 0x499   : > { %12947 = vmatprep.subr.bf16.mxu1 %v16362_v4 }
 0x49c   : > { %12949 = vmatpush3.bf16.msra.mxu1 %v16362_v4 }
 0x49d   : > { %12951 = vmatprep.subr.bf16.mxu1 %v16374_v26 }
 0x4a0   : > { %12953 = vmatpush3.bf16.msra.mxu1 %v16374_v26 }
 0x4a1   : > { %12955 = vmatprep.subr.bf16.mxu1 %v16388_v2 }
 0x4a4   : > { %12957 = vmatpush3.bf16.msra.mxu1 %v16388_v2 }
 0x4a5   : > { %12959 = vmatprep.subr.bf16.mxu1 %v16418_v43 }
 0x4a8   : > { %12961 = vmatpush3.bf16.msra.mxu1 %v16418_v43 }
 0x4a9   : > { %12963 = vmatprep.subr.bf16.mxu1 %v12962_v8 }
 0x4ab   : > { %11118 = vmatmul.mubr.f32.vlgmr.msra.gmra.mrb[8].mxu1 %v4146_v12  ;;  %v4742_v12 = vld [vmem:[#allocation8 + $0x550] sm:$0xff] }
 0x4ac   : > { %12965 = vmatpush3.bf16.msra.mxu1 %v12962_v8  ;;  %11152 = vmatprep.mubr.f32.mxu1 %v16318_v51  ;;  %v4873_v8 = vand.u32 4294901760, %v16664_v27 }
 0x4ad   : > { %12967 = vmatprep.subr.bf16.mxu1 %v12966_v40 }
 0x4b0   : > { %12969 = vmatpush3.bf16.msra.mxu1 %v12966_v40 }
 0x4b1   : > { %12971 = vmatprep.subr.bf16.mxu1 %v12970_v59 }
 0x4b4   : > { %12973 = vmatpush3.bf16.msra.mxu1 %v12970_v59  ;;  %v16689_v59 = vsub.f32 %v4741_v21, %v4768_v50 }
 0x4b5   : > { %12975 = vmatprep.subr.bf16.mxu1 %v12974_v14 }
 0x4b6   : > { %v4887_v23 = vand.u32 4294901760, %v16689_v59 }
 0x4b8   : > { %12977 = vmatpush3.bf16.msra.mxu1 %v12974_v14 }
 0x4b9   : > { %12979 = vmatprep.subr.bf16.mxu1 %v12978_v47 }
 0x4bc   : > { %12981 = vmatpush3.bf16.msra.mxu1 %v12978_v47  ;;  %v16693_v47 = vsub.f32 %v4743_v30, %v4774_v57  ;;  %v4888_v30 = vsub.f32 %v16689_v59, %v4887_v23 }
 0x4bd   : > { %12983 = vmatprep.subr.bf16.mxu1 %v12982_v18 }
 0x4be   : > { %v4901_v15 = vand.u32 4294901760, %v16693_v47 }
 0x4c0   : > { %12985 = vmatpush3.bf16.msra.mxu1 %v12982_v18 }
 0x4c1   : > { %12987 = vmatprep.subr.bf16.mxu1 %v12986_v48 }
 0x4c4   : > { %12989 = vmatpush3.bf16.msra.mxu1 %v12986_v48  ;;  %v16702_v48 = vpack.c.bf16 %v4801_v52, %v4798_v56 }
 0x4c5   : > { %12991 = vmatprep.subr.bf16.mxu1 %v12990_v6 }
 0x4c8   : > { %12993 = vmatpush3.bf16.msra.mxu1 %v12990_v6  ;;  %v4848_v6 = vand.u32 4294901760, %v16675_v10 }
 0x4c9   : > { %12995 = vmatprep.subr.bf16.mxu1 %v16330_v36 }
 0x4cb   : > { %11153 = vmatmul.mubr.f32.vlgmr.msra.gmra.mrb[8].mxu1 %v16368_v0 }
 0x4cc   : > { %12997 = vmatpush3.bf16.msra.mxu1 %v16330_v36  ;;  %11187 = vmatprep.mubr.f32.mxu1 %v16318_v51  ;;  %v4737_v51 = vld [vmem:[#allocation8 + $0x500] sm:$0xff]  ;;  %v4738_v36 = vld [vmem:[#allocation8 + $0x510] sm:$0xff] }
 0x4cd   : > { %12999 = vmatprep.subr.bf16.mxu1 %v16337_v45 }
 0x4d0   : > { %13001 = vmatpush3.bf16.msra.mxu1 %v16337_v45  ;;  %v16607_v45 = vsub.f32 %v16519_v16, %v16601_v28  ;;  %v16666_v16 = vsub.f32 %v4740_v37, %v4765_v9 }
 0x4d1   : > { %13003 = vmatprep.subr.bf16.mxu1 %v16342_v54 }
 0x4d2   : > { %v4838_v1 = vand.u32 4294901760, %v16607_v45  ;;  %v4880_v40 = vand.u32 4294901760, %v16666_v16 }
 0x4d4   : > { %13005 = vmatpush3.bf16.msra.mxu1 %v16342_v54  ;;  %v4756_v54 = vand.u32 4294901760, %v4737_v51 }
 0x4d5   : > { %13007 = vmatprep.subr.bf16.mxu1 %v16346_v61 }
 0x4d6   : > { %v16641_v42 = vsub.f32 %v4737_v51, %v4756_v54 }
 0x4d8   : > { %13009 = vmatpush3.bf16.msra.mxu1 %v16346_v61  ;;  %v4759_v61 = vand.u32 4294901760, %v4738_v36  ;;  %v4859_v13 = vand.u32 4294901760, %v16641_v42 }
 0x4d9   : > { %13011 = vmatprep.subr.bf16.mxu1 %v16362_v4 }
 0x4da   : > { %v16643_v63 = vsub.f32 %v4738_v36, %v4759_v61  ;;  %v4860_v46 = vsub.f32 %v16641_v42, %v4859_v13 }
 0x4dc   : > { %13013 = vmatpush3.bf16.msra.mxu1 %v16362_v4  ;;  %v16614_v4 = vpack.c.bf16 %v4759_v61, %v4756_v54  ;;  %v4866_v34 = vand.u32 4294901760, %v16643_v63  ;;  %v4861_v51 = vand.u32 4294901760, %v4860_v46  ;;  %v4874_v54 = vsub.f32 %v16664_v27, %v4873_v8 }
 0x4dd   : > { %13015 = vmatprep.subr.bf16.mxu1 %v16374_v26  ;;  %v4881_v61 = vsub.f32 %v16666_v16, %v4880_v40 }
 0x4de   : > { %v4867_v29 = vsub.f32 %v16643_v63, %v4866_v34 }
 0x4e0   : > { %13017 = vmatpush3.bf16.msra.mxu1 %v16374_v26  ;;  %v4839_v26 = vsub.f32 %v16607_v45, %v4838_v1  ;;  %v4868_v36 = vand.u32 4294901760, %v4867_v29  ;;  %v4889_v29 = vand.u32 4294901760, %v4888_v30 }
 0x4e1   : > { %13019 = vmatprep.subr.bf16.mxu1 %v16388_v2 }
 0x4e2   : > { %v4840_v53 = vand.u32 4294901760, %v4839_v26  ;;  %v4849_v26 = vsub.f32 %v16675_v10, %v4848_v6  ;;  %v13058_v21 = vpack.c.bf16 %v4868_v36, %v4861_v51 }
 0x4e4   : > { %13021 = vmatpush3.bf16.msra.mxu1 %v16388_v2  ;;  %v4771_v2 = vand.u32 4294901760, %v4742_v12  ;;  %v4850_v39 = vand.u32 4294901760, %v4849_v26  ;;  %v16758_v26 = vsub.f32 %v16637_v24, %v4792_v19 }
 0x4e5   : > { %13023 = vmatprep.subr.bf16.mxu1 %v16418_v43 }
 0x4e6   : > { %v16626_v33 = vpack.c.bf16 %v4771_v2, %v4768_v50  ;;  %v16691_v14 = vsub.f32 %v4742_v12, %v4771_v2  ;;  %v16720_v12 = vsub.f32 %v4745_v49, %v4780_v32  ;;  %v16722_v50 = vsub.f32 %v4746_v58, %v4783_v20 }
 0x4e7   : > { %v4875_v2 = vand.u32 4294901760, %v4874_v54  ;;  %v16744_v20 = vsub.f32 %v16634_v62, %v4789_v55  ;;  %v4943_v24 = vand.u32 4294901760, %v16758_v26 }
 0x4e8   : > { %13025 = vmatpush3.bf16.msra.mxu1 %v16418_v43  ;;  %v4777_v43 = vand.u32 4294901760, %v4744_v60  ;;  %v4894_v37 = vand.u32 4294901760, %v16691_v14  ;;  %v4915_v49 = vand.u32 4294901760, %v16720_v12  ;;  %v4922_v58 = vand.u32 4294901760, %v16722_v50 }
 0x4e9   : > { %13027 = vmatprep.subr.bf16.mxu1 %v16614_v4 }
 0x4ea   : > { %v16630_v22 = vpack.c.bf16 %v4777_v43, %v4774_v57  ;;  %v16695_v18 = vsub.f32 %v4744_v60, %v4777_v43  ;;  %v4895_v60 = vsub.f32 %v16691_v14, %v4894_v37  ;;  %v4902_v57 = vsub.f32 %v16693_v47, %v4901_v15 }
 0x4eb   : > { %11188 = vmatmul.mubr.f32.vlgmr.msra.gmra.mrb[8].mxu1 %v16368_v0  ;;  %v16632_v0 = vld [vmem:[#allocation8 + $0x5a0] sm:$0xff] }
 0x4ec   : > { %13029 = vmatpush3.bf16.msra.mxu1 %v16614_v4  ;;  %11222 = vmatprep.mubr.f32.mxu1 %v4840_v53  ;;  %v4786_v35 = vand.u32 4294901760, %v16632_v0  ;;  %v4908_v9 = vand.u32 4294901760, %v16695_v18  ;;  %v4882_v53 = vand.u32 4294901760, %v4881_v61  ;;  %v4896_v51 = vand.u32 4294901760, %v4895_v60 }
 0x4ed   : > { %13031 = vmatprep.subr.bf16.mxu1 %v16621_v31  ;;  %v4903_v36 = vand.u32 4294901760, %v4902_v57  ;;  %v4916_v61 = vsub.f32 %v16720_v12, %v4915_v49 }
 0x4ee   : > { %v16658_v5 = vpack.c.bf16 %v4789_v55, %v4786_v35  ;;  %v4909_v43 = vsub.f32 %v16695_v18, %v4908_v9  ;;  %v16741_v32 = vsub.f32 %v16632_v0, %v4786_v35  ;;  %v13062_v46 = vpack.c.bf16 %v4882_v53, %v4875_v2 }
 0x4ef   : > { %v4923_v0 = vsub.f32 %v16722_v50, %v4922_v58  ;;  %v4936_v35 = vand.u32 4294901760, %v16744_v20  ;;  %v13066_v55 = vpack.c.bf16 %v4896_v51, %v4889_v29  ;;  %v4917_v53 = vand.u32 4294901760, %v4916_v61 }
 0x4f0   : > { %13033 = vmatpush3.bf16.msra.mxu1 %v16621_v31  ;;  %v4910_v54 = vand.u32 4294901760, %v4909_v43  ;;  %v4929_v62 = vand.u32 4294901760, %v16741_v32  ;;  %v4944_v29 = vsub.f32 %v16758_v26, %v4943_v24 }
 0x4f1   : > { %13035 = vmatprep.subr.bf16.mxu1 %v16626_v33  ;;  %v4924_v30 = vand.u32 4294901760, %v4923_v0  ;;  %v4937_v57 = vsub.f32 %v16744_v20, %v4936_v35 }
 0x4f2   : > { %v13070_v2 = vpack.c.bf16 %v4910_v54, %v4903_v36  ;;  %v4930_v60 = vsub.f32 %v16741_v32, %v4929_v62 }
 0x4f3   : > { %v13074_v43 = vpack.c.bf16 %v4924_v30, %v4917_v53  ;;  %v13090_v30 = vpack.c.bf16 %v16643_v63, %v16641_v42  ;;  %v13162_v42 = vpack.c.bf16 %v4894_v37, %v4887_v23  ;;  %v13166_v63 = vpack.c.bf16 %v4908_v9, %v4901_v15 }
 0x4f4   : > { %13037 = vmatpush3.bf16.msra.mxu1 %v16626_v33 }
 0x4f5   : > { %13039 = vmatprep.subr.bf16.mxu1 %v16630_v22 }
 0x4f8   : > { %13041 = vmatpush3.bf16.msra.mxu1 %v16630_v22 }
 0x4f9   : > { %13043 = vmatprep.subr.bf16.mxu1 %v16646_v3 }
 0x4fc   : > { %13045 = vmatpush3.bf16.msra.mxu1 %v16646_v3 }
 0x4fd   : > { %13047 = vmatprep.subr.bf16.mxu1 %v16658_v5 }
 0x500   : > { %13049 = vmatpush3.bf16.msra.mxu1 %v16658_v5 }
 0x501   : > { %13051 = vmatprep.subr.bf16.mxu1 %v16672_v44 }
 0x504   : > { %13053 = vmatpush3.bf16.msra.mxu1 %v16672_v44 }
 0x505   : > { %13055 = vmatprep.subr.bf16.mxu1 %v16702_v48 }
 0x508   : > { %13057 = vmatpush3.bf16.msra.mxu1 %v16702_v48 }
 0x509   : > { %13059 = vmatprep.subr.bf16.mxu1 %v13058_v21 }
 0x50b   : > { %11223 = vmatmul.mubr.f32.vlgmr.msra.gmra.mrb[8].mxu1 %v4850_v39  ;;  %v4931_v39 = vand.u32 4294901760, %v4930_v60  ;;  %v13094_v60 = vpack.c.bf16 %v16666_v16, %v16664_v27 }
 0x50c   : > { %13061 = vmatpush3.bf16.msra.mxu1 %v13058_v21  ;;  %11257 = vmatprep.mubr.f32.mxu1 %v16601_v28  ;;  %v16763_v21 = vsub.f32 %v16639_v11, %v4795_v17  ;;  %v16776_v11 = vsub.f32 %v16660_v41, %v4798_v56  ;;  %v16781_v17 = vsub.f32 %v16662_v7, %v4801_v52  ;;  %v4945_v52 = vand.u32 4294901760, %v4944_v29 }
 0x50d   : > { %13063 = vmatprep.subr.bf16.mxu1 %v13062_v46 }
 0x50e   : > { %v4950_v19 = vand.u32 4294901760, %v16763_v21  ;;  %v4957_v41 = vand.u32 4294901760, %v16776_v11  ;;  %v4964_v56 = vand.u32 4294901760, %v16781_v17  ;;  %v13114_v29 = vpack.c.bf16 %v16763_v21, %v16758_v26 }
 0x510   : > { %13065 = vmatpush3.bf16.msra.mxu1 %v13062_v46  ;;  %v4938_v46 = vand.u32 4294901760, %v4937_v57  ;;  %v4951_v51 = vsub.f32 %v16763_v21, %v4950_v19  ;;  %v4958_v54 = vsub.f32 %v16776_v11, %v4957_v41  ;;  %v4965_v61 = vsub.f32 %v16781_v17, %v4964_v56 }
 0x511   : > { %13067 = vmatprep.subr.bf16.mxu1 %v13066_v55  ;;  %v13098_v57 = vpack.c.bf16 %v16691_v14, %v16689_v59  ;;  %v13178_v27 = vpack.c.bf16 %v4950_v19, %v4943_v24  ;;  %v13182_v16 = vpack.c.bf16 %v4964_v56, %v4957_v41 }
 0x512   : > { %v13078_v7 = vpack.c.bf16 %v4938_v46, %v4931_v39  ;;  %v4952_v36 = vand.u32 4294901760, %v4951_v51  ;;  %v4966_v53 = vand.u32 4294901760, %v4965_v61  ;;  %v13106_v39 = vpack.c.bf16 %v16722_v50, %v16720_v12 }
 0x513   : > { %v13110_v46 = vpack.c.bf16 %v16744_v20, %v16741_v32  ;;  %v13118_v51 = vpack.c.bf16 %v16781_v17, %v16776_v11 }
 0x514   : > { %13069 = vmatpush3.bf16.msra.mxu1 %v13066_v55  ;;  %v13082_v0 = vpack.c.bf16 %v4952_v36, %v4945_v52  ;;  %v4959_v55 = vand.u32 4294901760, %v4958_v54 }
 0x515   : > { %13071 = vmatprep.subr.bf16.mxu1 %v13070_v2 }
 0x518   : > { %13073 = vmatpush3.bf16.msra.mxu1 %v13070_v2  ;;  %v13086_v2 = vpack.c.bf16 %v4966_v53, %v4959_v55 }
 0x519   : > { %13075 = vmatprep.subr.bf16.mxu1 %v13074_v43 }
 0x51c   : > { %13077 = vmatpush3.bf16.msra.mxu1 %v13074_v43  ;;  %v13102_v43 = vpack.c.bf16 %v16695_v18, %v16693_v47  ;;  %v5477_v47 = vld [vmem:[#allocation8 + $0x6d0] sm:$0xff]  ;;  %v5478_v18 = vld [vmem:[#allocation8 + $0x6e0] sm:$0xff] }
 0x51d   : > { %13079 = vmatprep.subr.bf16.mxu1 %v13078_v7  ;;  %v5500_v15 = vand.u32 4294901760, %v5477_v47  ;;  %v5503_v9 = vand.u32 4294901760, %v5478_v18 }
 0x51f   : > { %v16916_v32 = vsub.f32 %v5477_v47, %v5500_v15  ;;  %v16918_v20 = vsub.f32 %v5478_v18, %v5503_v9 }
 0x520   : > { %13081 = vmatpush3.bf16.msra.mxu1 %v13078_v7 }
 0x521   : > { %13083 = vmatprep.subr.bf16.mxu1 %v13082_v0  ;;  %v5605_v53 = vand.u32 4294901760, %v16916_v32 }
 0x524   : > { %13085 = vmatpush3.bf16.msra.mxu1 %v13082_v0 }
 0x525   : > { %13087 = vmatprep.subr.bf16.mxu1 %v13086_v2 }
 0x528   : > { %13089 = vmatpush3.bf16.msra.mxu1 %v13086_v2 }
 0x529   : > { %13091 = vmatprep.subr.bf16.mxu1 %v13090_v30 }
 0x52b   : > { %11258 = vmatmul.mubr.f32.vlgmr.msra.gmra.mrb[8].mxu1 %v16652_v25 }
 0x52c   : > { %13093 = vmatpush3.bf16.msra.mxu1 %v13090_v30  ;;  %11292 = vmatprep.mubr.f32.mxu1 %v16607_v45  ;;  %v13154_v45 = vpack.c.bf16 %v4866_v34, %v4859_v13  ;;  %v13170_v13 = vpack.c.bf16 %v4922_v58, %v4915_v49  ;;  %v13174_v34 = vpack.c.bf16 %v4936_v35, %v4929_v62 }
 0x52d   : > { %13095 = vmatprep.subr.bf16.mxu1 %v13094_v60 }
 0x530   : > { %13097 = vmatpush3.bf16.msra.mxu1 %v13094_v60  ;;  %v5606_v60 = vsub.f32 %v16916_v32, %v5605_v53 }
 0x531   : > { %13099 = vmatprep.subr.bf16.mxu1 %v13098_v57 }
 0x534   : > { %13101 = vmatpush3.bf16.msra.mxu1 %v13098_v57 }
 0x535   : > { %13103 = vmatprep.subr.bf16.mxu1 %v13102_v43 }
 0x538   : > { %13105 = vmatpush3.bf16.msra.mxu1 %v13102_v43  ;;  %v5607_v43 = vand.u32 4294901760, %v5606_v60 }
 0x539   : > { %13107 = vmatprep.subr.bf16.mxu1 %v13106_v39 }
 0x53c   : > { %13109 = vmatpush3.bf16.msra.mxu1 %v13106_v39  ;;  %v5612_v39 = vand.u32 4294901760, %v16918_v20 }
 0x53d   : > { %13111 = vmatprep.subr.bf16.mxu1 %v13110_v46 }
 0x540   : > { %13113 = vmatpush3.bf16.msra.mxu1 %v13110_v46 }
 0x541   : > { %13115 = vmatprep.subr.bf16.mxu1 %v13114_v29 }
 0x544   : > { %13117 = vmatpush3.bf16.msra.mxu1 %v13114_v29 }
 0x545   : > { %13119 = vmatprep.subr.bf16.mxu1 %v13118_v51 }
 0x548   : > { %13121 = vmatpush3.bf16.msra.mxu1 %v13118_v51  ;;  %v5613_v51 = vsub.f32 %v16918_v20, %v5612_v39 }
 0x549   : > { %13123 = vmatprep.subr.bf16.mxu1 %v16614_v4 }
 0x54b   : > { %11293 = vmatmul.mubr.f32.vlgmr.msra.gmra.mrb[8].mxu1 %v16675_v10  ;;  %v5476_v10 = vld [vmem:[#allocation8 + $0x6c0] sm:$0xff] }
 0x54c   : > { %13125 = vmatpush3.bf16.msra.mxu1 %v16614_v4  ;;  %11327 = vmatprep.mubr.f32.mxu1 %v4838_v1  ;;  %v13158_v1 = vpack.c.bf16 %v4880_v40, %v4873_v8  ;;  %v14074_v8 = vmov 0.0|0.0   ;;  %v5497_v23 = vand.u32 4294901760, %v5476_v10 }
 0x54d   : > { %13127 = vmatprep.subr.bf16.mxu1 %v16621_v31  ;;  %13218 = vmatprep.subr.bf16.mxu0 %v14074_v8 }
 0x54e   : > { %v16914_v58 = vsub.f32 %v5476_v10, %v5497_v23  ;;  %v16923_v35 = vpack.c.bf16 %v5500_v15, %v5497_v23 }
 0x550   : > { %13129 = vmatpush3.bf16.msra.mxu1 %v16621_v31  ;;  %v5598_v55 = vand.u32 4294901760, %v16914_v58 }
 0x551   : > { %13131 = vmatprep.subr.bf16.mxu1 %v16626_v33 }
 0x552   : > { %v5599_v30 = vsub.f32 %v16914_v58, %v5598_v55 }
 0x554   : > { %13133 = vmatpush3.bf16.msra.mxu1 %v16626_v33  ;;  %v5600_v57 = vand.u32 4294901760, %v5599_v30 }
 0x555   : > { %13135 = vmatprep.subr.bf16.mxu1 %v16630_v22 }
 0x556   : > { %v13237_v29 = vpack.c.bf16 %v5607_v43, %v5600_v57 }
 0x558   : > { %13137 = vmatpush3.bf16.msra.mxu1 %v16630_v22 }
 0x559   : > { %13139 = vmatprep.subr.bf16.mxu1 %v16646_v3 }
 0x55c   : > { %13141 = vmatpush3.bf16.msra.mxu1 %v16646_v3 }
 0x55d   : > { %13143 = vmatprep.subr.bf16.mxu1 %v16658_v5 }
 0x560   : > { %13145 = vmatpush3.bf16.msra.mxu1 %v16658_v5 }
 0x561   : > { %13147 = vmatprep.subr.bf16.mxu1 %v16672_v44 }
 0x564   : > { %13149 = vmatpush3.bf16.msra.mxu1 %v16672_v44 }
 0x565   : > { %13151 = vmatprep.subr.bf16.mxu1 %v16702_v48 }
 0x568   : > { %13153 = vmatpush3.bf16.msra.mxu1 %v16702_v48 }
 0x569   : > { %13155 = vmatprep.subr.bf16.mxu1 %v13154_v45 }
 0x56b   : > { %11328 = vmatmul.mubr.f32.vlgmr.msra.gmra.mrb[8].mxu1 %v4848_v6 }
 0x56c   : > { %13157 = vmatpush3.bf16.msra.mxu1 %v13154_v45  ;;  %11362 = vmatprep.mubr.f32.mxu1 %v16601_v28 }
 0x56d   : > { %13159 = vmatprep.subr.bf16.mxu1 %v13158_v1 }
 0x570   : > { %13161 = vmatpush3.bf16.msra.mxu1 %v13158_v1  ;;  %v5614_v1 = vand.u32 4294901760, %v5613_v51 }
 0x571   : > { %13163 = vmatprep.subr.bf16.mxu1 %v13162_v42 }
 0x574   : > { %13165 = vmatpush3.bf16.msra.mxu1 %v13162_v42 }
 0x575   : > { %13167 = vmatprep.subr.bf16.mxu1 %v13166_v63 }
 0x578   : > { %13169 = vmatpush3.bf16.msra.mxu1 %v13166_v63 }
 0x579   : > { %13171 = vmatprep.subr.bf16.mxu1 %v13170_v13 }
 0x57c   : > { %13173 = vmatpush3.bf16.msra.mxu1 %v13170_v13 }
 0x57d   : > { %13175 = vmatprep.subr.bf16.mxu1 %v13174_v34 }
 0x580   : > { %13177 = vmatpush3.bf16.msra.mxu1 %v13174_v34 }
 0x581   : > { %13179 = vmatprep.subr.bf16.mxu1 %v13178_v27 }
 0x584   : > { %13181 = vmatpush3.bf16.msra.mxu1 %v13178_v27  ;;  %v13249_v27 = vpack.c.bf16 %v16916_v32, %v16914_v58  ;;  %v5463_v58 = vld [vmem:[#allocation8 + $0x600] sm:$0xff]  ;;  %v5464_v32 = vld [vmem:[#allocation8 + $0x610] sm:$0xff] }
 0x585   : > { %13183 = vmatprep.subr.bf16.mxu1 %v13182_v16 }
 0x588   : > { %13185 = vmatpush3.bf16.msra.mxu1 %v13182_v16 }
 0x589   : > { %13187 = vmatprep.subr.bf16.mxu1 %v16614_v4 }
 0x58b   : > { %11363 = vmatmul.mubr.f32.vlgmr.msra.gmra.mrb[8].mxu1 %v16652_v25 }
 0x58c   : > { %13189 = vmatpush3.bf16.msra.mxu1 %v16614_v4  ;;  %11397 = vmatprep.mubr.f32.mxu1 %v16601_v28 }
 0x58d   : > { %13191 = vmatprep.subr.bf16.mxu1 %v16621_v31 }
 0x590   : > { %13193 = vmatpush3.bf16.msra.mxu1 %v16621_v31  ;;  %v5472_v31 = vld [vmem:[#allocation8 + $0x680] sm:$0xff] }
 0x591   : > { %13195 = vmatprep.subr.bf16.mxu1 %v16626_v33 }
 0x594   : > { %13197 = vmatpush3.bf16.msra.mxu1 %v16626_v33  ;;  %v5473_v33 = vld [vmem:[#allocation8 + $0x690] sm:$0xff] }
 0x595   : > { %13199 = vmatprep.subr.bf16.mxu1 %v16630_v22 }
 0x598   : > { %13201 = vmatpush3.bf16.msra.mxu1 %v16630_v22  ;;  %v5485_v22 = vand.u32 4294901760, %v5472_v31 }
 0x599   : > { %13203 = vmatprep.subr.bf16.mxu1 %v16646_v3 }
 0x59a   : > { %v16897_v40 = vsub.f32 %v5472_v31, %v5485_v22 }
 0x59c   : > { %13205 = vmatpush3.bf16.msra.mxu1 %v16646_v3  ;;  %v5488_v3 = vand.u32 4294901760, %v5473_v33  ;;  %v5570_v21 = vand.u32 4294901760, %v16897_v40 }
 0x59d   : > { %13207 = vmatprep.subr.bf16.mxu1 %v16658_v5 }
 0x59e   : > { %v16899_v59 = vsub.f32 %v5473_v33, %v5488_v3  ;;  %v5571_v19 = vsub.f32 %v16897_v40, %v5570_v21 }
 0x5a0   : > { %13209 = vmatpush3.bf16.msra.mxu1 %v16658_v5  ;;  %v5474_v5 = vld [vmem:[#allocation8 + $0x6a0] sm:$0xff]  ;;  %v5577_v24 = vand.u32 4294901760, %v16899_v59  ;;  %v5572_v17 = vand.u32 4294901760, %v5571_v19  ;;  %v13243_v13 = vpack.c.bf16 %v16899_v59, %v16897_v40 }
 0x5a1   : > { %13211 = vmatprep.subr.bf16.mxu1 %v16672_v44  ;;  %v5491_v14 = vand.u32 4294901760, %v5474_v5 }
 0x5a2   : > { %v5578_v11 = vsub.f32 %v16899_v59, %v5577_v24  ;;  %v13267_v31 = vpack.c.bf16 %v5577_v24, %v5570_v21  ;;  %v5465_v21 = vld [vmem:[#allocation8 + $0x620] sm:$0xff]  ;;  %v5466_v24 = vld [vmem:[#allocation8 + $0x630] sm:$0xff] }
 0x5a3   : > { %v16907_v37 = vsub.f32 %v5474_v5, %v5491_v14 }
 0x5a4   : > { %13213 = vmatpush3.bf16.msra.mxu1 %v16672_v44  ;;  %v5475_v44 = vld [vmem:[#allocation8 + $0x6b0] sm:$0xff]  ;;  %v5579_v41 = vand.u32 4294901760, %v5578_v11 }
 0x5a5   : > { %13215 = vmatprep.subr.bf16.mxu1 %v16702_v48  ;;  %v5494_v6 = vand.u32 4294901760, %v5475_v44  ;;  %v5584_v56 = vand.u32 4294901760, %v16907_v37 }
 0x5a6   : > { %v13231_v52 = vpack.c.bf16 %v5579_v41, %v5572_v17  ;;  %v6031_v17 = vand.u32 4294901760, %v5465_v21  ;;  %v6034_v41 = vand.u32 4294901760, %v5466_v24 }
 0x5a7   : > { %v16910_v50 = vpack.c.bf16 %v5494_v6, %v5491_v14  ;;  %v16912_v49 = vsub.f32 %v5475_v44, %v5494_v6  ;;  %v5585_v36 = vsub.f32 %v16907_v37, %v5584_v56 }
 0x5a8   : > { %13217 = vmatpush3.bf16.msra.mxu1 %v16702_v48  ;;  %v5479_v48 = vld [vmem:[#allocation8 + $0x6f0] sm:$0xff] }
 0x5a9   : > { %13434 = vmatprep.subr.bf16.mxu1 %v14074_v8  ;;  %v5506_v12 = vand.u32 4294901760, %v5479_v48  ;;  %v5591_v7 = vand.u32 4294901760, %v16912_v49  ;;  %v5586_v61 = vand.u32 4294901760, %v5585_v36  ;;  %v13246_v34 = vpack.c.bf16 %v16912_v49, %v16907_v37 }
 0x5aa   : > { %v17027_v36 = vsub.f32 %v5466_v24, %v6034_v41 }
 0x5ab   : > { %11398 = vmatmul.mubr.f32.vlgmr.msra.gmra.mrb[8].mxu1 %v16652_v25  ;;  %v16895_v25 = vpack.c.bf16 %v5488_v3, %v5485_v22  ;;  %v16920_v62 = vsub.f32 %v5479_v48, %v5506_v12  ;;  %v16927_v26 = vpack.c.bf16 %v5506_v12, %v5503_v9  ;;  %v5592_v54 = vsub.f32 %v16912_v49, %v5591_v7 }
 0x5ac   : > { %11750 = vmatprep.mubr.msk.f32.mxu1 %vm14075_vm2, %v17777_v38  ;;  %v13270_v33 = vpack.c.bf16 %v5591_v7, %v5584_v56  ;;  %v13273_v22 = vpack.c.bf16 %v5605_v53, %v5598_v55  ;;  %v5468_v56 = vld [vmem:[#allocation8 + $0x650] sm:$0xff]  ;;  %v17032_v55 = vpack.c.bf16 %v6034_v41, %v6031_v17 }
 0x5ad   : > { %13220 = vmatpush3.bf16.msra.mxu0 %v16895_v25  ;;  %v5593_v0 = vand.u32 4294901760, %v5592_v54  ;;  %v5619_v46 = vand.u32 4294901760, %v16920_v62  ;;  %v13252_v16 = vpack.c.bf16 %v16920_v62, %v16918_v20  ;;  %v6025_v20 = vand.u32 4294901760, %v5463_v58  ;;  %v5469_v54 = vld [vmem:[#allocation8 + $0x660] sm:$0xff]  ;;  %v6562_v41 = vld [vmem:[#allocation8 + $0x710] sm:$0xff] }
 0x5ae   : > { %13221 = vmatprep.subr.bf16.mxu0 %v14074_v8  ;;  %v6043_v60 = vand.u32 4294901760, %v5469_v54 }
 0x5af   : > { %v13234_v2 = vpack.c.bf16 %v5593_v0, %v5586_v61  ;;  %v5620_v45 = vsub.f32 %v16920_v62, %v5619_v46  ;;  %v16956_v3 = vpack.c.bf16 %v5619_v46, %v5612_v39  ;;  %v6028_v62 = vand.u32 4294901760, %v5464_v32  ;;  %v5470_v61 = vld [vmem:[#allocation8 + $0x670] sm:$0xff] }
 0x5b0   : > { %v17014_v19 = vsub.f32 %v5463_v58, %v6025_v20  ;;  %v6046_v57 = vand.u32 4294901760, %v5470_v61 }
 0x5b1   : > { %13223 = vmatpush3.bf16.msra.mxu0 %v16910_v50  ;;  %v5621_v42 = vand.u32 4294901760, %v5620_v45  ;;  %v17016_v11 = vsub.f32 %v5464_v32, %v6028_v62 }
 0x5b2   : > { %13224 = vmatprep.subr.bf16.mxu0 %v14074_v8 }
 0x5b3   : > { %v13240_v63 = vpack.c.bf16 %v5621_v42, %v5614_v1  ;;  %v6117_v0 = vand.u32 4294901760, %v17016_v11  ;;  %v13315_v32 = vpack.c.bf16 %v17016_v11, %v17014_v19 }
 0x5b5   : > { %13226 = vmatpush3.bf16.msra.mxu0 %v16923_v35  ;;  %v6118_v39 = vsub.f32 %v17016_v11, %v6117_v0 }
 0x5b6   : > { %13227 = vmatprep.subr.bf16.mxu0 %v14074_v8 }
 0x5b9   : > { %13229 = vmatpush3.bf16.msra.mxu0 %v16927_v26 }
 0x5ba   : > { %13230 = vmatprep.subr.bf16.mxu0 %v14074_v8 }
 0x67e   : > { %v16888_v28 = vpop.f32.mrb[8].mxu1 }
 0x67f   : > { %v16890_v4 = vpop.f32.mrb[9].mxu1 }
 0x680   : > { %5443 = vrot.lane.b32.xlu0 %v16890_v4, %s14073_s15 }
 0x684   : > { %5445 = vrot.lane.b32.xlu0 %v16888_v28, %s14073_s15 }
 0x6f2   : > { %v5444_v5 = vpop.permute.xlu0 %5443 }
 0x6f3   : > { %v5449_v44 = vmax.f32 %v16890_v4, %v5444_v5 }
 0x6f5   : > { %v5451_v10 = vmax.f32 %v5449_v44, 0.0 }
 0x6f6   : > { %v5446_v40 = vpop.permute.xlu0 %5445 }
 0x6f7   : > { %5454 = vst.msk [vmem:[#allocation4] sm:$0xff] %vm5453_vm3, %v5451_v10  ;;  %v5450_v59 = vmax.f32 %v16888_v28, %v5446_v40 }
 0x6f9   : > { %v5452_v14 = vmax.f32 %v5450_v59, 0.0 }
 0x6fb   : > { %5455 = vst.msk [vmem:[#allocation4 + $0x8] sm:$0xff] %vm5453_vm3, %v5452_v14 }
 0x702   : > { %v5456_v47 = vld [vmem:[#allocation4] ss:$2 sm:$0xff]  ;;  %v5457_v18 = vld [vmem:[#allocation4 + $0x1] ss:$2 sm:$0xff] }
 0x703   : > { %v5458_v48 = vmax.f32 %v5456_v47, %v5457_v18 }
 0x705   : > { %5462 = vst.msk [vmem:[#allocation2 + $0x1] sm:$0xff] %vm5453_vm3, %v5458_v48 }
 0x70c   : > { %v5480_v6 = vld [vmem:[#allocation2 + $0x1] sm:$0xff] }
 0x70d   : > { %v16963_v23 = vld [vmem:[#allocation2] sm:$0xff]  ;;  %v5482_v37 = vsel %vm5453_vm3, %v5480_v6, 0 }
 0x70e   : > { %v16965_v4 = vld [vmem:[#allocation2 + $0x2] sm:$0xff]  ;;  %8619 = vst.msk [vmem:[#allocation2] sm:$0x1] %vm8618_vm4, %v17777_v38  ;;  %v16970_v28 = vand.u32 4294901760, %v5482_v37 }
 0x70f   : > { %8620 = vst.msk [vmem:[#allocation2 + $0x3] sm:$0x1] %vm8618_vm4, %v17777_v38 }
 0x710   : > { %v5558_v15 = vsub.f32 %v5482_v37, %v16970_v28 }
 0x712   : > { %v5559_v9 = vand.u32 4294901760, %v5558_v15 }
 0x714   : > { %v5560_v12 = vsub.f32 %v5558_v15, %v5559_v9 }
 0x716   : > { %v5561_v49 = vand.u32 4294901760, %v5560_v12 }
 0x718   : > { %11417 = vmatmul.mubr.f32.vlgmr.msra.gmra.mrb[8].mxu0 %v5561_v49 }
 0x719   : > { %13232 = vmatpush3.bf16.msra.mxu0 %v13231_v52  ;;  %11435 = vmatprep.mubr.msk.f32.mxu0 %vm14075_vm2, %v17777_v38  ;;  %v17025_v52 = vsub.f32 %v5465_v21, %v6031_v17  ;;  %v6561_v17 = vld [vmem:[#allocation8 + $0x700] sm:$0xff] }
 0x71a   : > { %13233 = vmatprep.subr.bf16.mxu0 %v14074_v8 }
 0x71b   : > { %v6124_v46 = vand.u32 4294901760, %v17025_v52 }
 0x71d   : > { %13235 = vmatpush3.bf16.msra.mxu0 %v13234_v2  ;;  %v6040_v2 = vand.u32 4294901760, %v5468_v56 }
 0x71e   : > { %13236 = vmatprep.subr.bf16.mxu0 %v14074_v8 }
 0x71f   : > { %v17053_v1 = vsub.f32 %v5468_v56, %v6040_v2  ;;  %v6577_v56 = vand.u32 4294901760, %v6562_v41 }
 0x721   : > { %13238 = vmatpush3.bf16.msra.mxu0 %v13237_v29  ;;  %v6131_v29 = vand.u32 4294901760, %v17027_v36 }
 0x722   : > { %13239 = vmatprep.subr.bf16.mxu0 %v14074_v8 }
 0x725   : > { %13241 = vmatpush3.bf16.msra.mxu0 %v13240_v63  ;;  %v17057_v63 = vpack.c.bf16 %v6046_v57, %v6043_v60 }
 0x726   : > { %13242 = vmatprep.subr.bf16.mxu0 %v14074_v8 }
 0x728   : > { %11436 = vmatmul.mubr.f32.vlgmr.msra.gmra.mrb[8].mxu0 %v16970_v28 }
 0x729   : > { %13244 = vmatpush3.bf16.msra.mxu0 %v13243_v13  ;;  %11454 = vmatprep.mubr.msk.f32.mxu0 %vm14075_vm2, %v17777_v38 }
 0x72a   : > { %13245 = vmatprep.subr.bf16.mxu0 %v14074_v8 }
 0x72d   : > { %13247 = vmatpush3.bf16.msra.mxu0 %v13246_v34  ;;  %v6119_v34 = vand.u32 4294901760, %v6118_v39 }
 0x72e   : > { %13248 = vmatprep.subr.bf16.mxu0 %v14074_v8 }
 0x731   : > { %13250 = vmatpush3.bf16.msra.mxu0 %v13249_v27  ;;  %v6125_v27 = vsub.f32 %v17025_v52, %v6124_v46 }
 0x732   : > { %13251 = vmatprep.subr.bf16.mxu0 %v14074_v8 }
 0x733   : > { %v6126_v10 = vand.u32 4294901760, %v6125_v27 }
 0x735   : > { %13253 = vmatpush3.bf16.msra.mxu0 %v13252_v16  ;;  %v6132_v16 = vsub.f32 %v17027_v36, %v6131_v29 }
 0x736   : > { %13254 = vmatprep.subr.bf16.mxu0 %v14074_v8 }
 0x737   : > { %v6133_v40 = vand.u32 4294901760, %v6132_v16 }
 0x738   : > { %11455 = vmatmul.mubr.f32.vlgmr.msra.gmra.mrb[8].mxu0 %v5558_v15 }
 0x739   : > { %13256 = vmatpush3.bf16.msra.mxu0 %v16895_v25  ;;  %11473 = vmatprep.mubr.msk.f32.mxu0 %vm14075_vm2, %v17777_v38  ;;  %v13306_v6 = vpack.c.bf16 %v6133_v40, %v6126_v10 }
 0x73a   : > { %13257 = vmatprep.subr.bf16.mxu0 %v14074_v8 }
 0x73d   : > { %13259 = vmatpush3.bf16.msra.mxu0 %v16910_v50 }
 0x73e   : > { %13260 = vmatprep.subr.bf16.mxu0 %v14074_v8 }
 0x741   : > { %13262 = vmatpush3.bf16.msra.mxu0 %v16923_v35 }
 0x742   : > { %13263 = vmatprep.subr.bf16.mxu0 %v14074_v8 }
 0x745   : > { %13265 = vmatpush3.bf16.msra.mxu0 %v16927_v26 }
 0x746   : > { %13266 = vmatprep.subr.bf16.mxu0 %v14074_v8 }
 0x748   : > { %11474 = vmatmul.mubr.f32.vlgmr.msra.gmra.mrb[8].mxu0 %v5559_v9 }
 0x749   : > { %13268 = vmatpush3.bf16.msra.mxu0 %v13267_v31  ;;  %11492 = vmatprep.mubr.msk.f32.mxu0 %vm14075_vm2, %v17777_v38  ;;  %v17066_v31 = vsub.f32 %v5469_v54, %v6043_v60 }
 0x74a   : > { %13269 = vmatprep.subr.bf16.mxu0 %v14074_v8 }
 0x74b   : > { %v6152_v47 = vand.u32 4294901760, %v17066_v31 }
 0x74d   : > { %13271 = vmatpush3.bf16.msra.mxu0 %v13270_v33  ;;  %v17068_v33 = vsub.f32 %v5470_v61, %v6046_v57  ;;  %v17153_v61 = vsub.f32 %v6562_v41, %v6577_v56  ;;  %v6567_v57 = vld [vmem:[#allocation8 + $0x760] sm:$0xff] }
 0x74e   : > { %13272 = vmatprep.subr.bf16.mxu0 %v14074_v8 }
 0x74f   : > { %v6159_v18 = vand.u32 4294901760, %v17068_v33  ;;  %v13324_v21 = vpack.c.bf16 %v17068_v33, %v17066_v31 }
 0x751   : > { %13274 = vmatpush3.bf16.msra.mxu0 %v13273_v22  ;;  %v6160_v15 = vsub.f32 %v17068_v33, %v6159_v18  ;;  %v13348_v11 = vpack.c.bf16 %v6159_v18, %v6152_v47 }
 0x752   : > { %13275 = vmatprep.subr.bf16.mxu0 %v14074_v8 }
 0x753   : > { %v6161_v49 = vand.u32 4294901760, %v6160_v15 }
 0x755   : > { %13277 = vmatpush3.bf16.msra.mxu0 %v16956_v3  ;;  %v6145_v3 = vand.u32 4294901760, %v17053_v1 }
 0x756   : > { %13278 = vmatprep.subr.bf16.mxu0 %v14074_v8 }
 0x757   : > { %v6146_v14 = vsub.f32 %v17053_v1, %v6145_v3 }
 0x758   : > { %11493 = vmatmul.mubr.f32.vlgmr.msra.gmra.mrb[8].mxu0 %v16970_v28 }
 0x759   : > { %13280 = vmatpush3.bf16.msra.mxu0 %v16895_v25  ;;  %11511 = vmatprep.mubr.msk.f32.mxu0 %vm14075_vm2, %v17777_v38  ;;  %v6022_v25 = vsel %vm5453_vm3, %v16963_v23, 0  ;;  %v6147_v37 = vand.u32 4294901760, %v6146_v14 }
 0x75a   : > { %13281 = vmatprep.subr.bf16.mxu0 %v14074_v8  ;;  %v17022_v7 = vand.u32 4294901760, %v6022_v25 }
 0x75c   : > { %v17038_v30 = vsub.f32 %v6022_v25, %v17022_v7  ;;  %v13342_v25 = vpack.c.bf16 %v6131_v29, %v6124_v46  ;;  %v6666_v46 = vand.u32 4294901760, %v17153_v61 }
 0x75d   : > { %13283 = vmatpush3.bf16.msra.mxu0 %v16910_v50  ;;  %v17019_v50 = vpack.c.bf16 %v6028_v62, %v6025_v20  ;;  %v13318_v20 = vpack.c.bf16 %v17027_v36, %v17025_v52  ;;  %v6563_v52 = vld [vmem:[#allocation8 + $0x720] sm:$0xff]  ;;  %v6564_v36 = vld [vmem:[#allocation8 + $0x730] sm:$0xff] }
 0x75e   : > { %13284 = vmatprep.subr.bf16.mxu0 %v14074_v8  ;;  %v6099_v42 = vand.u32 4294901760, %v17038_v30 }
 0x760   : > { %v6100_v5 = vsub.f32 %v17038_v30, %v6099_v42 }
 0x761   : > { %13286 = vmatpush3.bf16.msra.mxu0 %v16923_v35  ;;  %v5467_v35 = vld [vmem:[#allocation8 + $0x640] sm:$0xff] }
 0x762   : > { %13287 = vmatprep.subr.bf16.mxu0 %v14074_v8  ;;  %v6037_v53 = vand.u32 4294901760, %v5467_v35  ;;  %v6101_v48 = vand.u32 4294901760, %v6100_v5 }
 0x764   : > { %v17049_v51 = vpack.c.bf16 %v6040_v2, %v6037_v53  ;;  %v17051_v45 = vsub.f32 %v5467_v35, %v6037_v53  ;;  %v6574_v35 = vand.u32 4294901760, %v6561_v17  ;;  %v6565_v53 = vld [vmem:[#allocation8 + $0x740] sm:$0xff]  ;;  %v6566_v2 = vld [vmem:[#allocation8 + $0x750] sm:$0xff] }
 0x765   : > { %13289 = vmatpush3.bf16.msra.mxu0 %v16927_v26  ;;  %v6110_v26 = vand.u32 4294901760, %v17014_v19 }
 0x766   : > { %13290 = vmatprep.subr.bf16.mxu0 %v14074_v8  ;;  %v6138_v22 = vand.u32 4294901760, %v17051_v45  ;;  %v13321_v62 = vpack.c.bf16 %v17053_v1, %v17051_v45  ;;  %v17151_v54 = vsub.f32 %v6561_v17, %v6574_v35  ;;  %v6592_v1 = vand.u32 4294901760, %v6567_v57 }
 0x767   : > { %v6111_v43 = vsub.f32 %v17014_v19, %v6110_v26  ;;  %v13339_v24 = vpack.c.bf16 %v6117_v0, %v6110_v26  ;;  %v17156_v26 = vpack.c.bf16 %v6577_v56, %v6574_v35  ;;  %v6580_v0 = vand.u32 4294901760, %v6563_v52 }
 0x768   : > { %11512 = vmatmul.mubr.f32.vlgmr.msra.gmra.mrb[8].mxu0 %v16970_v28  ;;  %v6139_v59 = vsub.f32 %v17051_v45, %v6138_v22  ;;  %v6153_v28 = vsub.f32 %v17066_v31, %v6152_v47  ;;  %v13345_v19 = vpack.c.bf16 %v6145_v3, %v6138_v22  ;;  %v6659_v39 = vand.u32 4294901760, %v17151_v54 }
 0x769   : > { %13292 = vmatpush3.bf16.msra.mxu0 %v17019_v50  ;;  %11530 = vmatprep.mubr.msk.f32.mxu0 %vm14075_vm2, %v17777_v38  ;;  %v6112_v13 = vand.u32 4294901760, %v6111_v43  ;;  %v17162_v60 = vsub.f32 %v6563_v52, %v6580_v0  ;;  %v6568_v43 = vld [vmem:[#allocation8 + $0x770] sm:$0xff]  ;;  %v6589_v45 = vand.u32 4294901760, %v6566_v2  ;;  %v13387_v17 = vpack.c.bf16 %v17153_v61, %v17151_v54 }
 0x76a   : > { %13293 = vmatprep.subr.bf16.mxu0 %v14074_v8  ;;  %v6140_v23 = vand.u32 4294901760, %v6139_v59  ;;  %v6154_v12 = vand.u32 4294901760, %v6153_v28  ;;  %v17203_v59 = vsub.f32 %v6567_v57, %v6592_v1  ;;  %v13411_v52 = vpack.c.bf16 %v6666_v46, %v6659_v39 }
 0x76b   : > { %v13303_v44 = vpack.c.bf16 %v6119_v34, %v6112_v13  ;;  %v6667_v13 = vsub.f32 %v17153_v61, %v6666_v46  ;;  %v6673_v34 = vand.u32 4294901760, %v17162_v60  ;;  %v17190_v33 = vsub.f32 %v6566_v2, %v6589_v45  ;;  %v7132_v61 = vld [vmem:[#allocation8 + $0x7c0] sm:$0xff]  ;;  %v7135_v2 = vld [vmem:[#allocation8 + $0x7f0] sm:$0xff] }
 0x76c   : > { %v13309_v9 = vpack.c.bf16 %v6147_v37, %v6140_v23  ;;  %v13312_v58 = vpack.c.bf16 %v6161_v49, %v6154_v12 }
 0x76d   : > { %13295 = vmatpush3.bf16.msra.mxu0 %v17032_v55  ;;  %v6674_v10 = vsub.f32 %v17162_v60, %v6673_v34  ;;  %v6694_v18 = vand.u32 4294901760, %v17190_v33 }
 0x76e   : > { %13296 = vmatprep.subr.bf16.mxu0 %v14074_v8 }
 0x76f   : > { %v6675_v23 = vand.u32 4294901760, %v6674_v10  ;;  %v6695_v15 = vsub.f32 %v17190_v33, %v6694_v18 }
 0x771   : > { %13298 = vmatpush3.bf16.msra.mxu0 %v17049_v51 }
 0x772   : > { %13299 = vmatprep.subr.bf16.mxu0 %v14074_v8 }
 0x775   : > { %13301 = vmatpush3.bf16.msra.mxu0 %v17057_v63 }
 0x776   : > { %13302 = vmatprep.subr.bf16.mxu0 %v14074_v8 }
 0x778   : > { %11531 = vmatmul.mubr.f32.vlgmr.msra.gmra.mrb[8].mxu0 %v6101_v48 }
 0x779   : > { %13304 = vmatpush3.bf16.msra.mxu0 %v13303_v44  ;;  %11549 = vmatprep.mubr.msk.f32.mxu0 %vm14075_vm2, %v17777_v38  ;;  %v6668_v44 = vand.u32 4294901760, %v6667_v13 }
 0x77a   : > { %13305 = vmatprep.subr.bf16.mxu0 %v14074_v8 }
 0x77d   : > { %13307 = vmatpush3.bf16.msra.mxu0 %v13306_v6 }
 0x77e   : > { %13308 = vmatprep.subr.bf16.mxu0 %v14074_v8 }
 0x781   : > { %13310 = vmatpush3.bf16.msra.mxu0 %v13309_v9  ;;  %v6701_v9 = vand.u32 4294901760, %v17203_v59 }
 0x782   : > { %13311 = vmatprep.subr.bf16.mxu0 %v14074_v8 }
 0x785   : > { %13313 = vmatpush3.bf16.msra.mxu0 %v13312_v58 }
 0x786   : > { %13314 = vmatprep.subr.bf16.mxu0 %v14074_v8 }
 0x788   : > { %11550 = vmatmul.mubr.f32.vlgmr.msra.gmra.mrb[8].mxu0 %v17022_v7 }
 0x789   : > { %13316 = vmatpush3.bf16.msra.mxu0 %v13315_v32  ;;  %11568 = vmatprep.mubr.msk.f32.mxu0 %vm14075_vm2, %v17777_v38 }
 0x78a   : > { %13317 = vmatprep.subr.bf16.mxu0 %v14074_v8 }
 0x78d   : > { %13319 = vmatpush3.bf16.msra.mxu0 %v13318_v20  ;;  %v6696_v20 = vand.u32 4294901760, %v6695_v15 }
 0x78e   : > { %13320 = vmatprep.subr.bf16.mxu0 %v14074_v8 }
 0x791   : > { %13322 = vmatpush3.bf16.msra.mxu0 %v13321_v62  ;;  %v6702_v62 = vsub.f32 %v17203_v59, %v6701_v9 }
 0x792   : > { %13323 = vmatprep.subr.bf16.mxu0 %v14074_v8 }
 0x795   : > { %13325 = vmatpush3.bf16.msra.mxu0 %v13324_v21 }
 0x796   : > { %13326 = vmatprep.subr.bf16.mxu0 %v14074_v8 }
 0x798   : > { %11569 = vmatmul.mubr.f32.vlgmr.msra.gmra.mrb[8].mxu0 %v17038_v30 }
 0x799   : > { %13328 = vmatpush3.bf16.msra.mxu0 %v17019_v50  ;;  %11587 = vmatprep.mubr.msk.f32.mxu0 %vm14075_vm2, %v17777_v38 }
 0x79a   : > { %13329 = vmatprep.subr.bf16.mxu0 %v14074_v8 }
 0x79d   : > { %13331 = vmatpush3.bf16.msra.mxu0 %v17032_v55 }
 0x79e   : > { %13332 = vmatprep.subr.bf16.mxu0 %v14074_v8 }
 0x7a1   : > { %13334 = vmatpush3.bf16.msra.mxu0 %v17049_v51 }
 0x7a2   : > { %13335 = vmatprep.subr.bf16.mxu0 %v14074_v8 }
 0x7a5   : > { %13337 = vmatpush3.bf16.msra.mxu0 %v17057_v63 }
 0x7a6   : > { %13338 = vmatprep.subr.bf16.mxu0 %v14074_v8 }
 0x7a8   : > { %11588 = vmatmul.mubr.f32.vlgmr.msra.gmra.mrb[8].mxu0 %v6099_v42  ;;  %v6595_v42 = vand.u32 4294901760, %v6568_v43 }
 0x7a9   : > { %13340 = vmatpush3.bf16.msra.mxu0 %v13339_v24  ;;  %11606 = vmatprep.mubr.msk.f32.mxu0 %vm14075_vm2, %v17777_v38 }
 0x7aa   : > { %13341 = vmatprep.subr.bf16.mxu0 %v14074_v8  ;;  %v17194_v3 = vpack.c.bf16 %v6595_v42, %v6592_v1  ;;  %v17205_v14 = vsub.f32 %v6568_v43, %v6595_v42 }
 0x7ac   : > { %v6708_v12 = vand.u32 4294901760, %v17205_v14  ;;  %v13396_v56 = vpack.c.bf16 %v17205_v14, %v17203_v59 }
 0x7ad   : > { %13343 = vmatpush3.bf16.msra.mxu0 %v13342_v25  ;;  %v6703_v25 = vand.u32 4294901760, %v6702_v62  ;;  %v7128_v62 = vld [vmem:[#allocation8 + $0x790] sm:$0xff] }
 0x7ae   : > { %13344 = vmatprep.subr.bf16.mxu0 %v14074_v8  ;;  %v6709_v21 = vsub.f32 %v17205_v14, %v6708_v12 }
 0x7b1   : > { %13346 = vmatpush3.bf16.msra.mxu0 %v13345_v19  ;;  %v6710_v19 = vand.u32 4294901760, %v6709_v21 }
 0x7b2   : > { %13347 = vmatprep.subr.bf16.mxu0 %v14074_v8 }
 0x7b5   : > { %13349 = vmatpush3.bf16.msra.mxu0 %v13348_v11  ;;  %v13384_v11 = vpack.c.bf16 %v6710_v19, %v6703_v25  ;;  %v7632_v25 = vand.u32 4294901760, %v7128_v62  ;;  %v7129_v19 = vld [vmem:[#allocation8 + $0x7a0] sm:$0xff] }
 0x7b6   : > { %13350 = vmatprep.subr.bf16.mxu0 %v14074_v8 }
 0x7b8   : > { %11607 = vmatmul.mubr.f32.vlgmr.msra.gmra.mrb[8].mxu0 %v17022_v7 }
 0x7b9   : > { %13352 = vmatpush3.bf16.msra.mxu0 %v17019_v50  ;;  %11625 = vmatprep.mubr.msk.f32.mxu0 %vm14075_vm2, %v17777_v38  ;;  %v6571_v50 = vsel %vm5453_vm3, %v16965_v4, 0 }
 0x7ba   : > { %13353 = vmatprep.subr.bf16.mxu0 %v14074_v8  ;;  %v17159_v30 = vand.u32 4294901760, %v6571_v50 }
 0x7bd   : > { %13355 = vmatpush3.bf16.msra.mxu0 %v17032_v55  ;;  %v6583_v55 = vand.u32 4294901760, %v6564_v36 }
 0x7be   : > { %13356 = vmatprep.subr.bf16.mxu0 %v14074_v8 }
 0x7bf   : > { %v17164_v4 = vsub.f32 %v6564_v36, %v6583_v55  ;;  %v17169_v29 = vpack.c.bf16 %v6583_v55, %v6580_v0  ;;  %v7133_v0 = vld [vmem:[#allocation8 + $0x7d0] sm:$0xff]  ;;  %v7141_v55 = vand.u32 4294901760, %v7132_v61 }
 0x7c1   : > { %13358 = vmatpush3.bf16.msra.mxu0 %v17049_v51  ;;  %v6586_v51 = vand.u32 4294901760, %v6565_v53  ;;  %v6680_v27 = vand.u32 4294901760, %v17164_v4  ;;  %v13390_v41 = vpack.c.bf16 %v17164_v4, %v17162_v60  ;;  %v7221_v43 = vsub.f32 %v7132_v61, %v7141_v55 }
 0x7c2   : > { %13359 = vmatprep.subr.bf16.mxu0 %v14074_v8 }
 0x7c3   : > { %v17186_v16 = vpack.c.bf16 %v6589_v45, %v6586_v51  ;;  %v17188_v31 = vsub.f32 %v6565_v53, %v6586_v51  ;;  %v6681_v40 = vsub.f32 %v17164_v4, %v6680_v27  ;;  %v13414_v36 = vpack.c.bf16 %v6680_v27, %v6673_v34 }
 0x7c4   : > { %v7144_v53 = vand.u32 4294901760, %v7133_v0  ;;  %v7150_v4 = vand.u32 4294901760, %v7135_v2 }
 0x7c5   : > { %13361 = vmatpush3.bf16.msra.mxu0 %v17057_v63  ;;  %v6660_v63 = vsub.f32 %v17151_v54, %v6659_v39  ;;  %v6687_v47 = vand.u32 4294901760, %v17188_v31  ;;  %v6682_v37 = vand.u32 4294901760, %v6681_v40  ;;  %v13393_v35 = vpack.c.bf16 %v17190_v33, %v17188_v31 }
 0x7c6   : > { %13362 = vmatprep.subr.bf16.mxu0 %v14074_v8  ;;  %v13420_v54 = vpack.c.bf16 %v6708_v12, %v6701_v9  ;;  %v17288_v57 = vpack.c.bf16 %v7144_v53, %v7141_v55  ;;  %v7228_v39 = vsub.f32 %v7133_v0, %v7144_v53 }
 0x7c7   : > { %v6661_v5 = vand.u32 4294901760, %v6660_v63  ;;  %v6688_v28 = vsub.f32 %v17188_v31, %v6687_v47  ;;  %v13378_v58 = vpack.c.bf16 %v6682_v37, %v6675_v23 }
 0x7c8   : > { %11626 = vmatmul.mubr.f32.vlgmr.msra.gmra.mrb[8].mxu0 %v17022_v7  ;;  %v17175_v7 = vsub.f32 %v6571_v50, %v17159_v30  ;;  %v13417_v50 = vpack.c.bf16 %v6694_v18, %v6687_v47  ;;  %13436 = vmatpush3.bf16.msra.mxu1 %v17288_v57  ;;  %v7229_v1 = vand.u32 4294901760, %v7228_v39  ;;  %v13447_v10 = vpack.c.bf16 %v7228_v39, %v7221_v43 }
 0x7c9   : > { %13364 = vmatpush3.bf16.msra.mxu0 %v17156_v26  ;;  %11644 = vmatprep.mubr.msk.f32.mxu0 %vm14075_vm2, %v17777_v38  ;;  %v13375_v6 = vpack.c.bf16 %v6668_v44, %v6661_v5  ;;  %v6689_v32 = vand.u32 4294901760, %v6688_v28 }
 0x7ca   : > { %13365 = vmatprep.subr.bf16.mxu0 %v14074_v8  ;;  %v6648_v22 = vand.u32 4294901760, %v17175_v7  ;;  %13437 = vmatprep.subr.bf16.mxu1 %v14074_v8  ;;  %v7230_v63 = vsub.f32 %v7228_v39, %v7229_v1 }
 0x7cb   : > { %v13381_v24 = vpack.c.bf16 %v6696_v20, %v6689_v32  ;;  %v7127_v20 = vld [vmem:[#allocation8 + $0x780] sm:$0xff] }
 0x7cc   : > { %v6649_v48 = vsub.f32 %v17175_v7, %v6648_v22  ;;  %v7231_v34 = vand.u32 4294901760, %v7230_v63 }
 0x7cd   : > { %13367 = vmatpush3.bf16.msra.mxu0 %v17169_v29 }
 0x7ce   : > { %13368 = vmatprep.subr.bf16.mxu0 %v14074_v8  ;;  %v6650_v49 = vand.u32 4294901760, %v6649_v48 }
 0x7d1   : > { %13370 = vmatpush3.bf16.msra.mxu0 %v17186_v16 }
 0x7d2   : > { %13371 = vmatprep.subr.bf16.mxu0 %v14074_v8 }
 0x7d5   : > { %13373 = vmatpush3.bf16.msra.mxu0 %v17194_v3 }
 0x7d6   : > { %13374 = vmatprep.subr.bf16.mxu0 %v14074_v8 }
 0x7d8   : > { %11645 = vmatmul.mubr.f32.vlgmr.msra.gmra.mrb[8].mxu0 %v6650_v49 }
 0x7d9   : > { %13376 = vmatpush3.bf16.msra.mxu0 %v13375_v6  ;;  %11663 = vmatprep.mubr.msk.f32.mxu0 %vm14075_vm2, %v17777_v38 }
 0x7da   : > { %13377 = vmatprep.subr.bf16.mxu0 %v14074_v8 }
 0x7dd   : > { %13379 = vmatpush3.bf16.msra.mxu0 %v13378_v58 }
 0x7de   : > { %13380 = vmatprep.subr.bf16.mxu0 %v14074_v8 }
 0x7e1   : > { %13382 = vmatpush3.bf16.msra.mxu0 %v13381_v24  ;;  %v7629_v24 = vand.u32 4294901760, %v7127_v20 }
 0x7e2   : > { %13383 = vmatprep.subr.bf16.mxu0 %v14074_v8 }
 0x7e3   : > { %v17324_v55 = vpack.c.bf16 %v7632_v25, %v7629_v24 }
 0x7e5   : > { %13385 = vmatpush3.bf16.msra.mxu0 %v13384_v11  ;;  %v7130_v11 = vld [vmem:[#allocation8 + $0x7b0] sm:$0xff] }
 0x7e6   : > { %13386 = vmatprep.subr.bf16.mxu0 %v14074_v8 }
 0x7e8   : > { %11664 = vmatmul.mubr.f32.vlgmr.msra.gmra.mrb[8].mxu0 %v17159_v30 }
 0x7e9   : > { %13388 = vmatpush3.bf16.msra.mxu0 %v13387_v17  ;;  %11682 = vmatprep.mubr.msk.f32.mxu0 %vm14075_vm2, %v17777_v38 }
 0x7ea   : > { %13389 = vmatprep.subr.bf16.mxu0 %v14074_v8 }
 0x7ed   : > { %13391 = vmatpush3.bf16.msra.mxu0 %v13390_v41  ;;  %v7709_v41 = vsub.f32 %v7127_v20, %v7629_v24 }
 0x7ee   : > { %13392 = vmatprep.subr.bf16.mxu0 %v14074_v8 }
 0x7ef   : > { %v7710_v61 = vand.u32 4294901760, %v7709_v41 }
 0x7f1   : > { %13394 = vmatpush3.bf16.msra.mxu0 %v13393_v35  ;;  %v7716_v35 = vsub.f32 %v7128_v62, %v7632_v25  ;;  %v7711_v53 = vsub.f32 %v7709_v41, %v7710_v61 }
 0x7f2   : > { %13395 = vmatprep.subr.bf16.mxu0 %v14074_v8 }
 0x7f3   : > { %v7717_v0 = vand.u32 4294901760, %v7716_v35  ;;  %v7712_v39 = vand.u32 4294901760, %v7711_v53 }
 0x7f5   : > { %13397 = vmatpush3.bf16.msra.mxu0 %v13396_v56  ;;  %v7635_v56 = vand.u32 4294901760, %v7129_v19 }
 0x7f6   : > { %13398 = vmatprep.subr.bf16.mxu0 %v14074_v8 }
 0x7f8   : > { %11683 = vmatmul.mubr.f32.vlgmr.msra.gmra.mrb[8].mxu0 %v17175_v7  ;;  %v7222_v7 = vand.u32 4294901760, %v7221_v43 }
 0x7f9   : > { %13400 = vmatpush3.bf16.msra.mxu0 %v17156_v26  ;;  %11701 = vmatprep.mubr.msk.f32.mxu0 %vm14075_vm2, %v17777_v38 }
 0x7fa   : > { %13401 = vmatprep.subr.bf16.mxu0 %v14074_v8  ;;  %v7223_v42 = vsub.f32 %v7221_v43, %v7222_v7  ;;  %v13459_v59 = vpack.c.bf16 %v7229_v1, %v7222_v7 }
 0x7fc   : > { %v7224_v13 = vand.u32 4294901760, %v7223_v42 }
 0x7fd   : > { %13403 = vmatpush3.bf16.msra.mxu0 %v17169_v29 }
 0x7fe   : > { %13404 = vmatprep.subr.bf16.mxu0 %v14074_v8  ;;  %v13441_v31 = vpack.c.bf16 %v7231_v34, %v7224_v13  ;;  %v13483_v13 = vpack.c.bf16 %v7716_v35, %v7709_v41 }
 0x801   : > { %13406 = vmatpush3.bf16.msra.mxu0 %v17186_v16 }
 0x802   : > { %13407 = vmatprep.subr.bf16.mxu0 %v14074_v8 }
 0x805   : > { %13409 = vmatpush3.bf16.msra.mxu0 %v17194_v3 }
 0x806   : > { %13410 = vmatprep.subr.bf16.mxu0 %v14074_v8 }
 0x808   : > { %11702 = vmatmul.mubr.f32.vlgmr.msra.gmra.mrb[8].mxu0 %v6648_v22 }
 0x809   : > { %13412 = vmatpush3.bf16.msra.mxu0 %v13411_v52  ;;  %11720 = vmatprep.mubr.msk.f32.mxu0 %vm14075_vm2, %v17777_v38  ;;  %v7638_v52 = vand.u32 4294901760, %v7130_v11 }
 0x80a   : > { %13413 = vmatprep.subr.bf16.mxu0 %v14074_v8 }
 0x80b   : > { %v17328_v43 = vpack.c.bf16 %v7638_v52, %v7635_v56 }
 0x80d   : > { %13415 = vmatpush3.bf16.msra.mxu0 %v13414_v36 }
 0x80e   : > { %13416 = vmatprep.subr.bf16.mxu0 %v14074_v8 }
 0x811   : > { %13418 = vmatpush3.bf16.msra.mxu0 %v13417_v50  ;;  %v7723_v50 = vsub.f32 %v7129_v19, %v7635_v56 }
 0x812   : > { %13419 = vmatprep.subr.bf16.mxu0 %v14074_v8 }
 0x815   : > { %13421 = vmatpush3.bf16.msra.mxu0 %v13420_v54  ;;  %v7730_v54 = vsub.f32 %v7130_v11, %v7638_v52 }
 0x816   : > { %13422 = vmatprep.subr.bf16.mxu0 %v14074_v8 }
 0x817   : > { %v13486_v34 = vpack.c.bf16 %v7730_v54, %v7723_v50 }
 0x818   : > { %11721 = vmatmul.mubr.f32.vlgmr.msra.gmra.mrb[8].mxu0 %v17159_v30 }
 0x819   : > { %13424 = vmatpush3.bf16.msra.mxu0 %v17156_v26  ;;  %11739 = vmatprep.mubr.msk.f32.mxu0 %vm14075_vm2, %v17777_v38  ;;  %v7134_v26 = vld [vmem:[#allocation8 + $0x7e0] sm:$0xff] }
 0x81a   : > { %13425 = vmatprep.subr.bf16.mxu0 %v14074_v8  ;;  %v7147_v60 = vand.u32 4294901760, %v7134_v26 }
 0x81c   : > { %v7235_v46 = vsub.f32 %v7134_v26, %v7147_v60  ;;  %v17291_v51 = vpack.c.bf16 %v7150_v4, %v7147_v60  ;;  %v7724_v60 = vand.u32 4294901760, %v7723_v50 }
 0x81d   : > { %13427 = vmatpush3.bf16.msra.mxu0 %v17169_v29  ;;  %v7242_v29 = vsub.f32 %v7135_v2, %v7150_v4  ;;  %v7718_v2 = vsub.f32 %v7716_v35, %v7717_v0  ;;  %v7731_v4 = vand.u32 4294901760, %v7730_v54 }
 0x81e   : > { %13428 = vmatprep.subr.bf16.mxu0 %v14074_v8  ;;  %13439 = vmatpush3.bf16.msra.mxu1 %v17291_v51  ;;  %v7236_v27 = vand.u32 4294901760, %v7235_v46 }
 0x81f   : > { %13440 = vmatprep.subr.bf16.mxu1 %v14074_v8  ;;  %v13450_v40 = vpack.c.bf16 %v7242_v29, %v7235_v46 }
 0x820   : > { %v7237_v33 = vsub.f32 %v7235_v46, %v7236_v27  ;;  %v7719_v46 = vand.u32 4294901760, %v7718_v2 }
 0x821   : > { %13430 = vmatpush3.bf16.msra.mxu0 %v17186_v16  ;;  %v7243_v16 = vand.u32 4294901760, %v7242_v29 }
 0x822   : > { %13431 = vmatprep.subr.bf16.mxu0 %v14074_v8 }
 0x823   : > { %v7244_v22 = vsub.f32 %v7242_v29, %v7243_v16  ;;  %v13462_v14 = vpack.c.bf16 %v7243_v16, %v7236_v27  ;;  %v7725_v29 = vsub.f32 %v7723_v50, %v7724_v60  ;;  %v13495_v27 = vpack.c.bf16 %v7717_v0, %v7710_v61  ;;  %v8113_v16 = vld [vmem:[#allocation8 + $0x800] sm:$0xff] }
 0x825   : > { %13433 = vmatpush3.bf16.msra.mxu0 %v17194_v3  ;;  %v7238_v3 = vand.u32 4294901760, %v7237_v33  ;;  %v7245_v5 = vand.u32 4294901760, %v7244_v22  ;;  %v7726_v7 = vand.u32 4294901760, %v7725_v29  ;;  %v13498_v22 = vpack.c.bf16 %v7731_v4, %v7724_v60 }
 0x827   : > { %v13444_v44 = vpack.c.bf16 %v7245_v5, %v7238_v3  ;;  %v8122_v3 = vand.u32 4294901760, %v8113_v16 }
 0x828   : > { %11740 = vmatmul.mubr.f32.vlgmr.msra.gmra.mrb[8].mxu0 %v17159_v30 }
 0x8fb   : > { %v7106_v30 = vpop.f32.mrb[8].mxu0 }
 0x8fc   : > { %7112 = vrot.lane.b32.xlu1 %v7106_v30, %s14076_s17  ;;  %v11741_v45 = vpop.f32.mrb[9].mxu0 }
 0x8fd   : > { %v13477_v45 = vpack.c.bf16 %v7719_v46, %v7712_v39 }
 0x96e   : > { %v7113_v47 = vpop.permute.xlu1 %7112 }
 0x96f   : > { %v7115_v18 = vmax.f32 %v7106_v30, %v7113_v47  ;;  %v7732_v30 = vsub.f32 %v7730_v54, %v7731_v4 }
 0x971   : > { %v7116_v48 = vmax.f32 %v7115_v18, 0.0  ;;  %v7733_v1 = vand.u32 4294901760, %v7732_v30 }
 0x973   : > { %7118 = vst.msk [vmem:[#allocation4] sm:$0xff] %vm7117_vm5, %v7116_v48  ;;  %v13480_v63 = vpack.c.bf16 %v7733_v1, %v7726_v7 }
 0x97a   : > { %v7119_v6 = vld [vmem:[#allocation4] ss:$2 sm:$0xf]  ;;  %v7120_v23 = vld [vmem:[#allocation4 + $0x1] ss:$2 sm:$0xf] }
 0x97b   : > { %v7121_v37 = vmax.f32 %v7119_v6, %v7120_v23 }
 0x97d   : > { %7126 = vst.msk [vmem:[#allocation3 + $0x1] sm:$0xf] %vm7125_vm6, %v7121_v37 }
 0x984   : > { %v7136_v28 = vld [vmem:[#allocation3 + $0x1] sm:$0xf] }
 0x985   : > { %v7138_v15 = vsel %vm7117_vm5, %v7136_v28, 0  ;;  %v7131_v21 = vld [vmem:[#allocation3] sm:$0xf] }
 0x986   : > { %v7209_v9 = vand.u32 4294901760, %v7138_v15  ;;  %v7626_v17 = vsel %vm7117_vm5, %v7131_v21, 0  ;;  %v8117_v33 = vld [vmem:[#allocation3 + $0x2] sm:$0xf]  ;;  %10032 = vst.msk [vmem:[#allocation3] sm:$0x1] %vm10031_vm10, %v17777_v38 }
 0x987   : > { %v17317_v36 = vand.u32 4294901760, %v7626_v17  ;;  %10033 = vst.msk [vmem:[#allocation3 + $0x2] sm:$0x1] %vm10031_vm10, %v17777_v38 }
 0x988   : > { %v7210_v12 = vsub.f32 %v7138_v15, %v7209_v9 }
 0x989   : > { %v7698_v26 = vsub.f32 %v7626_v17, %v17317_v36 }
 0x98a   : > { %v7211_v49 = vand.u32 4294901760, %v7210_v12 }
 0x98c   : > { %v7212_v58 = vsub.f32 %v7210_v12, %v7211_v49 }
 0x98e   : > { %v7213_v32 = vand.u32 4294901760, %v7212_v58 }
 0x990   : > { %11751 = vmatmul.mubr.f32.vlgmr.msra.gmra.mrb[10].mxu1 %v7213_v32 }
 0x991   : > { %13442 = vmatpush3.bf16.msra.mxu1 %v13441_v31  ;;  %11761 = vmatprep.mubr.msk.f32.mxu1 %vm14075_vm2, %v17777_v38  ;;  %v8114_v31 = vld [vmem:[#allocation8 + $0x810] sm:$0xff] }
 0x992   : > { %13443 = vmatprep.subr.bf16.mxu1 %v14074_v8  ;;  %v8125_v5 = vand.u32 4294901760, %v8114_v31 }
 0x995   : > { %13445 = vmatpush3.bf16.msra.mxu1 %v13444_v44  ;;  %v8115_v44 = vld [vmem:[#allocation8 + $0x820] sm:$0xff] }
 0x996   : > { %13446 = vmatprep.subr.bf16.mxu1 %v14074_v8  ;;  %v8128_v47 = vand.u32 4294901760, %v8115_v44 }
 0x998   : > { %11762 = vmatmul.mubr.f32.vlgmr.msra.gmra.mrb[10].mxu1 %v7209_v9  ;;  %v8216_v6 = vsub.f32 %v8115_v44, %v8128_v47 }
 0x999   : > { %13448 = vmatpush3.bf16.msra.mxu1 %v13447_v10  ;;  %11772 = vmatprep.mubr.msk.f32.mxu1 %vm14075_vm2, %v17777_v38  ;;  %v8116_v10 = vld [vmem:[#allocation8 + $0x830] sm:$0xff] }
 0x99a   : > { %13449 = vmatprep.subr.bf16.mxu1 %v14074_v8  ;;  %v8131_v18 = vand.u32 4294901760, %v8116_v10  ;;  %v8217_v58 = vand.u32 4294901760, %v8216_v6 }
 0x99c   : > { %v8223_v23 = vsub.f32 %v8116_v10, %v8131_v18  ;;  %v13510_v62 = vpack.c.bf16 %v8131_v18, %v8128_v47  ;;  %v8218_v25 = vsub.f32 %v8216_v6, %v8217_v58 }
 0x99d   : > { %13451 = vmatpush3.bf16.msra.mxu1 %v13450_v40  ;;  %v8119_v40 = vsel %vm7117_vm5, %v8117_v33, 0 }
 0x99e   : > { %13452 = vmatprep.subr.bf16.mxu1 %v14074_v8  ;;  %v17356_v48 = vand.u32 4294901760, %v8119_v40  ;;  %v8224_v32 = vand.u32 4294901760, %v8223_v23  ;;  %v8219_v41 = vand.u32 4294901760, %v8218_v25  ;;  %v13522_v50 = vpack.c.bf16 %v8223_v23, %v8216_v6 }
 0x9a0   : > { %11773 = vmatmul.mubr.f32.vlgmr.msra.gmra.mrb[10].mxu1 %v7210_v12  ;;  %v8191_v15 = vsub.f32 %v8119_v40, %v17356_v48  ;;  %v8225_v19 = vsub.f32 %v8223_v23, %v8224_v32  ;;  %v13534_v61 = vpack.c.bf16 %v8224_v32, %v8217_v58 }
 0x9a1   : > { %13454 = vmatpush3.bf16.msra.mxu1 %v17288_v57  ;;  %11783 = vmatprep.mubr.msk.f32.mxu1 %vm14075_vm2, %v17777_v38 }
 0x9a2   : > { %13455 = vmatprep.subr.bf16.mxu1 %v14074_v8  ;;  %v8192_v20 = vand.u32 4294901760, %v8191_v15  ;;  %v8226_v35 = vand.u32 4294901760, %v8225_v19 }
 0x9a4   : > { %v8193_v11 = vsub.f32 %v8191_v15, %v8192_v20  ;;  %v13516_v52 = vpack.c.bf16 %v8226_v35, %v8219_v41  ;;  %v9554_v41 = vld [vmem:[#allocation8 + $0x880] sm:$0xff]  ;;  %v9555_v35 = vld [vmem:[#allocation8 + $0x890] sm:$0xff] }
 0x9a5   : > { %13457 = vmatpush3.bf16.msra.mxu1 %v17291_v51 }
 0x9a6   : > { %13458 = vmatprep.subr.bf16.mxu1 %v14074_v8  ;;  %v8194_v56 = vand.u32 4294901760, %v8193_v11 }
 0x9a8   : > { %11784 = vmatmul.mubr.f32.vlgmr.msra.gmra.mrb[10].mxu1 %v7211_v49 }
 0x9a9   : > { %13460 = vmatpush3.bf16.msra.mxu1 %v13459_v59  ;;  %11794 = vmatprep.mubr.msk.f32.mxu1 %vm14075_vm2, %v17777_v38  ;;  %v8202_v59 = vsub.f32 %v8113_v16, %v8122_v3 }
 0x9aa   : > { %13461 = vmatprep.subr.bf16.mxu1 %v14074_v8 }
 0x9ab   : > { %v8203_v37 = vand.u32 4294901760, %v8202_v59 }
 0x9ad   : > { %13463 = vmatpush3.bf16.msra.mxu1 %v13462_v14  ;;  %v8209_v14 = vsub.f32 %v8114_v31, %v8125_v5  ;;  %v8204_v12 = vsub.f32 %v8202_v59, %v8203_v37 }
 0x9ae   : > { %13464 = vmatprep.subr.bf16.mxu1 %v14074_v8 }
 0x9af   : > { %v8210_v28 = vand.u32 4294901760, %v8209_v14  ;;  %v8205_v21 = vand.u32 4294901760, %v8204_v12 }
 0x9b0   : > { %11795 = vmatmul.mubr.f32.vlgmr.msra.gmra.mrb[10].mxu1 %v7209_v9 }
 0x9b1   : > { %13466 = vmatpush3.bf16.msra.mxu1 %v17288_v57  ;;  %11805 = vmatprep.mubr.msk.f32.mxu1 %vm14075_vm2, %v17777_v38  ;;  %v7699_v57 = vand.u32 4294901760, %v7698_v26  ;;  %v8211_v49 = vsub.f32 %v8209_v14, %v8210_v28  ;;  %v13531_v54 = vpack.c.bf16 %v8210_v28, %v8203_v37 }
 0x9b2   : > { %13467 = vmatprep.subr.bf16.mxu1 %v14074_v8 }
 0x9b3   : > { %v8212_v24 = vand.u32 4294901760, %v8211_v49 }
 0x9b5   : > { %13469 = vmatpush3.bf16.msra.mxu1 %v17291_v51  ;;  %v7700_v51 = vsub.f32 %v7698_v26, %v7699_v57  ;;  %v13513_v17 = vpack.c.bf16 %v8212_v24, %v8205_v21 }
 0x9b6   : > { %13470 = vmatprep.subr.bf16.mxu1 %v14074_v8 }
 0x9b7   : > { %v7701_v42 = vand.u32 4294901760, %v7700_v51 }
 0x9b8   : > { %11806 = vmatmul.mubr.f32.vlgmr.msra.gmra.mrb[10].mxu1 %v7209_v9  ;;  %v13507_v9 = vpack.c.bf16 %v8125_v5, %v8122_v3 }
 0x9b9   : > { %13472 = vmatpush3.bf16.msra.mxu1 %v17324_v55  ;;  %11816 = vmatprep.mubr.msk.f32.mxu1 %vm14075_vm2, %v17777_v38 }
 0x9ba   : > { %13473 = vmatprep.subr.bf16.mxu1 %v14074_v8 }
 0x9bd   : > { %13475 = vmatpush3.bf16.msra.mxu1 %v17328_v43 }
 0x9be   : > { %13476 = vmatprep.subr.bf16.mxu1 %v14074_v8 }
 0x9c0   : > { %11817 = vmatmul.mubr.f32.vlgmr.msra.gmra.mrb[10].mxu1 %v7701_v42 }
 0x9c1   : > { %13478 = vmatpush3.bf16.msra.mxu1 %v13477_v45  ;;  %11827 = vmatprep.mubr.msk.f32.mxu1 %vm14075_vm2, %v17777_v38 }
 0x9c2   : > { %13479 = vmatprep.subr.bf16.mxu1 %v14074_v8 }
 0x9c5   : > { %13481 = vmatpush3.bf16.msra.mxu1 %v13480_v63 }
 0x9c6   : > { %13482 = vmatprep.subr.bf16.mxu1 %v14074_v8 }
 0x9c8   : > { %11828 = vmatmul.mubr.f32.vlgmr.msra.gmra.mrb[10].mxu1 %v17317_v36 }
 0x9c9   : > { %13484 = vmatpush3.bf16.msra.mxu1 %v13483_v13  ;;  %11838 = vmatprep.mubr.msk.f32.mxu1 %vm14075_vm2, %v17777_v38 }
 0x9ca   : > { %13485 = vmatprep.subr.bf16.mxu1 %v14074_v8 }
 0x9cd   : > { %13487 = vmatpush3.bf16.msra.mxu1 %v13486_v34 }
 0x9ce   : > { %13488 = vmatprep.subr.bf16.mxu1 %v14074_v8 }
 0x9d0   : > { %11839 = vmatmul.mubr.f32.vlgmr.msra.gmra.mrb[10].mxu1 %v7698_v26  ;;  %v8626_v26 = vld [vmem:[#allocation8 + $0x860] sm:$0xff] }
 0x9d1   : > { %13490 = vmatpush3.bf16.msra.mxu1 %v17324_v55  ;;  %11849 = vmatprep.mubr.msk.f32.mxu1 %vm14075_vm2, %v17777_v38  ;;  %v8634_v2 = vand.u32 4294901760, %v8626_v26 }
 0x9d2   : > { %13491 = vmatprep.subr.bf16.mxu1 %v14074_v8 }
 0x9d5   : > { %13493 = vmatpush3.bf16.msra.mxu1 %v17328_v43 }
 0x9d6   : > { %13494 = vmatprep.subr.bf16.mxu1 %v14074_v8 }
 0x9d8   : > { %11850 = vmatmul.mubr.f32.vlgmr.msra.gmra.mrb[10].mxu1 %v7699_v57  ;;  %v8712_v57 = vsub.f32 %v8626_v26, %v8634_v2 }
 0x9d9   : > { %13496 = vmatpush3.bf16.msra.mxu1 %v13495_v27  ;;  %11860 = vmatprep.mubr.msk.f32.mxu1 %vm14075_vm2, %v17777_v38 }
 0x9da   : > { %13497 = vmatprep.subr.bf16.mxu1 %v14074_v8  ;;  %v8713_v39 = vand.u32 4294901760, %v8712_v57 }
 0x9dc   : > { %v8714_v29 = vsub.f32 %v8712_v57, %v8713_v39 }
 0x9dd   : > { %13499 = vmatpush3.bf16.msra.mxu1 %v13498_v22 }
 0x9de   : > { %13500 = vmatprep.subr.bf16.mxu1 %v14074_v8  ;;  %v8715_v51 = vand.u32 4294901760, %v8714_v29 }
 0x9e0   : > { %11861 = vmatmul.mubr.f32.vlgmr.msra.gmra.mrb[10].mxu1 %v17317_v36 }
 0x9e1   : > { %13502 = vmatpush3.bf16.msra.mxu1 %v17324_v55  ;;  %11871 = vmatprep.mubr.msk.f32.mxu1 %vm14075_vm2, %v17777_v38  ;;  %v8627_v55 = vld [vmem:[#allocation8 + $0x870] sm:$0xff] }
 0x9e2   : > { %13503 = vmatprep.subr.bf16.mxu1 %v14074_v8  ;;  %v8637_v60 = vand.u32 4294901760, %v8627_v55 }
 0x9e4   : > { %v13543_v4 = vpack.c.bf16 %v8637_v60, %v8634_v2 }
 0x9e5   : > { %13505 = vmatpush3.bf16.msra.mxu1 %v17328_v43  ;;  %v8719_v43 = vsub.f32 %v8627_v55, %v8637_v60 }
 0x9e6   : > { %13506 = vmatprep.subr.bf16.mxu1 %v14074_v8 }
 0x9e7   : > { %v8720_v46 = vand.u32 4294901760, %v8719_v43  ;;  %v13549_v1 = vpack.c.bf16 %v8719_v43, %v8712_v57 }
 0x9e8   : > { %11872 = vmatmul.mubr.f32.vlgmr.msra.gmra.mrb[10].mxu1 %v17317_v36  ;;  %v13519_v36 = vpack.c.bf16 %v8209_v14, %v8202_v59  ;;  %v8623_v59 = vld [vmem:[#allocation8 + $0x840] sm:$0xff]  ;;  %v8624_v14 = vld [vmem:[#allocation8 + $0x850] sm:$0xff] }
 0x9e9   : > { %13508 = vmatpush3.bf16.msra.mxu1 %v13507_v9  ;;  %11882 = vmatprep.mubr.msk.f32.mxu1 %vm14075_vm2, %v17777_v38  ;;  %v8721_v30 = vsub.f32 %v8719_v43, %v8720_v46  ;;  %v13555_v42 = vpack.c.bf16 %v8720_v46, %v8713_v39  ;;  %v9096_v18 = vand.u32 4294901760, %v8623_v59 }
 0x9ea   : > { %13509 = vmatprep.subr.bf16.mxu1 %v14074_v8 }
 0x9eb   : > { %v8722_v45 = vand.u32 4294901760, %v8721_v30  ;;  %v9174_v23 = vsub.f32 %v8623_v59, %v9096_v18 }
 0x9ed   : > { %13511 = vmatpush3.bf16.msra.mxu1 %v13510_v62  ;;  %v13546_v7 = vpack.c.bf16 %v8722_v45, %v8715_v51 }
 0x9ee   : > { %13512 = vmatprep.subr.bf16.mxu1 %v14074_v8 }
 0x9f0   : > { %11883 = vmatmul.mubr.f32.vlgmr.msra.gmra.mrb[10].mxu1 %v8194_v56 }
 0x9f1   : > { %13514 = vmatpush3.bf16.msra.mxu1 %v13513_v17  ;;  %11893 = vmatprep.mubr.msk.f32.mxu1 %vm14075_vm2, %v17777_v38 }
 0x9f2   : > { %13515 = vmatprep.subr.bf16.mxu1 %v14074_v8 }
 0x9f5   : > { %13517 = vmatpush3.bf16.msra.mxu1 %v13516_v52  ;;  %v9561_v52 = vand.u32 4294901760, %v9554_v41 }
 0x9f6   : > { %13518 = vmatprep.subr.bf16.mxu1 %v14074_v8 }
 0x9f8   : > { %11894 = vmatmul.mubr.f32.vlgmr.msra.gmra.mrb[10].mxu1 %v17356_v48 }
 0x9f9   : > { %13520 = vmatpush3.bf16.msra.mxu1 %v13519_v36  ;;  %11904 = vmatprep.mubr.msk.f32.mxu1 %vm14075_vm2, %v17777_v38  ;;  %v9564_v36 = vand.u32 4294901760, %v9555_v35 }
 0x9fa   : > { %13521 = vmatprep.subr.bf16.mxu1 %v14074_v8 }
 0x9fb   : > { %v13579_v2 = vpack.c.bf16 %v9564_v36, %v9561_v52 }
 0x9fd   : > { %13523 = vmatpush3.bf16.msra.mxu1 %v13522_v50 }
 0x9fe   : > { %13524 = vmatprep.subr.bf16.mxu1 %v14074_v8 }
 0xa00   : > { %11905 = vmatmul.mubr.f32.vlgmr.msra.gmra.mrb[10].mxu1 %v8191_v15  ;;  %v9175_v15 = vand.u32 4294901760, %v9174_v23 }
 0xa01   : > { %13526 = vmatpush3.bf16.msra.mxu1 %v13507_v9  ;;  %11915 = vmatprep.mubr.msk.f32.mxu1 %vm14075_vm2, %v17777_v38 }
 0xa02   : > { %13527 = vmatprep.subr.bf16.mxu1 %v14074_v8  ;;  %v9176_v58 = vsub.f32 %v9174_v23, %v9175_v15 }
 0xa05   : > { %13529 = vmatpush3.bf16.msra.mxu1 %v13510_v62 }
 0xa06   : > { %13530 = vmatprep.subr.bf16.mxu1 %v14074_v8 }
 0xa08   : > { %11916 = vmatmul.mubr.f32.vlgmr.msra.gmra.mrb[10].mxu1 %v8192_v20 }
 0xa09   : > { %13532 = vmatpush3.bf16.msra.mxu1 %v13531_v54  ;;  %11926 = vmatprep.mubr.msk.f32.mxu1 %vm14075_vm2, %v17777_v38  ;;  %v9639_v54 = vsub.f32 %v9554_v41, %v9561_v52 }
 0xa0a   : > { %13533 = vmatprep.subr.bf16.mxu1 %v14074_v8 }
 0xa0b   : > { %v9640_v26 = vand.u32 4294901760, %v9639_v54 }
 0xa0d   : > { %13535 = vmatpush3.bf16.msra.mxu1 %v13534_v61  ;;  %v9646_v61 = vsub.f32 %v9555_v35, %v9564_v36  ;;  %v9641_v60 = vsub.f32 %v9639_v54, %v9640_v26 }
 0xa0e   : > { %13536 = vmatprep.subr.bf16.mxu1 %v14074_v8 }
 0xa0f   : > { %v9647_v55 = vand.u32 4294901760, %v9646_v61  ;;  %v9642_v43 = vand.u32 4294901760, %v9641_v60  ;;  %v13585_v51 = vpack.c.bf16 %v9646_v61, %v9639_v54 }
 0xa10   : > { %11927 = vmatmul.mubr.f32.vlgmr.msra.gmra.mrb[10].mxu1 %v17356_v48 }
 0xa11   : > { %13538 = vmatpush3.bf16.msra.mxu1 %v13507_v9  ;;  %11937 = vmatprep.mubr.msk.f32.mxu1 %vm14075_vm2, %v17777_v38  ;;  %v13591_v45 = vpack.c.bf16 %v9647_v55, %v9640_v26 }
 0xa12   : > { %13539 = vmatprep.subr.bf16.mxu1 %v14074_v8 }
 0xa15   : > { %13541 = vmatpush3.bf16.msra.mxu1 %v13510_v62  ;;  %v9177_v62 = vand.u32 4294901760, %v9176_v58 }
 0xa16   : > { %13542 = vmatprep.subr.bf16.mxu1 %v14074_v8 }
 0xa18   : > { %11938 = vmatmul.mubr.f32.vlgmr.msra.gmra.mrb[10].mxu1 %v17356_v48  ;;  %v9099_v48 = vand.u32 4294901760, %v8624_v14 }
 0xa19   : > { %11944 = vmatprep.mubr.msk.f32.mxu1 %vm14075_vm2, %v17777_v38  ;;  %13544 = vmatpush3.bf16.msra.mxu1 %v13543_v4 }
 0xa1a   : > { %13545 = vmatprep.subr.bf16.mxu1 %v14074_v8  ;;  %v9181_v37 = vsub.f32 %v8624_v14, %v9099_v48  ;;  %v13561_v49 = vpack.c.bf16 %v9099_v48, %v9096_v18 }
 0xa1c   : > { %v9182_v9 = vand.u32 4294901760, %v9181_v37  ;;  %v13567_v11 = vpack.c.bf16 %v9181_v37, %v9174_v23 }
 0xa1e   : > { %v9183_v32 = vsub.f32 %v9181_v37, %v9182_v9  ;;  %v13573_v17 = vpack.c.bf16 %v9182_v9, %v9175_v15 }
 0xa20   : > { %v9184_v21 = vand.u32 4294901760, %v9183_v32 }
 0xa22   : > { %v13564_v25 = vpack.c.bf16 %v9184_v21, %v9177_v62 }
 0xaeb   : > { %v8602_v0 = vpop.f32.mrb[10].mxu1 }
 0xaec   : > { %8608 = vrot.lane.b32.xlu1 %v8602_v0, %s14077_s27  ;;  %v11939_v53 = vpop.f32.mrb[11].mxu1 }
 0xb5e   : > { %v8609_v63 = vpop.permute.xlu1 %8608 }
 0xb5f   : > { %v8611_v13 = vmax.f32 %v8602_v0, %v8609_v63 }
 0xb61   : > { %v8612_v34 = vmax.f32 %v8611_v13, 0.0 }
 0xb63   : > { %8614 = vst.msk [vmem:[#allocation4] sm:$0xf] %vm8613_vm7, %v8612_v34 }
 0xb6a   : > { %v8615_v27 = vld [vmem:[#allocation4] ss:$2 sm:$0x3]  ;;  %v8616_v16 = vld [vmem:[#allocation4 + $0x1] ss:$2 sm:$0x3] }
 0xb6b   : > { %v8617_v31 = vmax.f32 %v8615_v27, %v8616_v16 }
 0xb6d   : > { %8622 = vst.msk [vmem:[#allocation2 + $0x1] sm:$0x3] %vm8621_vm8, %v8617_v31 }
 0xb74   : > { %v8628_v33 = vld [vmem:[#allocation2 + $0x1] sm:$0x3] }
 0xb75   : > { %v8631_v22 = vsel %vm8629_vm9, %v8628_v33, 0  ;;  %v8625_v47 = vld [vmem:[#allocation2] sm:$0x3]  ;;  %v9556_v56 = vld [vmem:[#allocation2 + $0x2] sm:$0x3] }
 0xb76   : > { %v8700_v3 = vand.u32 4294901760, %v8631_v22  ;;  %v9093_v6 = vsel %vm8629_vm9, %v8625_v47, 0  ;;  %v9558_v50 = vsel %vm8629_vm9, %v9556_v56, 0 }
 0xb77   : > { %v9162_v28 = vand.u32 4294901760, %v9093_v6  ;;  %v9627_v0 = vand.u32 4294901760, %v9558_v50 }
 0xb78   : > { %v8701_v5 = vsub.f32 %v8631_v22, %v8700_v3 }
 0xb79   : > { %v9163_v12 = vsub.f32 %v9093_v6, %v9162_v28  ;;  %v9628_v53 = vsub.f32 %v9558_v50, %v9627_v0 }
 0xb7a   : > { %v8702_v44 = vand.u32 4294901760, %v8701_v5 }
 0xb7b   : > { %v9164_v20 = vand.u32 4294901760, %v9163_v12  ;;  %v9629_v57 = vand.u32 4294901760, %v9628_v53 }
 0xb7c   : > { %v8703_v10 = vsub.f32 %v8701_v5, %v8702_v44 }
 0xb7d   : > { %v9165_v24 = vsub.f32 %v9163_v12, %v9164_v20  ;;  %v9630_v46 = vsub.f32 %v9628_v53, %v9629_v57 }
 0xb7e   : > { %v8704_v40 = vand.u32 4294901760, %v8703_v10 }
 0xb7f   : > { %v9166_v19 = vand.u32 4294901760, %v9165_v24  ;;  %v9631_v30 = vand.u32 4294901760, %v9630_v46 }
 0xb80   : > { %11945 = vmatmul.mubr.f32.vlgmr.msra.gmra.mrb[12].mxu1 %v8704_v40 }
 0xb81   : > { %13547 = vmatpush3.bf16.msra.mxu1 %v13546_v7  ;;  %11951 = vmatprep.mubr.msk.f32.mxu1 %vm14075_vm2, %v17777_v38 }
 0xb82   : > { %13548 = vmatprep.subr.bf16.mxu1 %v14074_v8 }
 0xb88   : > { %11952 = vmatmul.mubr.f32.vlgmr.msra.gmra.mrb[12].mxu1 %v8700_v3 }
 0xb89   : > { %13550 = vmatpush3.bf16.msra.mxu1 %v13549_v1  ;;  %11958 = vmatprep.mubr.msk.f32.mxu1 %vm14075_vm2, %v17777_v38 }
 0xb8a   : > { %13551 = vmatprep.subr.bf16.mxu1 %v14074_v8 }
 0xb90   : > { %11959 = vmatmul.mubr.f32.vlgmr.msra.gmra.mrb[12].mxu1 %v8701_v5 }
 0xb91   : > { %13553 = vmatpush3.bf16.msra.mxu1 %v13543_v4  ;;  %11965 = vmatprep.mubr.msk.f32.mxu1 %vm14075_vm2, %v17777_v38 }
 0xb92   : > { %13554 = vmatprep.subr.bf16.mxu1 %v14074_v8 }
 0xb98   : > { %11966 = vmatmul.mubr.f32.vlgmr.msra.gmra.mrb[12].mxu1 %v8702_v44 }
 0xb99   : > { %13556 = vmatpush3.bf16.msra.mxu1 %v13555_v42  ;;  %11972 = vmatprep.mubr.msk.f32.mxu1 %vm14075_vm2, %v17777_v38 }
 0xb9a   : > { %13557 = vmatprep.subr.bf16.mxu1 %v14074_v8 }
 0xba0   : > { %11973 = vmatmul.mubr.f32.vlgmr.msra.gmra.mrb[12].mxu1 %v8700_v3 }
 0xba1   : > { %13559 = vmatpush3.bf16.msra.mxu1 %v13543_v4  ;;  %11979 = vmatprep.mubr.msk.f32.mxu1 %vm14075_vm2, %v17777_v38  ;;  %v9648_v4 = vsub.f32 %v9646_v61, %v9647_v55 }
 0xba2   : > { %13560 = vmatprep.subr.bf16.mxu1 %v14074_v8 }
 0xba3   : > { %v9649_v39 = vand.u32 4294901760, %v9648_v4 }
 0xba5   : > { %v13582_v29 = vpack.c.bf16 %v9649_v39, %v9642_v43 }
 0xba8   : > { %11980 = vmatmul.mubr.f32.vlgmr.msra.gmra.mrb[12].mxu1 %v8700_v3 }
 0xba9   : > { %13562 = vmatpush3.bf16.msra.mxu1 %v13561_v49  ;;  %11986 = vmatprep.mubr.msk.f32.mxu1 %vm14075_vm2, %v17777_v38 }
 0xbaa   : > { %13563 = vmatprep.subr.bf16.mxu1 %v14074_v8 }
 0xbb0   : > { %11987 = vmatmul.mubr.f32.vlgmr.msra.gmra.mrb[12].mxu1 %v9166_v19 }
 0xbb1   : > { %13565 = vmatpush3.bf16.msra.mxu1 %v13564_v25  ;;  %11993 = vmatprep.mubr.msk.f32.mxu1 %vm14075_vm2, %v17777_v38 }
 0xbb2   : > { %13566 = vmatprep.subr.bf16.mxu1 %v14074_v8 }
 0xbb8   : > { %11994 = vmatmul.mubr.f32.vlgmr.msra.gmra.mrb[12].mxu1 %v9162_v28 }
 0xbb9   : > { %13568 = vmatpush3.bf16.msra.mxu1 %v13567_v11  ;;  %12000 = vmatprep.mubr.msk.f32.mxu1 %vm14075_vm2, %v17777_v38 }
 0xbba   : > { %13569 = vmatprep.subr.bf16.mxu1 %v14074_v8 }
 0xbc0   : > { %12001 = vmatmul.mubr.f32.vlgmr.msra.gmra.mrb[12].mxu1 %v9163_v12 }
 0xbc1   : > { %13571 = vmatpush3.bf16.msra.mxu1 %v13561_v49  ;;  %12007 = vmatprep.mubr.msk.f32.mxu1 %vm14075_vm2, %v17777_v38 }
 0xbc2   : > { %13572 = vmatprep.subr.bf16.mxu1 %v14074_v8 }
 0xbc8   : > { %12008 = vmatmul.mubr.f32.vlgmr.msra.gmra.mrb[12].mxu1 %v9164_v20 }
 0xbc9   : > { %13574 = vmatpush3.bf16.msra.mxu1 %v13573_v17  ;;  %12014 = vmatprep.mubr.msk.f32.mxu1 %vm14075_vm2, %v17777_v38 }
 0xbca   : > { %13575 = vmatprep.subr.bf16.mxu1 %v14074_v8 }
 0xbd0   : > { %12015 = vmatmul.mubr.f32.vlgmr.msra.gmra.mrb[12].mxu1 %v9162_v28 }
 0xbd1   : > { %13577 = vmatpush3.bf16.msra.mxu1 %v13561_v49  ;;  %12021 = vmatprep.mubr.msk.f32.mxu1 %vm14075_vm2, %v17777_v38 }
 0xbd2   : > { %13578 = vmatprep.subr.bf16.mxu1 %v14074_v8 }
 0xbd8   : > { %12022 = vmatmul.mubr.f32.vlgmr.msra.gmra.mrb[12].mxu1 %v9162_v28 }
 0xbd9   : > { %13580 = vmatpush3.bf16.msra.mxu1 %v13579_v2  ;;  %12028 = vmatprep.mubr.msk.f32.mxu1 %vm14075_vm2, %v17777_v38 }
 0xbda   : > { %13581 = vmatprep.subr.bf16.mxu1 %v14074_v8 }
 0xbe0   : > { %12029 = vmatmul.mubr.f32.vlgmr.msra.gmra.mrb[12].mxu1 %v9631_v30 }
 0xbe1   : > { %13583 = vmatpush3.bf16.msra.mxu1 %v13582_v29  ;;  %12035 = vmatprep.mubr.msk.f32.mxu1 %vm14075_vm2, %v17777_v38 }
 0xbe2   : > { %13584 = vmatprep.subr.bf16.mxu1 %v14074_v8 }
 0xbe8   : > { %12036 = vmatmul.mubr.f32.vlgmr.msra.gmra.mrb[12].mxu1 %v9627_v0 }
 0xbe9   : > { %13586 = vmatpush3.bf16.msra.mxu1 %v13585_v51  ;;  %12042 = vmatprep.mubr.msk.f32.mxu1 %vm14075_vm2, %v17777_v38 }
 0xbea   : > { %13587 = vmatprep.subr.bf16.mxu1 %v14074_v8 }
 0xbf0   : > { %12043 = vmatmul.mubr.f32.vlgmr.msra.gmra.mrb[12].mxu1 %v9628_v53 }
 0xbf1   : > { %13589 = vmatpush3.bf16.msra.mxu1 %v13579_v2  ;;  %12049 = vmatprep.mubr.msk.f32.mxu1 %vm14075_vm2, %v17777_v38 }
 0xbf2   : > { %13590 = vmatprep.subr.bf16.mxu1 %v14074_v8 }
 0xbf8   : > { %12050 = vmatmul.mubr.f32.vlgmr.msra.gmra.mrb[12].mxu1 %v9629_v57 }
 0xbf9   : > { %13592 = vmatpush3.bf16.msra.mxu1 %v13591_v45  ;;  %12056 = vmatprep.mubr.msk.f32.mxu1 %vm14075_vm2, %v17777_v38 }
 0xbfa   : > { %13593 = vmatprep.subr.bf16.mxu1 %v14074_v8 }
 0xc00   : > { %12057 = vmatmul.mubr.f32.vlgmr.msra.gmra.mrb[12].mxu1 %v9627_v0 }
 0xc01   : > { %13595 = vmatpush3.bf16.msra.mxu1 %v13579_v2  ;;  %12063 = vmatprep.mubr.msk.f32.mxu1 %vm14075_vm2, %v17777_v38 }
 0xc08   : > { %12064 = vmatmul.mubr.f32.vlgmr.msra.gmra.mrb[12].mxu1 %v9627_v0 }
 0xcdb   : > { %v10015_v7 = vpop.f32.mrb[12].mxu1 }
 0xcdc   : > { %10021 = vrot.lane.b32.xlu0 %v10015_v7, %s14078_s22  ;;  %v12065_v1 = vpop.f32.mrb[13].mxu1 }
 0xd4e   : > { %v10022_v8 = vpop.permute.xlu0 %10021 }
 0xd4f   : > { %v10024_v42 = vmax.f32 %v10015_v7, %v10022_v8 }
 0xd51   : > { %v10025_v63 = vmax.f32 %v10024_v42, 0.0 }
 0xd53   : > { %10027 = vst.msk [vmem:[#allocation4] sm:$0x3] %vm10026_vm11, %v10025_v63 }
 0xd5a   : > { %v10028_v13 = vld [vmem:[#allocation4] ss:$2 sm:$0x1]  ;;  %v10029_v34 = vld [vmem:[#allocation4 + $0x1] ss:$2 sm:$0x1] }
 0xd5b   : > { %v10030_v27 = vmax.f32 %v10028_v13, %v10029_v34 }
 0xd5d   : > { %10034 = vst.msk [vmem:[#allocation3 + $0x1] sm:$0x1] %vm10031_vm10, %v10030_v27 }
 0xd64   : > { %v10035_v38 = vld [vmem:[#allocation3 + $0x1] sm:$0x1] }
 0xd65   : > { %10036 = vst.msk [vmem:[%s175_s28] sm:$0x1] %vm10031_vm10, %v10035_v38 }
 0xd66   : > { %14007 = shalt.err (!%p14004_p7)
}
 0xd67   : > { %s14008_s26 = scalar_lea.hbm %s17460_s7, 16  ;;  %s14012_s30 = scalar_lea.hbm %s17507_s2, 32 }
 0xd68   : > { %p14009_p9 = scmp.ne.s32.totalorder %s17460_s7, %s14008_s26  ;;  %p14013_p5 = scmp.lt.u32.totalorder %s17460_s7, %s17507_s2 }
 0xd69   : > { %p14014_p11 = scmp.lt.u32.totalorder %s14012_s30, %s14008_s26  ;;  %p14016_p4 = scmp.lt.u32.totalorder %s14008_s26, %s17460_s7 }
 0xd6a   : > { %p14010_p2 = pnand %p14009_p9, %p14186_p12 }
 0xd6b   : > { %p14015_p1 = por %p14014_p11, %p14013_p5 }
 0xd6c   : > { %p14011_p0 = pneg %p14010_p2 }
 0xd6d   : > { %p14017_p6 = por %p14016_p4, %p14015_p1 }
 0xd6f   : > { %p14018_p8 = pnand %p14017_p6, %p14011_p0 }
 0xd71   : > { %14021 = shalt.err (!%p14018_p8)
}
 0xd72   : > { %13874 = dma.vmem_to_hbm [thread:$0]  (%p14186_p12), %s17462_s4, 16, %s17460_s7, %s10038_s18  }
 0xd73 PF: > { %s10062_s17 = sand.u32 1, %s14052_s9   ;;  %p18089_p10 = scmp.ne.s32.totalorder %s17736_s16, 0 }
 0xd74   : > { %p18090_p13 = scmp.ge.s32.totalorder %s14064_s12, 2  ;;  %s10063_s27 = scalar_lea.sflag [#allocation7], %s10062_s17 }
 0xd76   : > { %p13885_p3 = pnand %p18090_p13, %p18089_p10 }
 0xd78   : > { %14047 = dma.done.wait (!%p13885_p3), %s10063_s27, 16  }
 0xd79   : > { %14049 = vsyncadd (!%p13885_p3), %s10063_s27, 4294967280  ;;  %p16_p7 = scmp.ge.s32.totalorder %s14151_s21, 4   ;;  %s18091_s9 = smov %s14056_s10 }
 0xd7a   : > { %s18092_s10 = smov %s14060_s11  ;;  %s18093_s11 = smov %s14182_s8 }
 0xd7b   : > { %s18094_s12 = smov %s14151_s21  ;;  %18 = sbr.rel (!%p16_p7) target bundleno = 6 (0x6), region = 80 }
 0xd82   :  { %10067 = vsyncpa [#allocation6], 1 }
 0xd83   :  { %10069 = vsyncpa [#allocation6 + $0x1], 1 }
 0xd84   :  { %10070 = vsyncpa [#allocation9], 1 }
 0xd85   :  { %10071 = vsyncpa [#allocation7], 1 }
 0xd86   :  { %10073 = vsyncpa [#allocation7 + $0x1], 1 }

</bundles_post_ra>
